<compile_context>
chip_gen: v6e
topology: v6e:2x2x1
jax: 0.10.0
libtpu: 0.0.40
codegen_flags: <defaults>
</compile_context>

<pallas_src>
import functools

import jax
import jax.numpy as jnp
from jax import lax
from jax.experimental import pallas as pl
from jax.experimental.pallas import tpu as pltpu


# ---------------------------------------------------------------------------
# BatchNorm folding (eval mode) into conv weight / bias
# ---------------------------------------------------------------------------
def _fold_bn(w, b, bn):
    """Fold eval-mode BN into conv weight/bias (last weight axis = Cout)."""
    gamma, beta, mean, var, eps = bn
    scale = gamma / jnp.sqrt(var + eps)
    return w * scale, (b - mean) * scale + beta


# ---------------------------------------------------------------------------
# Fully fused _ResUnit2L kernel (one image per grid step):
#   conv1(3x3)+BN+ReLU -> conv2(3x3)+BN+ReLU, plus aux(1x1)+BN+ReLU or identity
#   shortcut, plus the residual add -- all in VMEM.
# ---------------------------------------------------------------------------
def _res_unit_kernel(*refs, has_aux, H, W, Wp, Cin, Cout):
    if has_aux:
        (x_ref, w1_ref, b1_ref, w2_ref, b2_ref, wa_ref, ba_ref,
         o_ref, xp1, xp2, p1, p2) = refs
    else:
        (x_ref, w1_ref, b1_ref, w2_ref, b2_ref,
         o_ref, xp1, xp2, p1, p2) = refs
        wa_ref = ba_ref = None

    bf16 = jnp.bfloat16
    taps = [(dy, dx) for dy in range(3) for dx in range(3)]

    # Zero only the 1-pixel halo ring; the interior is fully overwritten each
    # step.  Done every step (tiny stores) so correctness never depends on a
    # pid==0 init reaching every TensorCore of a megacore split.
    def _zero_halo(xp, c):
        xp[0:1, :, :] = jnp.zeros((1, Wp, c), xp.dtype)
        xp[H + 1:H + 2, :, :] = jnp.zeros((1, Wp, c), xp.dtype)
        xp[1:H + 1, 0:1, :] = jnp.zeros((H, 1, c), xp.dtype)
        xp[1:H + 1, W + 1:W + 2, :] = jnp.zeros((H, 1, c), xp.dtype)

    _zero_halo(xp1, Cin)
    _zero_halo(xp2, Cout)

    # ---- conv1: halo fill, im2col, ONE (H*W, 9*Cin) x (9*Cin, Cout) matmul ---
    xp1[1:H + 1, 1:W + 1, :] = x_ref[0]
    for t, (dy, dx) in enumerate(taps):
        p1[:, t * Cin:(t + 1) * Cin] = (
            xp1[dy:dy + H, dx:dx + W, :].reshape(H * W, Cin).astype(bf16))
    h = jnp.dot(p1[...], w1_ref[...], preferred_element_type=jnp.float32)
    h = jnp.maximum(h + b1_ref[...], 0.0)            # conv bias + folded BN + ReLU

    # ---- conv2: halo fill, im2col, ONE (H*W, 9*Cout) x (9*Cout, Cout) matmul -
    xp2[1:H + 1, 1:W + 1, :] = h.reshape(H, W, Cout)
    for t, (dy, dx) in enumerate(taps):
        p2[:, t * Cout:(t + 1) * Cout] = (
            xp2[dy:dy + H, dx:dx + W, :].reshape(H * W, Cout).astype(bf16))
    y = jnp.dot(p2[...], w2_ref[...], preferred_element_type=jnp.float32)
    y = jnp.maximum(y + b2_ref[...], 0.0)            # ReLU of the 2nd _BasicConv2d

    # ---- shortcut (computed last to keep live ranges short) ------------------
    if has_aux:
        xa = p1[:, 4 * Cin:5 * Cin]                  # center tap of patch1 == x (bf16)
        oral = jnp.dot(xa, wa_ref[...], preferred_element_type=jnp.float32)
        oral = jnp.maximum(oral + ba_ref[...], 0.0)
    else:
        oral = x_ref[0].reshape(H * W, Cout)         # identity shortcut, exact f32

    o_ref[0] = y + oral                              # residual add; NO relu after it


# ---------------------------------------------------------------------------
# _ResUnit2L forward (mirrors the PyTorch module)
# ---------------------------------------------------------------------------
def res_unit_2l_forward(params, x_nchw):
    """x_nchw: (N, Cin, H, W) float32 (PyTorch layout). Returns (N, Cout, H, W)."""
    x = jnp.transpose(x_nchw, (0, 2, 3, 1)).astype(jnp.float32)   # NCHW -> NHWC
    N, H, W, Cin = x.shape
    w1, b1, bn1 = params["conv1"]
    w2, b2, bn2 = params["conv2"]
    Cout = w1.shape[-1]

    # Fold BN, tap-stack the 3x3 weights to (9*C, Cout), bf16 matmul operands.
    w1f, b1f = _fold_bn(w1, b1, bn1)
    w2f, b2f = _fold_bn(w2, b2, bn2)
    w1m = w1f.reshape(9 * Cin, Cout).astype(jnp.bfloat16)
    w2m = w2f.reshape(9 * Cout, Cout).astype(jnp.bfloat16)

    has_aux = params["aux"] is not None
    args = [x, w1m, b1f.reshape(1, Cout), w2m, b2f.reshape(1, Cout)]
    in_specs = [
        pl.BlockSpec((1, H, W, Cin), lambda n: (n, 0, 0, 0)),     # one image / step
        pl.BlockSpec((9 * Cin, Cout), lambda n: (0, 0)),          # VMEM-resident weights
        pl.BlockSpec((1, Cout), lambda n: (0, 0)),
        pl.BlockSpec((9 * Cout, Cout), lambda n: (0, 0)),
        pl.BlockSpec((1, Cout), lambda n: (0, 0)),
    ]
    if has_aux:
        wa, ba, bna = params["aux"]
        waf, baf = _fold_bn(wa, ba, bna)
        args += [waf.astype(jnp.bfloat16), baf.reshape(1, Cout)]
        in_specs += [pl.BlockSpec((Cin, Cout), lambda n: (0, 0)),
                     pl.BlockSpec((1, Cout), lambda n: (0, 0))]
    else:
        assert Cin == Cout, "identity shortcut needs in_channels == out_channels"

    Wp = ((W + 2 + 7) // 8) * 8          # sublane-aligned padded width

    out_flat = pl.pallas_call(
        functools.partial(_res_unit_kernel, has_aux=has_aux,
                          H=H, W=W, Wp=Wp, Cin=Cin, Cout=Cout),
        out_shape=jax.ShapeDtypeStruct((N, H * W, Cout), jnp.float32),
        grid=(N,),
        in_specs=in_specs,
        out_specs=pl.BlockSpec((1, H * W, Cout), lambda n: (n, 0, 0)),
        scratch_shapes=[
            pltpu.VMEM((H + 2, Wp, Cin), jnp.float32),     # conv1 padded input
            pltpu.VMEM((H + 2, Wp, Cout), jnp.float32),    # conv2 padded input (h)
            pltpu.VMEM((H * W, 9 * Cin), jnp.bfloat16),    # conv1 im2col patch
            pltpu.VMEM((H * W, 9 * Cout), jnp.bfloat16),   # conv2 im2col patch
        ],
        compiler_params=pltpu.CompilerParams(
            dimension_semantics=("parallel",)),            # megacore over batch
    )(*args)

    y = out_flat.reshape(N, H, W, Cout)                    # flat -> NHWC (wrapper-side)
    return jnp.transpose(y, (0, 3, 1, 2))                  # NHWC -> NCHW


# ---------------------------------------------------------------------------
# Deterministic parameter init (PyTorch layouts, then transposed for TPU)
# ---------------------------------------------------------------------------
def init_params(key, cin, cout, aux):
    def bn_params(k, c):
        k1, k2, k3, k4 = jax.random.split(k, 4)
        gamma = 1.0 + 0.1 * jax.random.normal(k1, (c,), jnp.float32)
        beta = 0.1 * jax.random.normal(k2, (c,), jnp.float32)
        mean = 0.1 * jax.random.normal(k3, (c,), jnp.float32)
        var = jax.random.uniform(k4, (c,), jnp.float32, 0.5, 1.5)
        return (gamma, beta, mean, var, 1e-5)

    def conv_params(k, ci, co, ks):
        k1, k2, k3 = jax.random.split(k, 3)
        std = (2.0 / (ks * ks * ci)) ** 0.5
        w = jax.random.normal(k1, (co, ci, ks, ks), jnp.float32) * std   # torch OIHW
        b = 0.01 * jax.random.normal(k2, (co,), jnp.float32)
        return w, b, bn_params(k3, co)

    k1, k2, k3 = jax.random.split(key, 3)
    w1, b1, bn1 = conv_params(k1, cin, cout, 3)
    w2, b2, bn2 = conv_params(k2, cout, cout, 3)
    params = {
        "conv1": (jnp.transpose(w1, (2, 3, 1, 0)), b1, bn1),   # -> (3,3,Cin,Cout)
        "conv2": (jnp.transpose(w2, (2, 3, 1, 0)), b2, bn2),
        "aux": None,
    }
    if aux:
        wa, ba, bna = conv_params(k3, cin, cout, 1)
        params["aux"] = (jnp.transpose(wa, (2, 3, 1, 0))[0, 0], ba, bna)  # (Cin,Cout)
    return params


# ---------------------------------------------------------------------------
# Pure-JAX reference (for correctness check only)
# ---------------------------------------------------------------------------
def _ref_basic_conv(x, w, b, bn, padding):
    gamma, beta, mean, var, eps = bn
    y = lax.conv_general_dilated(x, w, (1, 1), padding,
                                 dimension_numbers=("NHWC", "HWIO", "NHWC"),
                                 precision=lax.Precision.HIGHEST)
    y = (y + b - mean) * (gamma / jnp.sqrt(var + eps)) + beta
    return jnp.maximum(y, 0.0)


def ref_forward(params, x_nchw):
    x = jnp.transpose(x_nchw, (0, 2, 3, 1)).astype(jnp.float32)
    w1, b1, bn1 = params["conv1"]
    w2, b2, bn2 = params["conv2"]
    h = _ref_basic_conv(x, w1, b1, bn1, "SAME")
    y = _ref_basic_conv(h, w2, b2, bn2, "SAME")
    if params["aux"] is not None:
        wa, ba, bna = params["aux"]
        oral = _ref_basic_conv(x, wa[None, None], ba, bna, "VALID")
    else:
        oral = x
    return jnp.transpose(y + oral, (0, 3, 1, 2))


if __name__ == "__main__":
    key = jax.random.PRNGKey(0)
    kp1, kp2, kx1, kx2 = jax.random.split(key, 4)

    # Unit A: channel-changing block -> aux 1x1 conv shortcut (aux=True).
    params_a = init_params(kp1, cin=4, cout=32, aux=True)
    x_a = jax.random.normal(kx1, (2, 4, 16, 16), jnp.float32)     # NCHW like torch

    # Unit B: identity shortcut (aux=False, in_channels == out_channels).
    params_b = init_params(kp2, cin=32, cout=32, aux=False)
    x_b = jax.random.normal(kx2, (2, 32, 16, 16), jnp.float32)

    fwd = jax.jit(res_unit_2l_forward)
    out_a = jax.block_until_ready(fwd(params_a, x_a))
    out_b = jax.block_until_ready(fwd(params_b, x_b))

    assert out_a.shape == (2, 32, 16, 16), out_a.shape
    assert out_b.shape == (2, 32, 16, 16), out_b.shape

    ref_a = ref_forward(params_a, x_a)
    ref_b = ref_forward(params_b, x_b)
    # Tolerances sized for bf16 MXU operands (f32 accumulation, f32 epilogue).
    assert bool(jnp.allclose(out_a, ref_a, rtol=2e-2, atol=5e-2)), \
        f"aux path mismatch, max err {float(jnp.max(jnp.abs(out_a - ref_a)))}"
    assert bool(jnp.allclose(out_b, ref_b, rtol=2e-2, atol=5e-2)), \
        f"identity path mismatch, max err {float(jnp.max(jnp.abs(out_b - ref_b)))}"

    print("KERNEL_OK")
</pallas_src>

<mosaic_0001>
module attributes {stable_mosaic.version = 11 : i64} {
  func.func @_res_unit_kernel(%arg0: i32, %arg1: memref<1x16x16x4xf32, #tpu.memory_space<vmem>>, %arg2: memref<36x32xbf16, #tpu.memory_space<vmem>>, %arg3: memref<1x32xf32, #tpu.memory_space<vmem>>, %arg4: memref<288x32xbf16, #tpu.memory_space<vmem>>, %arg5: memref<1x32xf32, #tpu.memory_space<vmem>>, %arg6: memref<4x32xbf16, #tpu.memory_space<vmem>>, %arg7: memref<1x32xf32, #tpu.memory_space<vmem>>, %arg8: memref<1x256x32xf32, #tpu.memory_space<vmem>>, %arg9: memref<18x24x4xf32, #tpu.memory_space<vmem>>, %arg10: memref<18x24x32xf32, #tpu.memory_space<vmem>>, %arg11: memref<256x36xbf16, #tpu.memory_space<vmem>>, %arg12: memref<256x288xbf16, #tpu.memory_space<vmem>>) attributes {dimension_semantics = [#tpu.dimension_semantics<parallel>], iteration_bounds = array<i64: 2>, scalar_prefetch = 0 : i64, scratch_operands = 4 : i64, tpu.core_type = #tpu.core_type<tc>, window_params = [{transform_indices = @transform_0, window_bounds = array<i64: 1, 16, 16, 4>}, {pipeline_mode = #tpu.pipeline_mode<synchronous>, transform_indices = @transform_1, window_bounds = array<i64: 36, 32>}, {pipeline_mode = #tpu.pipeline_mode<synchronous>, transform_indices = @transform_2, window_bounds = array<i64: 1, 32>}, {pipeline_mode = #tpu.pipeline_mode<synchronous>, transform_indices = @transform_3, window_bounds = array<i64: 288, 32>}, {pipeline_mode = #tpu.pipeline_mode<synchronous>, transform_indices = @transform_4, window_bounds = array<i64: 1, 32>}, {pipeline_mode = #tpu.pipeline_mode<synchronous>, transform_indices = @transform_5, window_bounds = array<i64: 4, 32>}, {pipeline_mode = #tpu.pipeline_mode<synchronous>, transform_indices = @transform_6, window_bounds = array<i64: 1, 32>}, {transform_indices = @transform_7, window_bounds = array<i64: 1, 256, 32>}]} {
    %cst = arith.constant 0.000000e+00 : f32
    %0 = vector.broadcast %cst : f32 to vector<1x24x4xf32>
    %c0 = arith.constant 0 : index
    %c0_0 = arith.constant 0 : index
    %c0_1 = arith.constant 0 : index
    %1 = vector.load %arg9[%c0, %c0_0, %c0_1] : memref<18x24x4xf32, #tpu.memory_space<vmem>>, vector<1x24x4xf32>
    tpu.vector_store %arg9[%c0, %c0_0, %c0_1], %0 {strides = array<i32>} : memref<18x24x4xf32, #tpu.memory_space<vmem>>, vector<1x24x4xf32>,
    %cst_2 = arith.constant 0.000000e+00 : f32
    %2 = vector.broadcast %cst_2 : f32 to vector<1x24x4xf32>
    %c17 = arith.constant 17 : index
    %c0_3 = arith.constant 0 : index
    %c0_4 = arith.constant 0 : index
    %3 = vector.load %arg9[%c17, %c0_3, %c0_4] : memref<18x24x4xf32, #tpu.memory_space<vmem>>, vector<1x24x4xf32>
    tpu.vector_store %arg9[%c17, %c0_3, %c0_4], %2 {strides = array<i32>} : memref<18x24x4xf32, #tpu.memory_space<vmem>>, vector<1x24x4xf32>,
    %cst_5 = arith.constant 0.000000e+00 : f32
    %4 = vector.broadcast %cst_5 : f32 to vector<16x1x4xf32>
    %c1 = arith.constant 1 : index
    %c0_6 = arith.constant 0 : index
    %c0_7 = arith.constant 0 : index
    %5 = vector.load %arg9[%c1, %c0_6, %c0_7] : memref<18x24x4xf32, #tpu.memory_space<vmem>>, vector<16x1x4xf32>
    tpu.vector_store %arg9[%c1, %c0_6, %c0_7], %4 {strides = array<i32>} : memref<18x24x4xf32, #tpu.memory_space<vmem>>, vector<16x1x4xf32>,
    %cst_8 = arith.constant 0.000000e+00 : f32
    %6 = vector.broadcast %cst_8 : f32 to vector<16x1x4xf32>
    %c1_9 = arith.constant 1 : index
    %c17_10 = arith.constant 17 : index
    %c0_11 = arith.constant 0 : index
    %7 = vector.load %arg9[%c1_9, %c17_10, %c0_11] : memref<18x24x4xf32, #tpu.memory_space<vmem>>, vector<16x1x4xf32>
    tpu.vector_store %arg9[%c1_9, %c17_10, %c0_11], %6 {strides = array<i32>} : memref<18x24x4xf32, #tpu.memory_space<vmem>>, vector<16x1x4xf32>,
    %cst_12 = arith.constant 0.000000e+00 : f32
    %8 = vector.broadcast %cst_12 : f32 to vector<1x24x32xf32>
    %c0_13 = arith.constant 0 : index
    %c0_14 = arith.constant 0 : index
    %c0_15 = arith.constant 0 : index
    %9 = vector.load %arg10[%c0_13, %c0_14, %c0_15] : memref<18x24x32xf32, #tpu.memory_space<vmem>>, vector<1x24x32xf32>
    tpu.vector_store %arg10[%c0_13, %c0_14, %c0_15], %8 {strides = array<i32>} : memref<18x24x32xf32, #tpu.memory_space<vmem>>, vector<1x24x32xf32>,
    %cst_16 = arith.constant 0.000000e+00 : f32
    %10 = vector.broadcast %cst_16 : f32 to vector<1x24x32xf32>
    %c17_17 = arith.constant 17 : index
    %c0_18 = arith.constant 0 : index
    %c0_19 = arith.constant 0 : index
    %11 = vector.load %arg10[%c17_17, %c0_18, %c0_19] : memref<18x24x32xf32, #tpu.memory_space<vmem>>, vector<1x24x32xf32>
    tpu.vector_store %arg10[%c17_17, %c0_18, %c0_19], %10 {strides = array<i32>} : memref<18x24x32xf32, #tpu.memory_space<vmem>>, vector<1x24x32xf32>,
    %cst_20 = arith.constant 0.000000e+00 : f32
    %12 = vector.broadcast %cst_20 : f32 to vector<16x1x32xf32>
    %c1_21 = arith.constant 1 : index
    %c0_22 = arith.constant 0 : index
    %c0_23 = arith.constant 0 : index
    %13 = vector.load %arg10[%c1_21, %c0_22, %c0_23] : memref<18x24x32xf32, #tpu.memory_space<vmem>>, vector<16x1x32xf32>
    tpu.vector_store %arg10[%c1_21, %c0_22, %c0_23], %12 {strides = array<i32>} : memref<18x24x32xf32, #tpu.memory_space<vmem>>, vector<16x1x32xf32>,
    %cst_24 = arith.constant 0.000000e+00 : f32
    %14 = vector.broadcast %cst_24 : f32 to vector<16x1x32xf32>
    %c1_25 = arith.constant 1 : index
    %c17_26 = arith.constant 17 : index
    %c0_27 = arith.constant 0 : index
    %15 = vector.load %arg10[%c1_25, %c17_26, %c0_27] : memref<18x24x32xf32, #tpu.memory_space<vmem>>, vector<16x1x32xf32>
    tpu.vector_store %arg10[%c1_25, %c17_26, %c0_27], %14 {strides = array<i32>} : memref<18x24x32xf32, #tpu.memory_space<vmem>>, vector<16x1x32xf32>,
    %c0_28 = arith.constant 0 : index
    %c0_29 = arith.constant 0 : index
    %c0_30 = arith.constant 0 : index
    %c0_31 = arith.constant 0 : index
    %16 = vector.load %arg1[%c0_28, %c0_29, %c0_30, %c0_31] : memref<1x16x16x4xf32, #tpu.memory_space<vmem>>, vector<1x16x16x4xf32>
    %17 = vector.shape_cast %16 : vector<1x16x16x4xf32> to vector<16x16x4xf32>
    %c1_32 = arith.constant 1 : index
    %c1_33 = arith.constant 1 : index
    %c0_34 = arith.constant 0 : index
    %18 = vector.load %arg9[%c1_32, %c1_33, %c0_34] : memref<18x24x4xf32, #tpu.memory_space<vmem>>, vector<16x16x4xf32>
    tpu.vector_store %arg9[%c1_32, %c1_33, %c0_34], %17 {strides = array<i32>} : memref<18x24x4xf32, #tpu.memory_space<vmem>>, vector<16x16x4xf32>,
    %c0_35 = arith.constant 0 : index
    %c0_36 = arith.constant 0 : index
    %c0_37 = arith.constant 0 : index
    %19 = vector.load %arg9[%c0_35, %c0_36, %c0_37] : memref<18x24x4xf32, #tpu.memory_space<vmem>>, vector<16x16x4xf32>
    %20 = vector.shape_cast %19 : vector<16x16x4xf32> to vector<256x4xf32>
    %21 = arith.truncf %20 : vector<256x4xf32> to vector<256x4xbf16>
    %c0_38 = arith.constant 0 : index
    %c0_39 = arith.constant 0 : index
    %22 = vector.load %arg11[%c0_38, %c0_39] : memref<256x36xbf16, #tpu.memory_space<vmem>>, vector<256x4xbf16>
    tpu.vector_store %arg11[%c0_38, %c0_39], %21 {strides = array<i32>} : memref<256x36xbf16, #tpu.memory_space<vmem>>, vector<256x4xbf16>,
    %c0_40 = arith.constant 0 : index
    %c1_41 = arith.constant 1 : index
    %c0_42 = arith.constant 0 : index
    %23 = vector.load %arg9[%c0_40, %c1_41, %c0_42] : memref<18x24x4xf32, #tpu.memory_space<vmem>>, vector<16x16x4xf32>
    %24 = vector.shape_cast %23 : vector<16x16x4xf32> to vector<256x4xf32>
    %25 = arith.truncf %24 : vector<256x4xf32> to vector<256x4xbf16>
    %c0_43 = arith.constant 0 : index
    %c4 = arith.constant 4 : index
    %26 = vector.load %arg11[%c0_43, %c4] : memref<256x36xbf16, #tpu.memory_space<vmem>>, vector<256x4xbf16>
    tpu.vector_store %arg11[%c0_43, %c4], %25 {strides = array<i32>} : memref<256x36xbf16, #tpu.memory_space<vmem>>, vector<256x4xbf16>,
    %c0_44 = arith.constant 0 : index
    %c2 = arith.constant 2 : index
    %c0_45 = arith.constant 0 : index
    %27 = vector.load %arg9[%c0_44, %c2, %c0_45] : memref<18x24x4xf32, #tpu.memory_space<vmem>>, vector<16x16x4xf32>
    %28 = vector.shape_cast %27 : vector<16x16x4xf32> to vector<256x4xf32>
    %29 = arith.truncf %28 : vector<256x4xf32> to vector<256x4xbf16>
    %c0_46 = arith.constant 0 : index
    %c8 = arith.constant 8 : index
    %30 = vector.load %arg11[%c0_46, %c8] : memref<256x36xbf16, #tpu.memory_space<vmem>>, vector<256x4xbf16>
    tpu.vector_store %arg11[%c0_46, %c8], %29 {strides = array<i32>} : memref<256x36xbf16, #tpu.memory_space<vmem>>, vector<256x4xbf16>,
    %c1_47 = arith.constant 1 : index
    %c0_48 = arith.constant 0 : index
    %c0_49 = arith.constant 0 : index
    %31 = vector.load %arg9[%c1_47, %c0_48, %c0_49] : memref<18x24x4xf32, #tpu.memory_space<vmem>>, vector<16x16x4xf32>
    %32 = vector.shape_cast %31 : vector<16x16x4xf32> to vector<256x4xf32>
    %33 = arith.truncf %32 : vector<256x4xf32> to vector<256x4xbf16>
    %c0_50 = arith.constant 0 : index
    %c12 = arith.constant 12 : index
    %34 = vector.load %arg11[%c0_50, %c12] : memref<256x36xbf16, #tpu.memory_space<vmem>>, vector<256x4xbf16>
    tpu.vector_store %arg11[%c0_50, %c12], %33 {strides = array<i32>} : memref<256x36xbf16, #tpu.memory_space<vmem>>, vector<256x4xbf16>,
    %c1_51 = arith.constant 1 : index
    %c1_52 = arith.constant 1 : index
    %c0_53 = arith.constant 0 : index
    %35 = vector.load %arg9[%c1_51, %c1_52, %c0_53] : memref<18x24x4xf32, #tpu.memory_space<vmem>>, vector<16x16x4xf32>
    %36 = vector.shape_cast %35 : vector<16x16x4xf32> to vector<256x4xf32>
    %37 = arith.truncf %36 : vector<256x4xf32> to vector<256x4xbf16>
    %c0_54 = arith.constant 0 : index
    %c16 = arith.constant 16 : index
    %38 = vector.load %arg11[%c0_54, %c16] : memref<256x36xbf16, #tpu.memory_space<vmem>>, vector<256x4xbf16>
    tpu.vector_store %arg11[%c0_54, %c16], %37 {strides = array<i32>} : memref<256x36xbf16, #tpu.memory_space<vmem>>, vector<256x4xbf16>,
    %c1_55 = arith.constant 1 : index
    %c2_56 = arith.constant 2 : index
    %c0_57 = arith.constant 0 : index
    %39 = vector.load %arg9[%c1_55, %c2_56, %c0_57] : memref<18x24x4xf32, #tpu.memory_space<vmem>>, vector<16x16x4xf32>
    %40 = vector.shape_cast %39 : vector<16x16x4xf32> to vector<256x4xf32>
    %41 = arith.truncf %40 : vector<256x4xf32> to vector<256x4xbf16>
    %c0_58 = arith.constant 0 : index
    %c20 = arith.constant 20 : index
    %42 = vector.load %arg11[%c0_58, %c20] : memref<256x36xbf16, #tpu.memory_space<vmem>>, vector<256x4xbf16>
    tpu.vector_store %arg11[%c0_58, %c20], %41 {strides = array<i32>} : memref<256x36xbf16, #tpu.memory_space<vmem>>, vector<256x4xbf16>,
    %c2_59 = arith.constant 2 : index
    %c0_60 = arith.constant 0 : index
    %c0_61 = arith.constant 0 : index
    %43 = vector.load %arg9[%c2_59, %c0_60, %c0_61] : memref<18x24x4xf32, #tpu.memory_space<vmem>>, vector<16x16x4xf32>
    %44 = vector.shape_cast %43 : vector<16x16x4xf32> to vector<256x4xf32>
    %45 = arith.truncf %44 : vector<256x4xf32> to vector<256x4xbf16>
    %c0_62 = arith.constant 0 : index
    %c24 = arith.constant 24 : index
    %46 = vector.load %arg11[%c0_62, %c24] : memref<256x36xbf16, #tpu.memory_space<vmem>>, vector<256x4xbf16>
    tpu.vector_store %arg11[%c0_62, %c24], %45 {strides = array<i32>} : memref<256x36xbf16, #tpu.memory_space<vmem>>, vector<256x4xbf16>,
    %c2_63 = arith.constant 2 : index
    %c1_64 = arith.constant 1 : index
    %c0_65 = arith.constant 0 : index
    %47 = vector.load %arg9[%c2_63, %c1_64, %c0_65] : memref<18x24x4xf32, #tpu.memory_space<vmem>>, vector<16x16x4xf32>
    %48 = vector.shape_cast %47 : vector<16x16x4xf32> to vector<256x4xf32>
    %49 = arith.truncf %48 : vector<256x4xf32> to vector<256x4xbf16>
    %c0_66 = arith.constant 0 : index
    %c28 = arith.constant 28 : index
    %50 = vector.load %arg11[%c0_66, %c28] : memref<256x36xbf16, #tpu.memory_space<vmem>>, vector<256x4xbf16>
    tpu.vector_store %arg11[%c0_66, %c28], %49 {strides = array<i32>} : memref<256x36xbf16, #tpu.memory_space<vmem>>, vector<256x4xbf16>,
    %c2_67 = arith.constant 2 : index
    %c2_68 = arith.constant 2 : index
    %c0_69 = arith.constant 0 : index
    %51 = vector.load %arg9[%c2_67, %c2_68, %c0_69] : memref<18x24x4xf32, #tpu.memory_space<vmem>>, vector<16x16x4xf32>
    %52 = vector.shape_cast %51 : vector<16x16x4xf32> to vector<256x4xf32>
    %53 = arith.truncf %52 : vector<256x4xf32> to vector<256x4xbf16>
    %c0_70 = arith.constant 0 : index
    %c32 = arith.constant 32 : index
    %54 = vector.load %arg11[%c0_70, %c32] : memref<256x36xbf16, #tpu.memory_space<vmem>>, vector<256x4xbf16>
    tpu.vector_store %arg11[%c0_70, %c32], %53 {strides = array<i32>} : memref<256x36xbf16, #tpu.memory_space<vmem>>, vector<256x4xbf16>,
    %c0_71 = arith.constant 0 : index
    %c0_72 = arith.constant 0 : index
    %55 = vector.load %arg11[%c0_71, %c0_72] : memref<256x36xbf16, #tpu.memory_space<vmem>>, vector<256x36xbf16>
    %c0_73 = arith.constant 0 : index
    %c0_74 = arith.constant 0 : index
    %56 = vector.load %arg2[%c0_73, %c0_74] : memref<36x32xbf16, #tpu.memory_space<vmem>>, vector<36x32xbf16>
    %cst_75 = arith.constant dense<0.000000e+00> : vector<256x32xf32>
    %57 = tpu.matmul %55, %56, %cst_75 {dimension_numbers = #tpu.dot_dimension_numbers<[1], [0], [0], [1], [0, 0, 1, 1], [], []>} : vector<256x36xbf16>, vector<36x32xbf16>, vector<256x32xf32> -> vector<256x32xf32>
    %c0_76 = arith.constant 0 : index
    %c0_77 = arith.constant 0 : index
    %58 = vector.load %arg3[%c0_76, %c0_77] : memref<1x32xf32, #tpu.memory_space<vmem>>, vector<1x32xf32>
    %59 = vector.broadcast %58 : vector<1x32xf32> to vector<256x32xf32>
    %60 = arith.addf %57, %59 : vector<256x32xf32>
    %cst_78 = arith.constant 0.000000e+00 : f32
    %61 = vector.broadcast %cst_78 : f32 to vector<256x32xf32>
    %62 = arith.maximumf %60, %61 : vector<256x32xf32>
    %63 = vector.shape_cast %62 : vector<256x32xf32> to vector<16x16x32xf32>
    %c1_79 = arith.constant 1 : index
    %c1_80 = arith.constant 1 : index
    %c0_81 = arith.constant 0 : index
    %64 = vector.load %arg10[%c1_79, %c1_80, %c0_81] : memref<18x24x32xf32, #tpu.memory_space<vmem>>, vector<16x16x32xf32>
    tpu.vector_store %arg10[%c1_79, %c1_80, %c0_81], %63 {strides = array<i32>} : memref<18x24x32xf32, #tpu.memory_space<vmem>>, vector<16x16x32xf32>,
    %c0_82 = arith.constant 0 : index
    %c0_83 = arith.constant 0 : index
    %c0_84 = arith.constant 0 : index
    %65 = vector.load %arg10[%c0_82, %c0_83, %c0_84] : memref<18x24x32xf32, #tpu.memory_space<vmem>>, vector<16x16x32xf32>
    %66 = vector.shape_cast %65 : vector<16x16x32xf32> to vector<256x32xf32>
    %67 = arith.truncf %66 : vector<256x32xf32> to vector<256x32xbf16>
    %c0_85 = arith.constant 0 : index
    %c0_86 = arith.constant 0 : index
    %68 = vector.load %arg12[%c0_85, %c0_86] : memref<256x288xbf16, #tpu.memory_space<vmem>>, vector<256x32xbf16>
    tpu.vector_store %arg12[%c0_85, %c0_86], %67 {strides = array<i32>} : memref<256x288xbf16, #tpu.memory_space<vmem>>, vector<256x32xbf16>,
    %c0_87 = arith.constant 0 : index
    %c1_88 = arith.constant 1 : index
    %c0_89 = arith.constant 0 : index
    %69 = vector.load %arg10[%c0_87, %c1_88, %c0_89] : memref<18x24x32xf32, #tpu.memory_space<vmem>>, vector<16x16x32xf32>
    %70 = vector.shape_cast %69 : vector<16x16x32xf32> to vector<256x32xf32>
    %71 = arith.truncf %70 : vector<256x32xf32> to vector<256x32xbf16>
    %c0_90 = arith.constant 0 : index
    %c32_91 = arith.constant 32 : index
    %72 = vector.load %arg12[%c0_90, %c32_91] : memref<256x288xbf16, #tpu.memory_space<vmem>>, vector<256x32xbf16>
    tpu.vector_store %arg12[%c0_90, %c32_91], %71 {strides = array<i32>} : memref<256x288xbf16, #tpu.memory_space<vmem>>, vector<256x32xbf16>,
    %c0_92 = arith.constant 0 : index
    %c2_93 = arith.constant 2 : index
    %c0_94 = arith.constant 0 : index
    %73 = vector.load %arg10[%c0_92, %c2_93, %c0_94] : memref<18x24x32xf32, #tpu.memory_space<vmem>>, vector<16x16x32xf32>
    %74 = vector.shape_cast %73 : vector<16x16x32xf32> to vector<256x32xf32>
    %75 = arith.truncf %74 : vector<256x32xf32> to vector<256x32xbf16>
    %c0_95 = arith.constant 0 : index
    %c64 = arith.constant 64 : index
    %76 = vector.load %arg12[%c0_95, %c64] : memref<256x288xbf16, #tpu.memory_space<vmem>>, vector<256x32xbf16>
    tpu.vector_store %arg12[%c0_95, %c64], %75 {strides = array<i32>} : memref<256x288xbf16, #tpu.memory_space<vmem>>, vector<256x32xbf16>,
    %c1_96 = arith.constant 1 : index
    %c0_97 = arith.constant 0 : index
    %c0_98 = arith.constant 0 : index
    %77 = vector.load %arg10[%c1_96, %c0_97, %c0_98] : memref<18x24x32xf32, #tpu.memory_space<vmem>>, vector<16x16x32xf32>
    %78 = vector.shape_cast %77 : vector<16x16x32xf32> to vector<256x32xf32>
    %79 = arith.truncf %78 : vector<256x32xf32> to vector<256x32xbf16>
    %c0_99 = arith.constant 0 : index
    %c96 = arith.constant 96 : index
    %80 = vector.load %arg12[%c0_99, %c96] : memref<256x288xbf16, #tpu.memory_space<vmem>>, vector<256x32xbf16>
    tpu.vector_store %arg12[%c0_99, %c96], %79 {strides = array<i32>} : memref<256x288xbf16, #tpu.memory_space<vmem>>, vector<256x32xbf16>,
    %c1_100 = arith.constant 1 : index
    %c1_101 = arith.constant 1 : index
    %c0_102 = arith.constant 0 : index
    %81 = vector.load %arg10[%c1_100, %c1_101, %c0_102] : memref<18x24x32xf32, #tpu.memory_space<vmem>>, vector<16x16x32xf32>
    %82 = vector.shape_cast %81 : vector<16x16x32xf32> to vector<256x32xf32>
    %83 = arith.truncf %82 : vector<256x32xf32> to vector<256x32xbf16>
    %c0_103 = arith.constant 0 : index
    %c128 = arith.constant 128 : index
    %84 = vector.load %arg12[%c0_103, %c128] : memref<256x288xbf16, #tpu.memory_space<vmem>>, vector<256x32xbf16>
    tpu.vector_store %arg12[%c0_103, %c128], %83 {strides = array<i32>} : memref<256x288xbf16, #tpu.memory_space<vmem>>, vector<256x32xbf16>,
    %c1_104 = arith.constant 1 : index
    %c2_105 = arith.constant 2 : index
    %c0_106 = arith.constant 0 : index
    %85 = vector.load %arg10[%c1_104, %c2_105, %c0_106] : memref<18x24x32xf32, #tpu.memory_space<vmem>>, vector<16x16x32xf32>
    %86 = vector.shape_cast %85 : vector<16x16x32xf32> to vector<256x32xf32>
    %87 = arith.truncf %86 : vector<256x32xf32> to vector<256x32xbf16>
    %c0_107 = arith.constant 0 : index
    %c160 = arith.constant 160 : index
    %88 = vector.load %arg12[%c0_107, %c160] : memref<256x288xbf16, #tpu.memory_space<vmem>>, vector<256x32xbf16>
    tpu.vector_store %arg12[%c0_107, %c160], %87 {strides = array<i32>} : memref<256x288xbf16, #tpu.memory_space<vmem>>, vector<256x32xbf16>,
    %c2_108 = arith.constant 2 : index
    %c0_109 = arith.constant 0 : index
    %c0_110 = arith.constant 0 : index
    %89 = vector.load %arg10[%c2_108, %c0_109, %c0_110] : memref<18x24x32xf32, #tpu.memory_space<vmem>>, vector<16x16x32xf32>
    %90 = vector.shape_cast %89 : vector<16x16x32xf32> to vector<256x32xf32>
    %91 = arith.truncf %90 : vector<256x32xf32> to vector<256x32xbf16>
    %c0_111 = arith.constant 0 : index
    %c192 = arith.constant 192 : index
    %92 = vector.load %arg12[%c0_111, %c192] : memref<256x288xbf16, #tpu.memory_space<vmem>>, vector<256x32xbf16>
    tpu.vector_store %arg12[%c0_111, %c192], %91 {strides = array<i32>} : memref<256x288xbf16, #tpu.memory_space<vmem>>, vector<256x32xbf16>,
    %c2_112 = arith.constant 2 : index
    %c1_113 = arith.constant 1 : index
    %c0_114 = arith.constant 0 : index
    %93 = vector.load %arg10[%c2_112, %c1_113, %c0_114] : memref<18x24x32xf32, #tpu.memory_space<vmem>>, vector<16x16x32xf32>
    %94 = vector.shape_cast %93 : vector<16x16x32xf32> to vector<256x32xf32>
    %95 = arith.truncf %94 : vector<256x32xf32> to vector<256x32xbf16>
    %c0_115 = arith.constant 0 : index
    %c224 = arith.constant 224 : index
    %96 = vector.load %arg12[%c0_115, %c224] : memref<256x288xbf16, #tpu.memory_space<vmem>>, vector<256x32xbf16>
    tpu.vector_store %arg12[%c0_115, %c224], %95 {strides = array<i32>} : memref<256x288xbf16, #tpu.memory_space<vmem>>, vector<256x32xbf16>,
    %c2_116 = arith.constant 2 : index
    %c2_117 = arith.constant 2 : index
    %c0_118 = arith.constant 0 : index
    %97 = vector.load %arg10[%c2_116, %c2_117, %c0_118] : memref<18x24x32xf32, #tpu.memory_space<vmem>>, vector<16x16x32xf32>
    %98 = vector.shape_cast %97 : vector<16x16x32xf32> to vector<256x32xf32>
    %99 = arith.truncf %98 : vector<256x32xf32> to vector<256x32xbf16>
    %c0_119 = arith.constant 0 : index
    %c256 = arith.constant 256 : index
    %100 = vector.load %arg12[%c0_119, %c256] : memref<256x288xbf16, #tpu.memory_space<vmem>>, vector<256x32xbf16>
    tpu.vector_store %arg12[%c0_119, %c256], %99 {strides = array<i32>} : memref<256x288xbf16, #tpu.memory_space<vmem>>, vector<256x32xbf16>,
    %c0_120 = arith.constant 0 : index
    %c0_121 = arith.constant 0 : index
    %101 = vector.load %arg12[%c0_120, %c0_121] : memref<256x288xbf16, #tpu.memory_space<vmem>>, vector<256x288xbf16>
    %c0_122 = arith.constant 0 : index
    %c0_123 = arith.constant 0 : index
    %102 = vector.load %arg4[%c0_122, %c0_123] : memref<288x32xbf16, #tpu.memory_space<vmem>>, vector<288x32xbf16>
    %cst_124 = arith.constant dense<0.000000e+00> : vector<256x32xf32>
    %103 = tpu.matmul %101, %102, %cst_124 {dimension_numbers = #tpu.dot_dimension_numbers<[1], [0], [0], [1], [0, 0, 1, 1], [], []>} : vector<256x288xbf16>, vector<288x32xbf16>, vector<256x32xf32> -> vector<256x32xf32>
    %c0_125 = arith.constant 0 : index
    %c0_126 = arith.constant 0 : index
    %104 = vector.load %arg5[%c0_125, %c0_126] : memref<1x32xf32, #tpu.memory_space<vmem>>, vector<1x32xf32>
    %105 = vector.broadcast %104 : vector<1x32xf32> to vector<256x32xf32>
    %106 = arith.addf %103, %105 : vector<256x32xf32>
    %cst_127 = arith.constant 0.000000e+00 : f32
    %107 = vector.broadcast %cst_127 : f32 to vector<256x32xf32>
    %108 = arith.maximumf %106, %107 : vector<256x32xf32>
    %c0_128 = arith.constant 0 : index
    %c16_129 = arith.constant 16 : index
    %109 = vector.load %arg11[%c0_128, %c16_129] : memref<256x36xbf16, #tpu.memory_space<vmem>>, vector<256x4xbf16>
    %c0_130 = arith.constant 0 : index
    %c0_131 = arith.constant 0 : index
    %110 = vector.load %arg6[%c0_130, %c0_131] : memref<4x32xbf16, #tpu.memory_space<vmem>>, vector<4x32xbf16>
    %cst_132 = arith.constant dense<0.000000e+00> : vector<256x32xf32>
    %111 = tpu.matmul %109, %110, %cst_132 {dimension_numbers = #tpu.dot_dimension_numbers<[1], [0], [0], [1], [0, 0, 1, 1], [], []>} : vector<256x4xbf16>, vector<4x32xbf16>, vector<256x32xf32> -> vector<256x32xf32>
    %c0_133 = arith.constant 0 : index
    %c0_134 = arith.constant 0 : index
    %112 = vector.load %arg7[%c0_133, %c0_134] : memref<1x32xf32, #tpu.memory_space<vmem>>, vector<1x32xf32>
    %113 = vector.broadcast %112 : vector<1x32xf32> to vector<256x32xf32>
    %114 = arith.addf %111, %113 : vector<256x32xf32>
    %cst_135 = arith.constant 0.000000e+00 : f32
    %115 = vector.broadcast %cst_135 : f32 to vector<256x32xf32>
    %116 = arith.maximumf %114, %115 : vector<256x32xf32>
    %117 = arith.addf %108, %116 : vector<256x32xf32>
    %c0_136 = arith.constant 0 : index
    %c0_137 = arith.constant 0 : index
    %c0_138 = arith.constant 0 : index
    %118 = vector.load %arg8[%c0_136, %c0_137, %c0_138] : memref<1x256x32xf32, #tpu.memory_space<vmem>>, vector<1x256x32xf32>
    %119 = vector.shape_cast %118 : vector<1x256x32xf32> to vector<256x32xf32>
    %120 = vector.shape_cast %117 : vector<256x32xf32> to vector<1x256x32xf32>
    tpu.vector_store %arg8[%c0_136, %c0_137, %c0_138], %120 {strides = array<i32>} : memref<1x256x32xf32, #tpu.memory_space<vmem>>, vector<1x256x32xf32>,
    return
  }
  func.func @transform_0(%arg0: i32) -> (i32, i32, i32, i32) {
    %c0_i32 = arith.constant 0 : i32
    %c0_i32_0 = arith.constant 0 : i32
    %c0_i32_1 = arith.constant 0 : i32
    %c0_i32_2 = arith.constant 0 : i32
    return %arg0, %c0_i32, %c0_i32_0, %c0_i32_1 : i32, i32, i32, i32
  }
  func.func @transform_1(%arg0: i32) -> (i32, i32) {
    %c0_i32 = arith.constant 0 : i32
    %c0_i32_0 = arith.constant 0 : i32
    %c0_i32_1 = arith.constant 0 : i32
    return %c0_i32, %c0_i32_0 : i32, i32
  }
  func.func @transform_2(%arg0: i32) -> (i32, i32) {
    %c0_i32 = arith.constant 0 : i32
    %c0_i32_0 = arith.constant 0 : i32
    %c0_i32_1 = arith.constant 0 : i32
    return %c0_i32, %c0_i32_0 : i32, i32
  }
  func.func @transform_3(%arg0: i32) -> (i32, i32) {
    %c0_i32 = arith.constant 0 : i32
    %c0_i32_0 = arith.constant 0 : i32
    %c0_i32_1 = arith.constant 0 : i32
    return %c0_i32, %c0_i32_0 : i32, i32
  }
  func.func @transform_4(%arg0: i32) -> (i32, i32) {
    %c0_i32 = arith.constant 0 : i32
    %c0_i32_0 = arith.constant 0 : i32
    %c0_i32_1 = arith.constant 0 : i32
    return %c0_i32, %c0_i32_0 : i32, i32
  }
  func.func @transform_5(%arg0: i32) -> (i32, i32) {
    %c0_i32 = arith.constant 0 : i32
    %c0_i32_0 = arith.constant 0 : i32
    %c0_i32_1 = arith.constant 0 : i32
    return %c0_i32, %c0_i32_0 : i32, i32
  }
  func.func @transform_6(%arg0: i32) -> (i32, i32) {
    %c0_i32 = arith.constant 0 : i32
    %c0_i32_0 = arith.constant 0 : i32
    %c0_i32_1 = arith.constant 0 : i32
    return %c0_i32, %c0_i32_0 : i32, i32
  }
  func.func @transform_7(%arg0: i32) -> (i32, i32, i32) {
    %c0_i32 = arith.constant 0 : i32
    %c0_i32_0 = arith.constant 0 : i32
    %c0_i32_1 = arith.constant 0 : i32
    return %arg0, %c0_i32, %c0_i32_0 : i32, i32, i32
  }
}

</mosaic_0001>

<bundles_post_ra>
// kernel: res_unit_2l_forward.1
= control target key start
LH: loop header
LB: loop body
LE: loop exit
PB: predicated region body
PF: predicated region fallthrough
CT: control target
= control target key end

     0   :  { %12 = vsyncpa [#allocation7], 0  ;;  %s10945_s0 = inlined_call_operand.vmem [shape: f32[2,16,16,4], index: 0, kind: input, shape index: {}]   ;;  %s10946_s1 = inlined_call_operand.vmem [shape: bf16[36,32], index: 1, kind: input, shape index: {}]   ;;  %s10947_s2 = inlined_call_operand.vmem [shape: f32[1,32], index: 2, kind: input, shape index: {}]   ;;  %s10948_s3 = inlined_call_operand.vmem [shape: bf16[288,32], index: 3, kind: input, shape index: {}]   ;;  %s10949_s4 = inlined_call_operand.vmem [shape: f32[1,32], index: 4, kind: input, shape index: {}]   ;;  %s10950_s5 = inlined_call_operand.vmem [shape: bf16[4,32], index: 5, kind: input, shape index: {}]   ;;  %s10951_s6 = inlined_call_operand.vmem [shape: f32[1,32], index: 6, kind: input, shape index: {}]   ;;  %s10952_s7 = inlined_call_operand.hbm [shape: f32[2,256,32], index: 7, kind: output, shape index: {}]  }
   0x1   :  { %14 = vsyncpa [#allocation7 + $0x1], 0  ;;  %s8476_s24 = smov 0   ;;  %s8478_s25 = smov 0  }
   0x2   :  { %s8480_s26 = smov 0   ;;  %s8482_s27 = smov 0  }
   0x3 LB: > { %s8497_s28 = sadd.s32 4294967295, %s8420_s27   ;;  %s6603_s29 = sadd.s32 4294967294, %s8420_s27   ;;  %s8420_s27 = sphi %s8482_s27, %s10958_s27   ;;  %s8416_s26 = sphi %s8480_s26, %s10957_s26   ;;  %s8412_s25 = sphi %s8478_s25, %s10956_s25   ;;  %s8408_s24 = sphi %s8476_s24, %s10955_s24  }
   0x4   : > { %s8501_s30 = sadd.s32 1, %s8420_s27   ;;  %s179_s8 = sadd.s32 1, %s8416_s26 }
   0x5   : > { %s176_s9 = ssub.s32 %s8420_s27, %s8501_s30  ;;  %p189_p0 = scmp.ne.s32.totalorder %s8416_s26, %s8412_s25 }
   0x6   : > { %p177_p1 = scmp.eq.s32.totalorder %s176_s9, 0  ;;  %p190_p2 = scmp.eq.s32.totalorder %s8497_s28, 1 }
   0x7   : > { %p195_p3 = scmp.ne.s32.totalorder %s8412_s25, %s8408_s24  ;;  %p196_p4 = scmp.eq.s32.totalorder %s6603_s29, 1 }
   0x8   : > { %s8512_s10 = scalar_select %p177_p1, %s8416_s26, %s179_s8  }
   0x9   : > { %p8514_p5 = por %p190_p2, %p189_p0  ;;  %p8518_p6 = por %p196_p4, %p195_p3 }
   0xa   : > { %p6606_p7 = scmp.ge.s32.totalorder %s8420_s27, 1  ;;  %p240_p8 = scmp.lt.s32.totalorder %s8420_s27, 3 }
   0xc   : > { %p241_p9 = pnand %p6606_p7, %p240_p8 }
   0xd   : > { %p272_p10 = scmp.lt.s32.totalorder (!%p241_p9), %s8497_s28, 1  ;;  %s8423_s18 = smov (!%p241_p9), 4  }
   0xe   : > { %244 = sbr.rel (%p241_p9) target bundleno = 1425 (0x591), region = 48  ;;  %s8424_s19 = smov (!%p241_p9), 8  }
   0xf   : > { %s8425_s20 = smov (!%p241_p9), 12   ;;  %s8426_s21 = smov (!%p241_p9), 16  }
  0x10   : > { %s8427_s22 = smov (!%p241_p9), 20   ;;  %s8428_s23 = smov (!%p241_p9), 24  }
  0x11   : > { %s8429_s9 = smov (!%p241_p9), 28   ;;  %s8432_s16 = smov (!%p241_p9), 96  }
  0x12   : > { %s269_s15 = sand.u32 (!%p241_p9), 1, %s8412_s25  }
  0x13   : > { %vm278_vm0 = vcmask 31744   ;;  %vm287_vm1 = vcmask 24576   ;;  %v8422_v0 = vmov 0.0   ;;  %s273_s13 = scalar_select %p272_p10, %s8497_s28, 1  ;;  %vm586_vm2 = vcmask 27648  }
  0x14   : > { %279 = vst.msk [vmem:[#allocation2] sm:$0xff] %vm278_vm0, %v8422_v0  ;;  %280 = vst.msk [vmem:[#allocation2 + $0x8] sm:$0xff] %vm278_vm0, %v8422_v0  ;;  %vm843_vm3 = vcmask 60448   ;;  %vm1100_vm4 = vcmask 93248   ;;  %vm1357_vm5 = vcmask 126048   ;;  %vm2864_vm6 = vcmask 1041408  }
  0x15   : > { %281 = vst.msk [vmem:[#allocation2 + $0x10] sm:$0xff] %vm278_vm0, %v8422_v0  ;;  %283 = vst.msk [vmem:[#allocation2 + $0x198] sm:$0xff] %vm278_vm0, %v8422_v0  ;;  %s7343_s14 = sshll.u32 %s273_s13, 8  ;;  %vm1614_vm7 = vcmask 158848   ;;  %vm1871_vm8 = vcmask 191648   ;;  %vm2129_vm9 = vcmask 224448  }
  0x16   : > { %284 = vst.msk [vmem:[#allocation2 + $0x1a0] sm:$0xff] %vm278_vm0, %v8422_v0  ;;  %285 = vst.msk [vmem:[#allocation2 + $0x1a8] sm:$0xff] %vm278_vm0, %v8422_v0  ;;  %s8607_s17 = scalar_lea.vmem %s10945_s0, %s7343_s14  ;;  %vm2386_vm10 = vcmask 257248   ;;  %vm2643_vm11 = vcmask 290048   ;;  %vm2815_vm12 = vcmask 293888   ;;  %vm320_vm13 = vcmask 261120  }
  0x17   : > { %304 = vst.msk [vmem:[#allocation2 + $0x29] sm:$0x1] %vm287_vm1, %v8422_v0  ;;  %288 = vst.msk [vmem:[#allocation2 + $0x18] sm:$0x1] %vm287_vm1, %v8422_v0  ;;  %v362_v1 = vld [vmem:[%s8607_s17] sm:$0xff]  ;;  %v364_v2 = vld [vmem:[%s8607_s17 + $0x10] sm:$0xff] }
  0x18   : > { %289 = vst.msk [vmem:[#allocation2 + $0x30] sm:$0x1] %vm287_vm1, %v8422_v0  ;;  %290 = vst.msk [vmem:[#allocation2 + $0x48] sm:$0x1] %vm287_vm1, %v8422_v0  ;;  %v363_v3 = vld [vmem:[%s8607_s17 + $0x8] sm:$0xff]  ;;  %v366_v4 = vld [vmem:[%s8607_s17 + $0x20] sm:$0xff] }
  0x19   : > { %291 = vst.msk [vmem:[#allocation2 + $0x60] sm:$0x1] %vm287_vm1, %v8422_v0  ;;  %292 = vst.msk [vmem:[#allocation2 + $0x78] sm:$0x1] %vm287_vm1, %v8422_v0  ;;  %v365_v5 = vld [vmem:[%s8607_s17 + $0x18] sm:$0xff]  ;;  %v368_v6 = vld [vmem:[%s8607_s17 + $0x30] sm:$0xff] }
  0x1a   : > { %293 = vst.msk [vmem:[#allocation2 + $0x90] sm:$0x1] %vm287_vm1, %v8422_v0  ;;  %294 = vst.msk [vmem:[#allocation2 + $0xa8] sm:$0x1] %vm287_vm1, %v8422_v0  ;;  %v367_v9 = vld [vmem:[%s8607_s17 + $0x28] sm:$0xff]  ;;  %v370_v11 = vld [vmem:[%s8607_s17 + $0x40] sm:$0xff] }
  0x1b   : > { %295 = vst.msk [vmem:[#allocation2 + $0xc0] sm:$0x1] %vm287_vm1, %v8422_v0  ;;  %296 = vst.msk [vmem:[#allocation2 + $0xd8] sm:$0x1] %vm287_vm1, %v8422_v0  ;;  %v619_v7 = vld [vmem:[#allocation2 + $0x1] sm:$0xff]  ;;  %v369_v12 = vld [vmem:[%s8607_s17 + $0x38] sm:$0xff] }
  0x1c   : > { %297 = vst.msk [vmem:[#allocation2 + $0xf0] sm:$0x1] %vm287_vm1, %v8422_v0  ;;  %298 = vst.msk [vmem:[#allocation2 + $0x108] sm:$0x1] %vm287_vm1, %v8422_v0  ;;  %v620_v8 = vld [vmem:[#allocation2 + $0x9] sm:$0xff]  ;;  %v7376_v10 = vpack.c.bf16 %v619_v7, %v619_v7  ;;  %v374_v15 = vld [vmem:[%s8607_s17 + $0x60] sm:$0xff] }
  0x1d   : > { %299 = vst.msk [vmem:[#allocation2 + $0x120] sm:$0x1] %vm287_vm1, %v8422_v0  ;;  %300 = vst.msk [vmem:[#allocation2 + $0x138] sm:$0x1] %vm287_vm1, %v8422_v0  ;;  %v372_v13 = vld [vmem:[%s8607_s17 + $0x50] sm:$0xff]  ;;  %v371_v14 = vld [vmem:[%s8607_s17 + $0x48] sm:$0xff]  ;;  %v7377_v17 = vpack.c.bf16 %v620_v8, %v620_v8 }
  0x1e   : > { %301 = vst.msk [vmem:[#allocation2 + $0x150] sm:$0x1] %vm287_vm1, %v8422_v0  ;;  %302 = vst.msk [vmem:[#allocation2 + $0x168] sm:$0x1] %vm287_vm1, %v8422_v0  ;;  %v373_v16 = vld [vmem:[%s8607_s17 + $0x58] sm:$0xff]  ;;  %747 = vrot.lane.b32.xlu0 %v7376_v10, %s8423_s18  ;;  %v376_v18 = vld [vmem:[%s8607_s17 + $0x70] sm:$0xff] }
  0x1f   : > { %303 = vst.msk [vmem:[#allocation2 + $0x180] sm:$0x1] %vm287_vm1, %v8422_v0  ;;  %305 = vst.msk [vmem:[#allocation2 + $0x41] sm:$0x1] %vm287_vm1, %v8422_v0  ;;  %v375_v19 = vld [vmem:[%s8607_s17 + $0x68] sm:$0xff]  ;;  %v378_v20 = vld [vmem:[%s8607_s17 + $0x80] sm:$0xff] }
  0x20   : > { %306 = vst.msk [vmem:[#allocation2 + $0x59] sm:$0x1] %vm287_vm1, %v8422_v0  ;;  %307 = vst.msk [vmem:[#allocation2 + $0x71] sm:$0x1] %vm287_vm1, %v8422_v0  ;;  %v377_v21 = vld [vmem:[%s8607_s17 + $0x78] sm:$0xff]  ;;  %v380_v22 = vld [vmem:[%s8607_s17 + $0x90] sm:$0xff] }
  0x21   : > { %308 = vst.msk [vmem:[#allocation2 + $0x89] sm:$0x1] %vm287_vm1, %v8422_v0  ;;  %309 = vst.msk [vmem:[#allocation2 + $0xa1] sm:$0x1] %vm287_vm1, %v8422_v0  ;;  %v379_v23 = vld [vmem:[%s8607_s17 + $0x88] sm:$0xff]  ;;  %v382_v24 = vld [vmem:[%s8607_s17 + $0xa0] sm:$0xff] }
  0x22   : > { %310 = vst.msk [vmem:[#allocation2 + $0xb9] sm:$0x1] %vm287_vm1, %v8422_v0  ;;  %311 = vst.msk [vmem:[#allocation2 + $0xd1] sm:$0x1] %vm287_vm1, %v8422_v0  ;;  %v381_v25 = vld [vmem:[%s8607_s17 + $0x98] sm:$0xff]  ;;  %v384_v26 = vld [vmem:[%s8607_s17 + $0xb0] sm:$0xff]  ;;  %749 = vrot.lane.b32.xlu0 %v7377_v17, %s8423_s18 }
  0x23   : > { %312 = vst.msk [vmem:[#allocation2 + $0xe9] sm:$0x1] %vm287_vm1, %v8422_v0  ;;  %313 = vst.msk [vmem:[#allocation2 + $0x101] sm:$0x1] %vm287_vm1, %v8422_v0  ;;  %v383_v33 = vld [vmem:[%s8607_s17 + $0xa8] sm:$0xff]  ;;  %v386_v34 = vld [vmem:[%s8607_s17 + $0xc0] sm:$0xff] }
  0x24   : > { %314 = vst.msk [vmem:[#allocation2 + $0x119] sm:$0x1] %vm287_vm1, %v8422_v0  ;;  %315 = vst.msk [vmem:[#allocation2 + $0x131] sm:$0x1] %vm287_vm1, %v8422_v0  ;;  %v385_v41 = vld [vmem:[%s8607_s17 + $0xb8] sm:$0xff]  ;;  %v388_v42 = vld [vmem:[%s8607_s17 + $0xd0] sm:$0xff] }
  0x25   : > { %316 = vst.msk [vmem:[#allocation2 + $0x149] sm:$0x1] %vm287_vm1, %v8422_v0  ;;  %317 = vst.msk [vmem:[#allocation2 + $0x161] sm:$0x1] %vm287_vm1, %v8422_v0  ;;  %v387_v43 = vld [vmem:[%s8607_s17 + $0xc8] sm:$0xff]  ;;  %v390_v45 = vld [vmem:[%s8607_s17 + $0xe0] sm:$0xff] }
  0x26   : > { %318 = vst.msk [vmem:[#allocation2 + $0x179] sm:$0x1] %vm287_vm1, %v8422_v0  ;;  %319 = vst.msk [vmem:[#allocation2 + $0x191] sm:$0x1] %vm287_vm1, %v8422_v0  ;;  %v389_v46 = vld [vmem:[%s8607_s17 + $0xd8] sm:$0xff]  ;;  %v391_v48 = vld [vmem:[%s8607_s17 + $0xe8] sm:$0xff] }
  0x27   : > { %394 = vst.msk [vmem:[#allocation2 + $0x19] sm:$0xff] %vm278_vm0, %v362_v1  ;;  %396 = vst.msk [vmem:[#allocation2 + $0x31] sm:$0xff] %vm278_vm0, %v364_v2  ;;  %v426_v60 = vld [vmem:[#allocation2] sm:$0xff]  ;;  %v427_v63 = vld [vmem:[#allocation2 + $0x8] sm:$0xff]  ;;  %vm329_vm14 = vcmask 253952   ;;  %vm3253_vm15 = vcmask 257024  }
  0x28   : > { %395 = vst.msk [vmem:[#allocation2 + $0x21] sm:$0xff] %vm278_vm0, %v363_v3  ;;  %398 = vst.msk [vmem:[#allocation2 + $0x49] sm:$0xff] %vm278_vm0, %v366_v4  ;;  %v7344_v62 = vpack.c.bf16 %v426_v60, %v426_v60  ;;  %v7345_v3 = vpack.c.bf16 %v427_v63, %v427_v63  ;;  %vm3510_vm1 = vcmask 519424   ;;  %s8433_s14 = smov 112  }
  0x29   : > { %397 = vst.msk [vmem:[#allocation2 + $0x39] sm:$0xff] %vm278_vm0, %v365_v5  ;;  %400 = vst.msk [vmem:[#allocation2 + $0x61] sm:$0xff] %vm278_vm0, %v368_v6 }
  0x2a   : > { %399 = vst.msk [vmem:[#allocation2 + $0x51] sm:$0xff] %vm278_vm0, %v367_v9  ;;  %402 = vst.msk [vmem:[#allocation2 + $0x79] sm:$0xff] %vm278_vm0, %v370_v11 }
  0x2b   : > { %401 = vst.msk [vmem:[#allocation2 + $0x69] sm:$0xff] %vm278_vm0, %v369_v12  ;;  %404 = vst.msk [vmem:[#allocation2 + $0x91] sm:$0xff] %vm278_vm0, %v372_v13 }
  0x2c   : > { %403 = vst.msk [vmem:[#allocation2 + $0x81] sm:$0xff] %vm278_vm0, %v371_v14  ;;  %406 = vst.msk [vmem:[#allocation2 + $0xa9] sm:$0xff] %vm278_vm0, %v374_v15 }
  0x2d   : > { %405 = vst.msk [vmem:[#allocation2 + $0x99] sm:$0xff] %vm278_vm0, %v373_v16  ;;  %408 = vst.msk [vmem:[#allocation2 + $0xc1] sm:$0xff] %vm278_vm0, %v376_v18 }
  0x2e   : > { %407 = vst.msk [vmem:[#allocation2 + $0xb1] sm:$0xff] %vm278_vm0, %v375_v19  ;;  %410 = vst.msk [vmem:[#allocation2 + $0xd9] sm:$0xff] %vm278_vm0, %v378_v20  ;;  %v621_v27 = vld [vmem:[#allocation2 + $0x19] sm:$0xff]  ;;  %v623_v28 = vld [vmem:[#allocation2 + $0x31] sm:$0xff] }
  0x2f   : > { %409 = vst.msk [vmem:[#allocation2 + $0xc9] sm:$0xff] %vm278_vm0, %v377_v21  ;;  %412 = vst.msk [vmem:[#allocation2 + $0xf1] sm:$0xff] %vm278_vm0, %v380_v22  ;;  %v622_v29 = vld [vmem:[#allocation2 + $0x21] sm:$0xff]  ;;  %v7378_v30 = vpack.c.bf16 %v621_v27, %v621_v27  ;;  %v7380_v31 = vpack.c.bf16 %v623_v28, %v623_v28  ;;  %v625_v32 = vld [vmem:[#allocation2 + $0x49] sm:$0xff] }
  0x30   : > { %411 = vst.msk [vmem:[#allocation2 + $0xe1] sm:$0xff] %vm278_vm0, %v379_v23  ;;  %414 = vst.msk [vmem:[#allocation2 + $0x109] sm:$0xff] %vm278_vm0, %v382_v24  ;;  %v7379_v35 = vpack.c.bf16 %v622_v29, %v622_v29  ;;  %v624_v36 = vld [vmem:[#allocation2 + $0x39] sm:$0xff]  ;;  %v7382_v37 = vpack.c.bf16 %v625_v32, %v625_v32  ;;  %v627_v38 = vld [vmem:[#allocation2 + $0x61] sm:$0xff] }
  0x31   : > { %413 = vst.msk [vmem:[#allocation2 + $0xf9] sm:$0xff] %vm278_vm0, %v381_v25  ;;  %416 = vst.msk [vmem:[#allocation2 + $0x121] sm:$0xff] %vm278_vm0, %v384_v26  ;;  %751 = vrot.lane.b32.xlu1 %v7378_v30, %s8423_s18  ;;  %755 = vrot.lane.b32.xlu0 %v7380_v31, %s8423_s18  ;;  %v7381_v39 = vpack.c.bf16 %v624_v36, %v624_v36  ;;  %v626_v40 = vld [vmem:[#allocation2 + $0x51] sm:$0xff]  ;;  %v7384_v44 = vpack.c.bf16 %v627_v38, %v627_v38  ;;  %v629_v47 = vld [vmem:[#allocation2 + $0x79] sm:$0xff] }
  0x32   : > { %415 = vst.msk [vmem:[#allocation2 + $0x111] sm:$0xff] %vm278_vm0, %v383_v33  ;;  %418 = vst.msk [vmem:[#allocation2 + $0x139] sm:$0xff] %vm278_vm0, %v386_v34  ;;  %v7383_v49 = vpack.c.bf16 %v626_v40, %v626_v40  ;;  %v628_v50 = vld [vmem:[#allocation2 + $0x69] sm:$0xff]  ;;  %v7386_v51 = vpack.c.bf16 %v629_v47, %v629_v47  ;;  %v631_v52 = vld [vmem:[#allocation2 + $0x91] sm:$0xff] }
  0x33   : > { %417 = vst.msk [vmem:[#allocation2 + $0x129] sm:$0xff] %vm278_vm0, %v385_v41  ;;  %420 = vst.msk [vmem:[#allocation2 + $0x151] sm:$0xff] %vm278_vm0, %v388_v42  ;;  %v7385_v53 = vpack.c.bf16 %v628_v50, %v628_v50  ;;  %v630_v54 = vld [vmem:[#allocation2 + $0x81] sm:$0xff]  ;;  %v7388_v55 = vpack.c.bf16 %v631_v52, %v631_v52  ;;  %v633_v56 = vld [vmem:[#allocation2 + $0xa9] sm:$0xff] }
  0x34   : > { %419 = vst.msk [vmem:[#allocation2 + $0x141] sm:$0xff] %vm278_vm0, %v387_v43  ;;  %422 = vst.msk [vmem:[#allocation2 + $0x169] sm:$0xff] %vm278_vm0, %v390_v45  ;;  %v7387_v57 = vpack.c.bf16 %v630_v54, %v630_v54  ;;  %v632_v58 = vld [vmem:[#allocation2 + $0x99] sm:$0xff]  ;;  %v7390_v59 = vpack.c.bf16 %v633_v56, %v633_v56  ;;  %v635_v61 = vld [vmem:[#allocation2 + $0xc1] sm:$0xff] }
  0x35   : > { %753 = vrot.lane.b32.xlu1 %v7379_v35, %s8423_s18  ;;  %759 = vrot.lane.b32.xlu0 %v7382_v37, %s8423_s18  ;;  %421 = vst.msk [vmem:[#allocation2 + $0x159] sm:$0xff] %vm278_vm0, %v389_v46  ;;  %423 = vst.msk [vmem:[#allocation2 + $0x171] sm:$0xff] %vm278_vm0, %v391_v48  ;;  %v428_v1 = vld [vmem:[#allocation2 + $0x18] sm:$0xff]  ;;  %v7389_v2 = vpack.c.bf16 %v632_v58, %v632_v58  ;;  %v430_v5 = vld [vmem:[#allocation2 + $0x30] sm:$0xff]  ;;  %v7392_v11 = vpack.c.bf16 %v635_v61, %v635_v61 }
  0x36   : > { %v8682_v4 = vpack.c.bf16 %v428_v1, %v428_v1  ;;  %v429_v6 = vld [vmem:[#allocation2 + $0x20] sm:$0xff]  ;;  %v634_v7 = vld [vmem:[#allocation2 + $0xb1] sm:$0xff]  ;;  %587 = vst.msk [vmem:[#allocation4] sm:$0xf] %vm586_vm2, %v7344_v62  ;;  %v8685_v8 = vpack.c.bf16 %v430_v5, %v430_v5  ;;  %v432_v10 = vld [vmem:[#allocation2 + $0x48] sm:$0xff] }
  0x37   : > { %v8687_v9 = vpack.c.bf16 %v429_v6, %v429_v6  ;;  %v8690_v12 = vld [vmem:[#allocation2 + $0xd9] sm:$0xff]  ;;  %588 = vst.msk [vmem:[#allocation4 + $0x4] sm:$0xf] %vm586_vm2, %v7345_v3  ;;  %v8695_v13 = vpack.c.bf16 %v432_v10, %v432_v10  ;;  %v8697_v16 = vld [vmem:[#allocation2 + $0xc9] sm:$0xff]  ;;  %v7391_v22 = vpack.c.bf16 %v634_v7, %v634_v7  ;;  %v639_v29 = vld [vmem:[#allocation2 + $0xf1] sm:$0xff] }
  0x38   : > { %589 = vst.msk [vmem:[#allocation4 + $0x8] sm:$0xf] %vm586_vm2, %v8682_v4  ;;  %v431_v14 = vld [vmem:[#allocation2 + $0x38] sm:$0xff]  ;;  %v434_v15 = vld [vmem:[#allocation2 + $0x60] sm:$0xff]  ;;  %591 = vst.msk [vmem:[#allocation4 + $0x10] sm:$0xf] %vm586_vm2, %v8685_v8  ;;  %v7394_v36 = vpack.c.bf16 %v8690_v12, %v8690_v12  ;;  %v7393_v50 = vpack.c.bf16 %v8697_v16, %v8697_v16 }
  0x39   : > { %757 = vrot.lane.b32.xlu1 %v7381_v39, %s8423_s18  ;;  %763 = vrot.lane.b32.xlu0 %v7384_v44, %s8423_s18  ;;  %590 = vst.msk [vmem:[#allocation4 + $0xc] sm:$0xf] %vm586_vm2, %v8687_v9  ;;  %v8703_v17 = vpack.c.bf16 %v431_v14, %v431_v14  ;;  %v8705_v18 = vpack.c.bf16 %v434_v15, %v434_v15  ;;  %v433_v19 = vld [vmem:[#allocation2 + $0x50] sm:$0xff]  ;;  %v436_v20 = vld [vmem:[#allocation2 + $0x78] sm:$0xff]  ;;  %v435_v21 = vld [vmem:[#allocation2 + $0x68] sm:$0xff] }
  0x3a   : > { %593 = vst.msk [vmem:[#allocation4 + $0x18] sm:$0xf] %vm586_vm2, %v8695_v13  ;;  %v8710_v23 = vpack.c.bf16 %v433_v19, %v433_v19  ;;  %v8712_v24 = vpack.c.bf16 %v436_v20, %v436_v20  ;;  %v8714_v25 = vpack.c.bf16 %v435_v21, %v435_v21  ;;  %v438_v26 = vld [vmem:[#allocation2 + $0x90] sm:$0xff]  ;;  %v437_v27 = vld [vmem:[#allocation2 + $0x80] sm:$0xff]  ;;  %v440_v28 = vld [vmem:[#allocation2 + $0xa8] sm:$0xff] }
  0x3b   : > { %592 = vst.msk [vmem:[#allocation4 + $0x14] sm:$0xf] %vm586_vm2, %v8703_v17  ;;  %595 = vst.msk [vmem:[#allocation4 + $0x20] sm:$0xf] %vm586_vm2, %v8705_v18  ;;  %v8720_v30 = vpack.c.bf16 %v438_v26, %v438_v26  ;;  %v8722_v31 = vpack.c.bf16 %v437_v27, %v437_v27  ;;  %v8724_v32 = vpack.c.bf16 %v440_v28, %v440_v28  ;;  %v439_v33 = vld [vmem:[#allocation2 + $0x98] sm:$0xff]  ;;  %v442_v34 = vld [vmem:[#allocation2 + $0xc0] sm:$0xff] }
  0x3c   : > { %v441_v35 = vld [vmem:[#allocation2 + $0xb0] sm:$0xff]  ;;  %594 = vst.msk [vmem:[#allocation4 + $0x1c] sm:$0xf] %vm586_vm2, %v8710_v23  ;;  %597 = vst.msk [vmem:[#allocation4 + $0x28] sm:$0xf] %vm586_vm2, %v8712_v24  ;;  %v8735_v37 = vpack.c.bf16 %v439_v33, %v439_v33  ;;  %v8737_v38 = vpack.c.bf16 %v442_v34, %v442_v34  ;;  %v444_v40 = vld [vmem:[#allocation2 + $0xd8] sm:$0xff] }
  0x3d   : > { %761 = vrot.lane.b32.xlu1 %v7383_v49, %s8423_s18  ;;  %767 = vrot.lane.b32.xlu0 %v7386_v51, %s8423_s18  ;;  %596 = vst.msk [vmem:[#allocation4 + $0x24] sm:$0xf] %vm586_vm2, %v8714_v25  ;;  %v8739_v39 = vpack.c.bf16 %v441_v35, %v441_v35  ;;  %v443_v41 = vld [vmem:[#allocation2 + $0xc8] sm:$0xff]  ;;  %v446_v42 = vld [vmem:[#allocation2 + $0xf0] sm:$0xff]  ;;  %599 = vst.msk [vmem:[#allocation4 + $0x30] sm:$0xf] %vm586_vm2, %v8720_v30  ;;  %v8747_v44 = vpack.c.bf16 %v444_v40, %v444_v40 }
  0x3e   : > { %v638_v43 = vld [vmem:[#allocation2 + $0xe1] sm:$0xff]  ;;  %598 = vst.msk [vmem:[#allocation4 + $0x2c] sm:$0xf] %vm586_vm2, %v8722_v31  ;;  %601 = vst.msk [vmem:[#allocation4 + $0x38] sm:$0xf] %vm586_vm2, %v8724_v32  ;;  %v8749_v45 = vpack.c.bf16 %v443_v41, %v443_v41  ;;  %v8751_v46 = vpack.c.bf16 %v446_v42, %v446_v42  ;;  %v447_v49 = vld [vmem:[#allocation2 + $0xf8] sm:$0xff] }
  0x3f   : > { %v445_v47 = vld [vmem:[#allocation2 + $0xe0] sm:$0xff]  ;;  %v448_v48 = vld [vmem:[#allocation2 + $0x108] sm:$0xff]  ;;  %600 = vst.msk [vmem:[#allocation4 + $0x34] sm:$0xf] %vm586_vm2, %v8735_v37  ;;  %603 = vst.msk [vmem:[#allocation4 + $0x40] sm:$0xf] %vm586_vm2, %v8737_v38  ;;  %v7395_v63 = vpack.c.bf16 %v638_v43, %v638_v43 }
  0x40   : > { %602 = vst.msk [vmem:[#allocation4 + $0x3c] sm:$0xf] %vm586_vm2, %v8739_v39  ;;  %v8762_v51 = vpack.c.bf16 %v445_v47, %v445_v47  ;;  %v8764_v52 = vpack.c.bf16 %v448_v48, %v448_v48  ;;  %v450_v54 = vld [vmem:[#allocation2 + $0x120] sm:$0xff]  ;;  %v641_v56 = vld [vmem:[#allocation2 + $0x109] sm:$0xff]  ;;  %605 = vst.msk [vmem:[#allocation4 + $0x48] sm:$0xf] %vm586_vm2, %v8747_v44 }
  0x41   : > { %765 = vrot.lane.b32.xlu1 %v7385_v53, %s8423_s18  ;;  %771 = vrot.lane.b32.xlu0 %v7388_v55, %s8423_s18  ;;  %v8766_v53 = vpack.c.bf16 %v447_v49, %v447_v49  ;;  %v449_v55 = vld [vmem:[#allocation2 + $0x110] sm:$0xff]  ;;  %604 = vst.msk [vmem:[#allocation4 + $0x44] sm:$0xf] %vm586_vm2, %v8749_v45  ;;  %607 = vst.msk [vmem:[#allocation4 + $0x50] sm:$0xf] %vm586_vm2, %v8751_v46  ;;  %v640_v60 = vld [vmem:[#allocation2 + $0xf9] sm:$0xff]  ;;  %v7398_v5 = vpack.c.bf16 %v641_v56, %v641_v56 }
  0x42   : > { %v8776_v58 = vpack.c.bf16 %v449_v55, %v449_v55  ;;  %606 = vst.msk [vmem:[#allocation4 + $0x4c] sm:$0xf] %vm586_vm2, %v8762_v51  ;;  %609 = vst.msk [vmem:[#allocation4 + $0x58] sm:$0xf] %vm586_vm2, %v8764_v52  ;;  %v452_v61 = vld [vmem:[#allocation2 + $0x138] sm:$0xff]  ;;  %v451_v62 = vld [vmem:[#allocation2 + $0x128] sm:$0xff] }
  0x43   : > { %608 = vst.msk [vmem:[#allocation4 + $0x54] sm:$0xf] %vm586_vm2, %v8766_v53  ;;  %v8790_v1 = vpack.c.bf16 %v452_v61, %v452_v61  ;;  %v643_v3 = vld [vmem:[#allocation2 + $0x121] sm:$0xff]  ;;  %v642_v6 = vld [vmem:[#allocation2 + $0x111] sm:$0xff]  ;;  %v645_v15 = vld [vmem:[#allocation2 + $0x139] sm:$0xff] }
  0x44   : > { %610 = vst.msk [vmem:[#allocation4 + $0x5c] sm:$0xf] %vm586_vm2, %v8776_v58  ;;  %v454_v7 = vld [vmem:[#allocation2 + $0x150] sm:$0xff]  ;;  %v453_v10 = vld [vmem:[#allocation2 + $0x140] sm:$0xff]  ;;  %v7400_v16 = vpack.c.bf16 %v643_v3, %v643_v3  ;;  %v456_v19 = vld [vmem:[#allocation2 + $0x168] sm:$0xff]  ;;  %v7399_v21 = vpack.c.bf16 %v642_v6, %v642_v6  ;;  %v7402_v28 = vpack.c.bf16 %v645_v15, %v645_v15 }
  0x45   : > { %769 = vrot.lane.b32.xlu1 %v7387_v57, %s8423_s18  ;;  %775 = vrot.lane.b32.xlu0 %v7390_v59, %s8423_s18  ;;  %v8774_v57 = vpack.c.bf16 %v450_v54, %v450_v54  ;;  %v7396_v59 = vpack.c.bf16 %v639_v29, %v639_v29  ;;  %613 = vst.msk [vmem:[#allocation4 + $0x68] sm:$0xf] %vm586_vm2, %v8790_v1  ;;  %v455_v20 = vld [vmem:[#allocation2 + $0x158] sm:$0xff]  ;;  %v644_v27 = vld [vmem:[#allocation2 + $0x129] sm:$0xff] }
  0x46   : > { %v8800_v12 = vpack.c.bf16 %v454_v7, %v454_v7  ;;  %v8802_v14 = vpack.c.bf16 %v453_v10, %v453_v10  ;;  %v8812_v26 = vpack.c.bf16 %v455_v20, %v455_v20  ;;  %v647_v29 = vld [vmem:[#allocation2 + $0x151] sm:$0xff]  ;;  %v7401_v34 = vpack.c.bf16 %v644_v27, %v644_v27  ;;  %v649_v42 = vld [vmem:[#allocation2 + $0x169] sm:$0xff]  ;;  %v648_v47 = vld [vmem:[#allocation2 + $0x159] sm:$0xff]  ;;  %321 = vst.msk [vmem:[#allocation3] sm:$0xff] %vm320_vm13, %v8422_v0 }
  0x47   : > { %611 = vst.msk [vmem:[#allocation4 + $0x60] sm:$0xf] %vm586_vm2, %v8774_v57  ;;  %v457_v33 = vld [vmem:[#allocation2 + $0x170] sm:$0xff]  ;;  %v7404_v41 = vpack.c.bf16 %v647_v29, %v647_v29  ;;  %v393_v48 = vld [vmem:[%s8607_s17 + $0xf8] sm:$0xff]  ;;  %v7406_v49 = vpack.c.bf16 %v649_v42, %v649_v42  ;;  %v7405_v54 = vpack.c.bf16 %v648_v47, %v648_v47 }
  0x48   : > { %615 = vst.msk [vmem:[#allocation4 + $0x70] sm:$0xf] %vm586_vm2, %v8800_v12  ;;  %614 = vst.msk [vmem:[#allocation4 + $0x6c] sm:$0xf] %vm586_vm2, %v8802_v14  ;;  %v8820_v35 = vpack.c.bf16 %v457_v33, %v457_v33  ;;  %v392_v40 = vld [vmem:[%s8607_s17 + $0xf0] sm:$0xff]  ;;  %v886_v27 = vld [vmem:[#allocation2 + $0x7a] sm:$0xff] }
  0x49   : > { %773 = vrot.lane.b32.xlu1 %v7389_v2, %s8423_s18  ;;  %779 = vrot.lane.b32.xlu0 %v7392_v11, %s8423_s18  ;;  %v8792_v2 = vpack.c.bf16 %v451_v62, %v451_v62  ;;  %v7397_v11 = vpack.c.bf16 %v640_v60, %v640_v60  ;;  %616 = vst.msk [vmem:[#allocation4 + $0x74] sm:$0xf] %vm586_vm2, %v8812_v26  ;;  %v650_v55 = vld [vmem:[#allocation2 + $0x171] sm:$0xff]  ;;  %v889_v47 = vld [vmem:[#allocation2 + $0x9a] sm:$0xff]  ;;  %s8430_s17 = smov 32  }
  0x4a   : > { %618 = vst.msk [vmem:[#allocation4 + $0x7c] sm:$0xf] %vm586_vm2, %v8820_v35  ;;  %v7407_v60 = vpack.c.bf16 %v650_v55, %v650_v55  ;;  %v877_v61 = vld [vmem:[#allocation2 + $0xa] sm:$0xff]  ;;  %v883_v20 = vld [vmem:[#allocation2 + $0x52] sm:$0xff]  ;;  %v7418_v33 = vpack.c.bf16 %v886_v27, %v886_v27  ;;  %v902_v27 = vld [vmem:[#allocation2 + $0x13a] sm:$0xff] }
  0x4b   : > { %612 = vst.msk [vmem:[#allocation4 + $0x64] sm:$0xf] %vm586_vm2, %v8792_v2  ;;  %v7409_v3 = vpack.c.bf16 %v877_v61, %v877_v61  ;;  %v882_v7 = vld [vmem:[#allocation2 + $0x4a] sm:$0xff] }
  0x4c   : > { %424 = vst.msk [vmem:[#allocation2 + $0x181] sm:$0xff] %vm278_vm0, %v392_v40  ;;  %425 = vst.msk [vmem:[#allocation2 + $0x189] sm:$0xff] %vm278_vm0, %v393_v48  ;;  %v7414_v15 = vpack.c.bf16 %v882_v7, %v882_v7  ;;  %v885_v29 = vld [vmem:[#allocation2 + $0x6a] sm:$0xff]  ;;  %v887_v40 = vld [vmem:[#allocation2 + $0x82] sm:$0xff] }
  0x4d   : > { %777 = vrot.lane.b32.xlu1 %v7391_v22, %s8423_s18  ;;  %783 = vrot.lane.b32.xlu0 %v7394_v36, %s8423_s18  ;;  %v8810_v22 = vpack.c.bf16 %v456_v19, %v456_v19  ;;  %v646_v36 = vld [vmem:[#allocation2 + $0x141] sm:$0xff]  ;;  %v890_v42 = vld [vmem:[#allocation2 + $0xaa] sm:$0xff]  ;;  %322 = vst.msk [vmem:[#allocation3 + $0x8] sm:$0xff] %vm320_vm13, %v8422_v0  ;;  %323 = vst.msk [vmem:[#allocation3 + $0x10] sm:$0xff] %vm320_vm13, %v8422_v0 }
  0x4e   : > { %v7403_v43 = vpack.c.bf16 %v646_v36, %v646_v36  ;;  %v7417_v36 = vpack.c.bf16 %v885_v29, %v885_v29  ;;  %v7422_v48 = vpack.c.bf16 %v890_v42, %v890_v42  ;;  %v901_v29 = vld [vmem:[#allocation2 + $0x12a] sm:$0xff]  ;;  %325 = vst.msk [vmem:[#allocation3 + $0x198] sm:$0xff] %vm320_vm13, %v8422_v0  ;;  %326 = vst.msk [vmem:[#allocation3 + $0x1a0] sm:$0xff] %vm320_vm13, %v8422_v0 }
  0x4f   : > { %617 = vst.msk [vmem:[#allocation4 + $0x78] sm:$0xf] %vm586_vm2, %v8810_v22  ;;  %vm3767_vm2 = vcmask 781824  }
  0x50   : > { %327 = vst.msk [vmem:[#allocation3 + $0x1a8] sm:$0xff] %vm320_vm13, %v8422_v0 }
  0x51   : > { %781 = vrot.lane.b32.xlu1 %v7393_v50, %s8423_s18  ;;  %787 = vrot.lane.b32.xlu0 %v7396_v59, %s8423_s18  ;;  %v876_v50 = vld [vmem:[#allocation2 + $0x2] sm:$0xff]  ;;  %v878_v59 = vld [vmem:[#allocation2 + $0x1a] sm:$0xff]  ;;  %347 = vst.msk [vmem:[#allocation3 + $0x41] sm:$0x1] %vm329_vm14, %v8422_v0  ;;  %330 = vst.msk [vmem:[#allocation3 + $0x18] sm:$0x1] %vm329_vm14, %v8422_v0 }
  0x52   : > { %v7408_v56 = vpack.c.bf16 %v876_v50, %v876_v50  ;;  %v7410_v62 = vpack.c.bf16 %v878_v59, %v878_v59  ;;  %v7421_v50 = vpack.c.bf16 %v889_v47, %v889_v47  ;;  %331 = vst.msk [vmem:[#allocation3 + $0x30] sm:$0x1] %vm329_vm14, %v8422_v0  ;;  %332 = vst.msk [vmem:[#allocation3 + $0x48] sm:$0x1] %vm329_vm14, %v8422_v0 }
  0x53   : > { %333 = vst.msk [vmem:[#allocation3 + $0x60] sm:$0x1] %vm329_vm14, %v8422_v0  ;;  %334 = vst.msk [vmem:[#allocation3 + $0x78] sm:$0x1] %vm329_vm14, %v8422_v0 }
  0x54   : > { %335 = vst.msk [vmem:[#allocation3 + $0x90] sm:$0x1] %vm329_vm14, %v8422_v0  ;;  %336 = vst.msk [vmem:[#allocation3 + $0xa8] sm:$0x1] %vm329_vm14, %v8422_v0 }
  0x55   : > { %785 = vrot.lane.b32.xlu1 %v7395_v63, %s8423_s18  ;;  %791 = vrot.lane.b32.xlu0 %v7398_v5, %s8423_s18  ;;  %v880_v63 = vld [vmem:[#allocation2 + $0x32] sm:$0xff]  ;;  %v879_v5 = vld [vmem:[#allocation2 + $0x22] sm:$0xff]  ;;  %337 = vst.msk [vmem:[#allocation3 + $0xc0] sm:$0x1] %vm329_vm14, %v8422_v0  ;;  %338 = vst.msk [vmem:[#allocation3 + $0xd8] sm:$0x1] %vm329_vm14, %v8422_v0 }
  0x56   : > { %v7412_v6 = vpack.c.bf16 %v880_v63, %v880_v63  ;;  %v7411_v10 = vpack.c.bf16 %v879_v5, %v879_v5  ;;  %339 = vst.msk [vmem:[#allocation3 + $0xf0] sm:$0x1] %vm329_vm14, %v8422_v0  ;;  %340 = vst.msk [vmem:[#allocation3 + $0x108] sm:$0x1] %vm329_vm14, %v8422_v0 }
  0x57   : > { %341 = vst.msk [vmem:[#allocation3 + $0x120] sm:$0x1] %vm329_vm14, %v8422_v0  ;;  %342 = vst.msk [vmem:[#allocation3 + $0x138] sm:$0x1] %vm329_vm14, %v8422_v0 }
  0x58   : > { %343 = vst.msk [vmem:[#allocation3 + $0x150] sm:$0x1] %vm329_vm14, %v8422_v0  ;;  %344 = vst.msk [vmem:[#allocation3 + $0x168] sm:$0x1] %vm329_vm14, %v8422_v0 }
  0x59   : > { %789 = vrot.lane.b32.xlu1 %v7397_v11, %s8423_s18  ;;  %795 = vrot.lane.b32.xlu0 %v7400_v16, %s8423_s18  ;;  %v881_v11 = vld [vmem:[#allocation2 + $0x3a] sm:$0xff]  ;;  %v884_v16 = vld [vmem:[#allocation2 + $0x62] sm:$0xff]  ;;  %345 = vst.msk [vmem:[#allocation3 + $0x180] sm:$0x1] %vm329_vm14, %v8422_v0  ;;  %346 = vst.msk [vmem:[#allocation3 + $0x29] sm:$0x1] %vm329_vm14, %v8422_v0 }
  0x5a   : > { %v8840_v19 = vpack.c.bf16 %v881_v11, %v881_v11  ;;  %348 = vst.msk [vmem:[#allocation3 + $0x59] sm:$0x1] %vm329_vm14, %v8422_v0  ;;  %349 = vst.msk [vmem:[#allocation3 + $0x71] sm:$0x1] %vm329_vm14, %v8422_v0 }
  0x5b   : > { %350 = vst.msk [vmem:[#allocation3 + $0x89] sm:$0x1] %vm329_vm14, %v8422_v0  ;;  %351 = vst.msk [vmem:[#allocation3 + $0xa1] sm:$0x1] %vm329_vm14, %v8422_v0 }
  0x5c   : > { %352 = vst.msk [vmem:[#allocation3 + $0xb9] sm:$0x1] %vm329_vm14, %v8422_v0  ;;  %353 = vst.msk [vmem:[#allocation3 + $0xd1] sm:$0x1] %vm329_vm14, %v8422_v0 }
  0x5d   : > { %793 = vrot.lane.b32.xlu1 %v7399_v21, %s8423_s18  ;;  %799 = vrot.lane.b32.xlu0 %v7402_v28, %s8423_s18  ;;  %v7416_v21 = vpack.c.bf16 %v884_v16, %v884_v16  ;;  %v7415_v28 = vpack.c.bf16 %v883_v20, %v883_v20  ;;  %v899_v20 = vld [vmem:[#allocation2 + $0x112] sm:$0xff]  ;;  %354 = vst.msk [vmem:[#allocation3 + $0xe9] sm:$0x1] %vm329_vm14, %v8422_v0  ;;  %355 = vst.msk [vmem:[#allocation3 + $0x101] sm:$0x1] %vm329_vm14, %v8422_v0 }
  0x5e   : > { %356 = vst.msk [vmem:[#allocation3 + $0x119] sm:$0x1] %vm329_vm14, %v8422_v0  ;;  %357 = vst.msk [vmem:[#allocation3 + $0x131] sm:$0x1] %vm329_vm14, %v8422_v0 }
  0x5f   : > { %358 = vst.msk [vmem:[#allocation3 + $0x149] sm:$0x1] %vm329_vm14, %v8422_v0  ;;  %359 = vst.msk [vmem:[#allocation3 + $0x161] sm:$0x1] %vm329_vm14, %v8422_v0 }
  0x60   : > { %360 = vst.msk [vmem:[#allocation3 + $0x179] sm:$0x1] %vm329_vm14, %v8422_v0  ;;  %361 = vst.msk [vmem:[#allocation3 + $0x191] sm:$0x1] %vm329_vm14, %v8422_v0 }
  0x61   : > { %797 = vrot.lane.b32.xlu1 %v7401_v34, %s8423_s18  ;;  %803 = vrot.lane.b32.xlu0 %v7404_v41, %s8423_s18  ;;  %v888_v34 = vld [vmem:[#allocation2 + $0x92] sm:$0xff] }
  0x62   : > { %v7420_v41 = vpack.c.bf16 %v888_v34, %v888_v34  ;;  %v904_v34 = vld [vmem:[#allocation2 + $0x152] sm:$0xff] }
  0x63   : > { %v7436_v42 = vpack.c.bf16 %v904_v34, %v904_v34  ;;  %v1164_v34 = vld [vmem:[#allocation2 + $0x188] sm:$0xff] }
  0x65   : > { %801 = vrot.lane.b32.xlu1 %v7403_v43, %s8423_s18  ;;  %807 = vrot.lane.b32.xlu0 %v7406_v49, %s8423_s18  ;;  %v7419_v43 = vpack.c.bf16 %v887_v40, %v887_v40  ;;  %v892_v49 = vld [vmem:[#allocation2 + $0xc2] sm:$0xff]  ;;  %v7433_v40 = vpack.c.bf16 %v901_v29, %v901_v29 }
  0x66   : > { %v7424_v55 = vpack.c.bf16 %v892_v49, %v892_v49  ;;  %v905_v49 = vld [vmem:[#allocation2 + $0x15a] sm:$0xff] }
  0x69   : > { %805 = vrot.lane.b32.xlu1 %v7405_v54, %s8423_s18  ;;  %1004 = vrot.lane.b32.xlu0 %v7408_v56, %s8424_s19  ;;  %v891_v54 = vld [vmem:[#allocation2 + $0xb2] sm:$0xff]  ;;  %v894_v56 = vld [vmem:[#allocation2 + $0xda] sm:$0xff] }
  0x6a   : > { %v7423_v59 = vpack.c.bf16 %v891_v54, %v891_v54  ;;  %v7426_v61 = vpack.c.bf16 %v894_v56, %v894_v56  ;;  %v7437_v56 = vpack.c.bf16 %v905_v49, %v905_v49 }
  0x6d   : > { %809 = vrot.lane.b32.xlu1 %v7407_v60, %s8423_s18  ;;  %1008 = vrot.lane.b32.xlu0 %v7410_v62, %s8424_s19  ;;  %v893_v60 = vld [vmem:[#allocation2 + $0xca] sm:$0xff]  ;;  %v896_v62 = vld [vmem:[#allocation2 + $0xf2] sm:$0xff] }
  0x6e   : > { %v7425_v63 = vpack.c.bf16 %v893_v60, %v893_v60  ;;  %v7428_v5 = vpack.c.bf16 %v896_v62, %v896_v62 }
  0x71   : > { %1006 = vrot.lane.b32.xlu1 %v7409_v3, %s8424_s19  ;;  %1012 = vrot.lane.b32.xlu0 %v7412_v6, %s8424_s19  ;;  %v895_v3 = vld [vmem:[#allocation2 + $0xe2] sm:$0xff]  ;;  %v898_v6 = vld [vmem:[#allocation2 + $0x10a] sm:$0xff] }
  0x72   : > { %v7427_v7 = vpack.c.bf16 %v895_v3, %v895_v3  ;;  %v7430_v11 = vpack.c.bf16 %v898_v6, %v898_v6 }
  0x75   : > { %1010 = vrot.lane.b32.xlu1 %v7411_v10, %s8424_s19  ;;  %1016 = vrot.lane.b32.xlu0 %v7414_v15, %s8424_s19  ;;  %v897_v10 = vld [vmem:[#allocation2 + $0xfa] sm:$0xff]  ;;  %v900_v15 = vld [vmem:[#allocation2 + $0x122] sm:$0xff] }
  0x76   : > { %v7429_v16 = vpack.c.bf16 %v897_v10, %v897_v10 }
  0x79   : > { %1014 = vrot.lane.b32.xlu1 %v8840_v19, %s8424_s19  ;;  %1020 = vrot.lane.b32.xlu0 %v7416_v21, %s8424_s19  ;;  %v7432_v21 = vpack.c.bf16 %v900_v15, %v900_v15 }
  0x7d   : > { %1018 = vrot.lane.b32.xlu1 %v7415_v28, %s8424_s19  ;;  %1024 = vrot.lane.b32.xlu0 %v7418_v33, %s8424_s19  ;;  %v7431_v28 = vpack.c.bf16 %v899_v20, %v899_v20  ;;  %v7434_v33 = vpack.c.bf16 %v902_v27, %v902_v27 }
  0x81   : > { %1022 = vrot.lane.b32.xlu1 %v7417_v36, %s8424_s19  ;;  %1028 = vrot.lane.b32.xlu0 %v7420_v41, %s8424_s19  ;;  %v903_v41 = vld [vmem:[#allocation2 + $0x142] sm:$0xff] }
  0x85   : > { %1026 = vrot.lane.b32.xlu1 %v7419_v43, %s8424_s19  ;;  %1032 = vrot.lane.b32.xlu0 %v7422_v48, %s8424_s19  ;;  %v906_v43 = vld [vmem:[#allocation2 + $0x16a] sm:$0xff]  ;;  %v7435_v48 = vpack.c.bf16 %v903_v41, %v903_v41  ;;  %v7471_v41 = vpack.c.bf16 %v1164_v34, %v1164_v34  ;;  %v1407_v34 = vld [vmem:[#allocation2 + $0xe1] sm:$0xff] }
  0x86   : > { %v7438_v54 = vpack.c.bf16 %v906_v43, %v906_v43 }
  0x89   : > { %1030 = vrot.lane.b32.xlu1 %v7421_v50, %s8424_s19  ;;  %1036 = vrot.lane.b32.xlu0 %v7424_v55, %s8424_s19 }
  0x8d   : > { %1034 = vrot.lane.b32.xlu1 %v7423_v59, %s8424_s19  ;;  %1040 = vrot.lane.b32.xlu0 %v7426_v61, %s8424_s19  ;;  %v907_v59 = vld [vmem:[#allocation2 + $0x172] sm:$0xff] }
  0x8e   : > { %v7439_v62 = vpack.c.bf16 %v907_v59, %v907_v59 }
  0x90   : > { %v748_v36 = vpop.permute.xlu0 %747 }
  0x91   : > { %1038 = vrot.lane.b32.xlu1 %v7425_v63, %s8424_s19  ;;  %1044 = vrot.lane.b32.xlu0 %v7428_v5, %s8424_s19  ;;  %844 = vst.msk [vmem:[#allocation4] sm:$0xf] %vm843_vm3, %v748_v36 }
  0x94   : > { %v750_v47 = vpop.permute.xlu0 %749 }
  0x95   : > { %1042 = vrot.lane.b32.xlu1 %v7427_v7, %s8424_s19  ;;  %1048 = vrot.lane.b32.xlu0 %v7430_v11, %s8424_s19  ;;  %845 = vst.msk [vmem:[#allocation4 + $0x4] sm:$0xf] %vm843_vm3, %v750_v47  ;;  %v1394_v47 = vld [vmem:[#allocation2 + $0x49] sm:$0xff] }
  0x99   : > { %1046 = vrot.lane.b32.xlu1 %v7429_v16, %s8424_s19  ;;  %1052 = vrot.lane.b32.xlu0 %v7432_v21, %s8424_s19 }
  0x9d   : > { %1050 = vrot.lane.b32.xlu1 %v7431_v28, %s8424_s19  ;;  %1056 = vrot.lane.b32.xlu0 %v7434_v33, %s8424_s19  ;;  %v1390_v33 = vld [vmem:[#allocation2 + $0x19] sm:$0xff] }
  0xa1   : > { %1054 = vrot.lane.b32.xlu1 %v7433_v40, %s8424_s19  ;;  %1060 = vrot.lane.b32.xlu0 %v7436_v42, %s8424_s19  ;;  %v1392_v40 = vld [vmem:[#allocation2 + $0x31] sm:$0xff]  ;;  %v1391_v42 = vld [vmem:[#allocation2 + $0x21] sm:$0xff] }
  0xa2   : > { %v8970_v43 = vpack.c.bf16 %v1392_v40, %v1392_v40  ;;  %v7473_v49 = vpack.c.bf16 %v1391_v42, %v1391_v42  ;;  %v1410_v40 = vld [vmem:[#allocation2 + $0x109] sm:$0xff]  ;;  %v1409_v42 = vld [vmem:[#allocation2 + $0xf9] sm:$0xff] }
  0xa3   : > { %v752_v50 = vpop.permute.xlu1 %751  ;;  %v756_v55 = vpop.permute.xlu0 %755 }
  0xa4   : > { %846 = vst.msk [vmem:[#allocation4 + $0x8] sm:$0xf] %vm843_vm3, %v752_v50  ;;  %848 = vst.msk [vmem:[#allocation4 + $0x10] sm:$0xf] %vm843_vm3, %v756_v55  ;;  %v1396_v55 = vld [vmem:[#allocation2 + $0x61] sm:$0xff] }
  0xa5   : > { %1058 = vrot.lane.b32.xlu1 %v7435_v48, %s8424_s19  ;;  %1064 = vrot.lane.b32.xlu0 %v7438_v54, %s8424_s19  ;;  %v8977_v54 = vpack.c.bf16 %v1394_v47, %v1394_v47  ;;  %v9056_v47 = vpack.c.bf16 %v1410_v40, %v1410_v40  ;;  %v8258_v40 = vld [vmem:[%s10946_s1] sm:$0xff]  }
  0xa7   : > { %v754_v60 = vpop.permute.xlu1 %753  ;;  %v760_v61 = vpop.permute.xlu0 %759 }
  0xa8   : > { %847 = vst.msk [vmem:[#allocation4 + $0xc] sm:$0xf] %vm843_vm3, %v754_v60  ;;  %850 = vst.msk [vmem:[#allocation4 + $0x18] sm:$0xf] %vm843_vm3, %v760_v61  ;;  %v1395_v60 = vld [vmem:[#allocation2 + $0x51] sm:$0xff] }
  0xa9   : > { %1062 = vrot.lane.b32.xlu1 %v7437_v56, %s8424_s19  ;;  %1261 = vrot.lane.b32.xlu0 %v8682_v4, %s8425_s20 }
  0xab   : > { %v758_v63 = vpop.permute.xlu1 %757  ;;  %v764_v3 = vpop.permute.xlu0 %763 }
  0xac   : > { %849 = vst.msk [vmem:[#allocation4 + $0x14] sm:$0xf] %vm843_vm3, %v758_v63  ;;  %852 = vst.msk [vmem:[#allocation4 + $0x20] sm:$0xf] %vm843_vm3, %v764_v3  ;;  %v1398_v63 = vld [vmem:[#allocation2 + $0x79] sm:$0xff] }
  0xad   : > { %1066 = vrot.lane.b32.xlu1 %v7439_v62, %s8424_s19  ;;  %1265 = vrot.lane.b32.xlu0 %v8685_v8, %s8425_s20  ;;  %v8986_v62 = vpack.c.bf16 %v1396_v55, %v1396_v55 }
  0xaf   : > { %v762_v5 = vpop.permute.xlu1 %761  ;;  %v768_v6 = vpop.permute.xlu0 %767 }
  0xb0   : > { %851 = vst.msk [vmem:[#allocation4 + $0x1c] sm:$0xf] %vm843_vm3, %v762_v5  ;;  %854 = vst.msk [vmem:[#allocation4 + $0x28] sm:$0xf] %vm843_vm3, %v768_v6  ;;  %v8991_v5 = vpack.c.bf16 %v1395_v60, %v1395_v60  ;;  %v1397_v6 = vld [vmem:[#allocation2 + $0x69] sm:$0xff]  ;;  %v1414_v60 = vld [vmem:[#allocation2 + $0x139] sm:$0xff] }
  0xb1   : > { %1263 = vrot.lane.b32.xlu1 %v8687_v9, %s8425_s20  ;;  %1269 = vrot.lane.b32.xlu0 %v8695_v13, %s8425_s20 }
  0xb3   : > { %v766_v4 = vpop.permute.xlu1 %765  ;;  %v772_v7 = vpop.permute.xlu0 %771 }
  0xb4   : > { %853 = vst.msk [vmem:[#allocation4 + $0x24] sm:$0xf] %vm843_vm3, %v766_v4  ;;  %856 = vst.msk [vmem:[#allocation4 + $0x30] sm:$0xf] %vm843_vm3, %v772_v7  ;;  %v8996_v7 = vpack.c.bf16 %v1398_v63, %v1398_v63 }
  0xb5   : > { %1267 = vrot.lane.b32.xlu1 %v8703_v17, %s8425_s20  ;;  %1273 = vrot.lane.b32.xlu0 %v8705_v18, %s8425_s20 }
  0xb7   : > { %v770_v10 = vpop.permute.xlu1 %769  ;;  %v776_v9 = vpop.permute.xlu0 %775 }
  0xb8   : > { %855 = vst.msk [vmem:[#allocation4 + $0x2c] sm:$0xf] %vm843_vm3, %v770_v10  ;;  %858 = vst.msk [vmem:[#allocation4 + $0x38] sm:$0xf] %vm843_vm3, %v776_v9  ;;  %v1400_v10 = vld [vmem:[#allocation2 + $0x91] sm:$0xff] }
  0xb9   : > { %1271 = vrot.lane.b32.xlu1 %v8710_v23, %s8425_s20  ;;  %1277 = vrot.lane.b32.xlu0 %v8712_v24, %s8425_s20 }
  0xbb   : > { %v774_v11 = vpop.permute.xlu1 %773  ;;  %v780_v15 = vpop.permute.xlu0 %779 }
  0xbc   : > { %857 = vst.msk [vmem:[#allocation4 + $0x34] sm:$0xf] %vm843_vm3, %v774_v11  ;;  %860 = vst.msk [vmem:[#allocation4 + $0x40] sm:$0xf] %vm843_vm3, %v780_v15  ;;  %v9001_v11 = vpack.c.bf16 %v1397_v6, %v1397_v6  ;;  %v1399_v15 = vld [vmem:[#allocation2 + $0x81] sm:$0xff] }
  0xbd   : > { %1275 = vrot.lane.b32.xlu1 %v8714_v25, %s8425_s20  ;;  %1281 = vrot.lane.b32.xlu0 %v8720_v30, %s8425_s20 }
  0xbf   : > { %v778_v16 = vpop.permute.xlu1 %777  ;;  %v784_v20 = vpop.permute.xlu0 %783 }
  0xc0   : > { %859 = vst.msk [vmem:[#allocation4 + $0x3c] sm:$0xf] %vm843_vm3, %v778_v16  ;;  %862 = vst.msk [vmem:[#allocation4 + $0x48] sm:$0xf] %vm843_vm3, %v784_v20  ;;  %v9006_v20 = vpack.c.bf16 %v1400_v10, %v1400_v10  ;;  %v1648_v10 = vld [vmem:[#allocation2 + $0x22] sm:$0xff] }
  0xc1   : > { %1279 = vrot.lane.b32.xlu1 %v8722_v31, %s8425_s20  ;;  %1285 = vrot.lane.b32.xlu0 %v8724_v32, %s8425_s20 }
  0xc3   : > { %v782_v21 = vpop.permute.xlu1 %781  ;;  %v788_v27 = vpop.permute.xlu0 %787 }
  0xc4   : > { %861 = vst.msk [vmem:[#allocation4 + $0x44] sm:$0xf] %vm843_vm3, %v782_v21  ;;  %864 = vst.msk [vmem:[#allocation4 + $0x50] sm:$0xf] %vm843_vm3, %v788_v27  ;;  %v1402_v21 = vld [vmem:[#allocation2 + $0xa9] sm:$0xff] }
  0xc5   : > { %1283 = vrot.lane.b32.xlu1 %v8735_v37, %s8425_s20  ;;  %1289 = vrot.lane.b32.xlu0 %v8737_v38, %s8425_s20 }
  0xc7   : > { %v786_v30 = vpop.permute.xlu1 %785  ;;  %v792_v28 = vpop.permute.xlu0 %791 }
  0xc8   : > { %863 = vst.msk [vmem:[#allocation4 + $0x4c] sm:$0xf] %vm843_vm3, %v786_v30  ;;  %866 = vst.msk [vmem:[#allocation4 + $0x58] sm:$0xf] %vm843_vm3, %v792_v28  ;;  %v9011_v30 = vpack.c.bf16 %v1399_v15, %v1399_v15  ;;  %v1401_v28 = vld [vmem:[#allocation2 + $0x99] sm:$0xff] }
  0xc9   : > { %1287 = vrot.lane.b32.xlu1 %v8739_v39, %s8425_s20  ;;  %1293 = vrot.lane.b32.xlu0 %v8747_v44, %s8425_s20 }
  0xcb   : > { %v790_v32 = vpop.permute.xlu1 %789  ;;  %v796_v37 = vpop.permute.xlu0 %795 }
  0xcc   : > { %865 = vst.msk [vmem:[#allocation4 + $0x54] sm:$0xf] %vm843_vm3, %v790_v32  ;;  %868 = vst.msk [vmem:[#allocation4 + $0x60] sm:$0xf] %vm843_vm3, %v796_v37  ;;  %v9016_v37 = vpack.c.bf16 %v1402_v21, %v1402_v21 }
  0xcd   : > { %1291 = vrot.lane.b32.xlu1 %v8749_v45, %s8425_s20  ;;  %1297 = vrot.lane.b32.xlu0 %v8751_v46, %s8425_s20 }
  0xcf   : > { %v794_v38 = vpop.permute.xlu1 %793  ;;  %v800_v39 = vpop.permute.xlu0 %799 }
  0xd0   : > { %867 = vst.msk [vmem:[#allocation4 + $0x5c] sm:$0xf] %vm843_vm3, %v794_v38  ;;  %870 = vst.msk [vmem:[#allocation4 + $0x68] sm:$0xf] %vm843_vm3, %v800_v39  ;;  %v1404_v38 = vld [vmem:[#allocation2 + $0xc1] sm:$0xff] }
  0xd1   : > { %1295 = vrot.lane.b32.xlu1 %v8762_v51, %s8425_s20  ;;  %1301 = vrot.lane.b32.xlu0 %v8764_v52, %s8425_s20 }
  0xd3   : > { %v798_v44 = vpop.permute.xlu1 %797  ;;  %v804_v45 = vpop.permute.xlu0 %803 }
  0xd4   : > { %869 = vst.msk [vmem:[#allocation4 + $0x64] sm:$0xf] %vm843_vm3, %v798_v44  ;;  %872 = vst.msk [vmem:[#allocation4 + $0x70] sm:$0xf] %vm843_vm3, %v804_v45  ;;  %v9021_v44 = vpack.c.bf16 %v1401_v28, %v1401_v28  ;;  %v1403_v45 = vld [vmem:[#allocation2 + $0xb1] sm:$0xff] }
  0xd5   : > { %1299 = vrot.lane.b32.xlu1 %v8766_v53, %s8425_s20  ;;  %1305 = vrot.lane.b32.xlu0 %v8774_v57, %s8425_s20 }
  0xd7   : > { %v802_v46 = vpop.permute.xlu1 %801  ;;  %v808_v51 = vpop.permute.xlu0 %807 }
  0xd8   : > { %871 = vst.msk [vmem:[#allocation4 + $0x6c] sm:$0xf] %vm843_vm3, %v802_v46  ;;  %874 = vst.msk [vmem:[#allocation4 + $0x78] sm:$0xf] %vm843_vm3, %v808_v51  ;;  %v9026_v51 = vpack.c.bf16 %v1404_v38, %v1404_v38  ;;  %v1649_v38 = vld [vmem:[#allocation2 + $0x32] sm:$0xff] }
  0xd9   : > { %1303 = vrot.lane.b32.xlu1 %v8776_v58, %s8425_s20  ;;  %1309 = vrot.lane.b32.xlu0 %v8790_v1, %s8425_s20  ;;  %v1163_v58 = vld [vmem:[#allocation2 + $0x180] sm:$0xff] }
  0xdb   : > { %v806_v52 = vpop.permute.xlu1 %805  ;;  %v1005_v53 = vpop.permute.xlu0 %1004 }
  0xdc   : > { %873 = vst.msk [vmem:[#allocation4 + $0x74] sm:$0xf] %vm843_vm3, %v806_v52  ;;  %v1406_v52 = vld [vmem:[#allocation2 + $0xd9] sm:$0xff] }
  0xdd   : > { %1307 = vrot.lane.b32.xlu1 %v8792_v2, %s8425_s20  ;;  %1101 = vst.msk [vmem:[#allocation4] sm:$0xf] %vm1100_vm4, %v1005_v53  ;;  %1313 = vrot.lane.b32.xlu0 %v8800_v12, %s8425_s20  ;;  %v7470_v2 = vpack.c.bf16 %v1163_v58, %v1163_v58  ;;  %v1405_v58 = vld [vmem:[#allocation2 + $0xc9] sm:$0xff] }
  0xdf   : > { %v810_v57 = vpop.permute.xlu1 %809  ;;  %v1009_v1 = vpop.permute.xlu0 %1008 }
  0xe0   : > { %875 = vst.msk [vmem:[#allocation4 + $0x7c] sm:$0xf] %vm843_vm3, %v810_v57  ;;  %v9031_v57 = vpack.c.bf16 %v1403_v45, %v1403_v45  ;;  %vm4024_vm3 = vcmask 1044224  }
  0xe1   : > { %1311 = vrot.lane.b32.xlu1 %v8802_v14, %s8425_s20  ;;  %1103 = vst.msk [vmem:[#allocation4 + $0x8] sm:$0xf] %vm1100_vm4, %v1009_v1  ;;  %1317 = vrot.lane.b32.xlu0 %v8810_v22, %s8425_s20  ;;  %v7472_v14 = vpack.c.bf16 %v1390_v33, %v1390_v33 }
  0xe3   : > { %v1007_v29 = vpop.permute.xlu1 %1006  ;;  %v1013_v12 = vpop.permute.xlu0 %1012 }
  0xe4   : > { %1102 = vst.msk [vmem:[#allocation4 + $0x4] sm:$0xf] %vm1100_vm4, %v1007_v29  ;;  %1105 = vst.msk [vmem:[#allocation4 + $0x10] sm:$0xf] %vm1100_vm4, %v1013_v12  ;;  %v9036_v29 = vpack.c.bf16 %v1406_v52, %v1406_v52  ;;  %v9041_v12 = vpack.c.bf16 %v1405_v58, %v1405_v58 }
  0xe5   : > { %1315 = vrot.lane.b32.xlu1 %v8812_v26, %s8425_s20  ;;  %1321 = vrot.lane.b32.xlu0 %v7470_v2, %s8425_s20  ;;  %v1408_v2 = vld [vmem:[#allocation2 + $0xf1] sm:$0xff] }
  0xe7   : > { %v1011_v36 = vpop.permute.xlu1 %1010  ;;  %v1017_v22 = vpop.permute.xlu0 %1016 }
  0xe8   : > { %1104 = vst.msk [vmem:[#allocation4 + $0xc] sm:$0xf] %vm1100_vm4, %v1011_v36  ;;  %1107 = vst.msk [vmem:[#allocation4 + $0x18] sm:$0xf] %vm1100_vm4, %v1017_v22 }
  0xe9   : > { %1319 = vrot.lane.b32.xlu1 %v8820_v35, %s8425_s20  ;;  %1518 = vrot.lane.b32.xlu0 %v7472_v14, %s8426_s21  ;;  %v1393_v35 = vld [vmem:[#allocation2 + $0x39] sm:$0xff]  ;;  %v9046_v14 = vpack.c.bf16 %v1408_v2, %v1408_v2  ;;  %v8256_v2 = vld [vmem:[%s10946_s1 + $0x10] ss:$0 sps:$4 sm:$0x33]  }
  0xea   : > { %v8981_v59 = vpack.c.bf16 %v1393_v35, %v1393_v35  ;;  %v9061_v35 = vpack.c.bf16 %v1409_v42, %v1409_v42  ;;  %8201 = vmatprep.subr.msk.bf16.mxu0 %vm2864_vm6, %v8256_v2  ;;  %8202 = vmatprep.subr.msk.bf16.mxu1 %vm2864_vm6, %v8256_v2  ;;  %v2421_v42 = vld [vmem:[#allocation2 + $0x4a] sm:$0xff] }
  0xeb   : > { %v1015_v26 = vpop.permute.xlu1 %1014  ;;  %v1021_v48 = vpop.permute.xlu0 %1020 }
  0xec   : > { %1106 = vst.msk [vmem:[#allocation4 + $0x14] sm:$0xf] %vm1100_vm4, %v1015_v26  ;;  %1109 = vst.msk [vmem:[#allocation4 + $0x20] sm:$0xf] %vm1100_vm4, %v1021_v48  ;;  %v1412_v48 = vld [vmem:[#allocation2 + $0x121] sm:$0xff] }
  0xed   : > { %1323 = vrot.lane.b32.xlu1 %v7471_v41, %s8425_s20  ;;  %1522 = vrot.lane.b32.xlu0 %v8970_v43, %s8426_s21  ;;  %v9051_v41 = vpack.c.bf16 %v1407_v34, %v1407_v34  ;;  %s6607_s20 = sshll.u32 %s269_s15, 8 }
  0xef   : > { %v1019_v50 = vpop.permute.xlu1 %1018  ;;  %v1025_v56 = vpop.permute.xlu0 %1024 }
  0xf0   : > { %1108 = vst.msk [vmem:[#allocation4 + $0x1c] sm:$0xf] %vm1100_vm4, %v1019_v50  ;;  %1111 = vst.msk [vmem:[#allocation4 + $0x28] sm:$0xf] %vm1100_vm4, %v1025_v56  ;;  %v1411_v50 = vld [vmem:[#allocation2 + $0x111] sm:$0xff]  ;;  %v7494_v56 = vpack.c.bf16 %v1412_v48, %v1412_v48 }
  0xf1   : > { %1520 = vrot.lane.b32.xlu1 %v7473_v49, %s8426_s21  ;;  %1526 = vrot.lane.b32.xlu0 %v8977_v54, %s8426_s21  ;;  %v9069_v63 = vpack.c.bf16 %v1411_v50, %v1411_v50  ;;  %v1654_v50 = vld [vmem:[#allocation2 + $0x6a] sm:$0xff] }
  0xf3   : > { %v1023_v61 = vpop.permute.xlu1 %1022  ;;  %v1029_v3 = vpop.permute.xlu0 %1028 }
  0xf4   : > { %1110 = vst.msk [vmem:[#allocation4 + $0x24] sm:$0xf] %vm1100_vm4, %v1023_v61  ;;  %1113 = vst.msk [vmem:[#allocation4 + $0x30] sm:$0xf] %vm1100_vm4, %v1029_v3  ;;  %v1413_v3 = vld [vmem:[#allocation2 + $0x129] sm:$0xff] }
  0xf5   : > { %1524 = vrot.lane.b32.xlu1 %v8981_v59, %s8426_s21  ;;  %1530 = vrot.lane.b32.xlu0 %v8986_v62, %s8426_s21  ;;  %v7495_v15 = vpack.c.bf16 %v1413_v3, %v1413_v3 }
  0xf7   : > { %v1027_v4 = vpop.permute.xlu1 %1026  ;;  %v1033_v9 = vpop.permute.xlu0 %1032 }
  0xf8   : > { %1112 = vst.msk [vmem:[#allocation4 + $0x2c] sm:$0xf] %vm1100_vm4, %v1027_v4  ;;  %1115 = vst.msk [vmem:[#allocation4 + $0x38] sm:$0xf] %vm1100_vm4, %v1033_v9  ;;  %v7496_v4 = vpack.c.bf16 %v1414_v60, %v1414_v60 }
  0xf9   : > { %1528 = vrot.lane.b32.xlu1 %v8991_v5, %s8426_s21  ;;  %1534 = vrot.lane.b32.xlu0 %v8996_v7, %s8426_s21 }
  0xfb   : > { %v1031_v16 = vpop.permute.xlu1 %1030  ;;  %v1037_v27 = vpop.permute.xlu0 %1036 }
  0xfc   : > { %1114 = vst.msk [vmem:[#allocation4 + $0x34] sm:$0xf] %vm1100_vm4, %v1031_v16  ;;  %1117 = vst.msk [vmem:[#allocation4 + $0x40] sm:$0xf] %vm1100_vm4, %v1037_v27  ;;  %v1647_v16 = vld [vmem:[#allocation2 + $0x1a] sm:$0xff]  ;;  %v7505_v27 = vpack.c.bf16 %v1648_v10, %v1648_v10 }
  0xfd   : > { %1532 = vrot.lane.b32.xlu1 %v9001_v11, %s8426_s21  ;;  %1538 = vrot.lane.b32.xlu0 %v9006_v20, %s8426_s21 }
  0xff   : > { %v1035_v32 = vpop.permute.xlu1 %1034  ;;  %v1041_v39 = vpop.permute.xlu0 %1040 }
 0x100   : > { %1116 = vst.msk [vmem:[#allocation4 + $0x3c] sm:$0xf] %vm1100_vm4, %v1035_v32  ;;  %1119 = vst.msk [vmem:[#allocation4 + $0x48] sm:$0xf] %vm1100_vm4, %v1041_v39  ;;  %v7504_v32 = vpack.c.bf16 %v1647_v16, %v1647_v16 }
 0x101   : > { %1536 = vrot.lane.b32.xlu1 %v9011_v30, %s8426_s21  ;;  %1542 = vrot.lane.b32.xlu0 %v9016_v37, %s8426_s21 }
 0x103   : > { %v1039_v46 = vpop.permute.xlu1 %1038  ;;  %v1045_v53 = vpop.permute.xlu0 %1044 }
 0x104   : > { %1118 = vst.msk [vmem:[#allocation4 + $0x44] sm:$0xf] %vm1100_vm4, %v1039_v46  ;;  %1121 = vst.msk [vmem:[#allocation4 + $0x50] sm:$0xf] %vm1100_vm4, %v1045_v53  ;;  %v7506_v46 = vpack.c.bf16 %v1649_v38, %v1649_v38 }
 0x105   : > { %1540 = vrot.lane.b32.xlu1 %v9021_v44, %s8426_s21  ;;  %1546 = vrot.lane.b32.xlu0 %v9026_v51, %s8426_s21 }
 0x107   : > { %v1043_v1 = vpop.permute.xlu1 %1042  ;;  %v1049_v33 = vpop.permute.xlu0 %1048 }
 0x108   : > { %1120 = vst.msk [vmem:[#allocation4 + $0x4c] sm:$0xf] %vm1100_vm4, %v1043_v1  ;;  %1123 = vst.msk [vmem:[#allocation4 + $0x58] sm:$0xf] %vm1100_vm4, %v1049_v33  ;;  %v8257_v33 = vld [vmem:[%s10946_s1 + $0x8] sm:$0xff]  }
 0x109   : > { %1544 = vrot.lane.b32.xlu1 %v9031_v57, %s8426_s21  ;;  %1550 = vrot.lane.b32.xlu0 %v9036_v29, %s8426_s21 }
 0x10b   : > { %v1047_v36 = vpop.permute.xlu1 %1046  ;;  %v1053_v22 = vpop.permute.xlu0 %1052 }
 0x10c   : > { %1122 = vst.msk [vmem:[#allocation4 + $0x54] sm:$0xf] %vm1100_vm4, %v1047_v36  ;;  %1125 = vst.msk [vmem:[#allocation4 + $0x60] sm:$0xf] %vm1100_vm4, %v1053_v22  ;;  %v2422_v22 = vld [vmem:[#allocation2 + $0x52] sm:$0xff] }
 0x10d   : > { %1548 = vrot.lane.b32.xlu1 %v9041_v12, %s8426_s21  ;;  %1554 = vrot.lane.b32.xlu0 %v9046_v14, %s8426_s21 }
 0x10f   : > { %v1051_v26 = vpop.permute.xlu1 %1050  ;;  %v1057_v49 = vpop.permute.xlu0 %1056 }
 0x110   : > { %1124 = vst.msk [vmem:[#allocation4 + $0x5c] sm:$0xf] %vm1100_vm4, %v1051_v26  ;;  %1127 = vst.msk [vmem:[#allocation4 + $0x68] sm:$0xf] %vm1100_vm4, %v1057_v49  ;;  %v7603_v26 = vpack.c.bf16 %v2422_v22, %v2422_v22  ;;  %v7602_v49 = vpack.c.bf16 %v2421_v42, %v2421_v42 }
 0x111   : > { %1552 = vrot.lane.b32.xlu1 %v9051_v41, %s8426_s21  ;;  %1558 = vrot.lane.b32.xlu0 %v9056_v47, %s8426_s21 }
 0x113   : > { %v1055_v55 = vpop.permute.xlu1 %1054  ;;  %v1061_v61 = vpop.permute.xlu0 %1060 }
 0x114   : > { %1126 = vst.msk [vmem:[#allocation4 + $0x64] sm:$0xf] %vm1100_vm4, %v1055_v55  ;;  %1129 = vst.msk [vmem:[#allocation4 + $0x70] sm:$0xf] %vm1100_vm4, %v1061_v61  ;;  %v7511_v61 = vpack.c.bf16 %v1654_v50, %v1654_v50 }
 0x115   : > { %1556 = vrot.lane.b32.xlu1 %v9061_v35, %s8426_s21  ;;  %1562 = vrot.lane.b32.xlu0 %v7494_v56, %s8426_s21  ;;  %v1653_v56 = vld [vmem:[#allocation2 + $0x62] sm:$0xff] }
 0x117   : > { %v1059_v6 = vpop.permute.xlu1 %1058  ;;  %v1065_v9 = vpop.permute.xlu0 %1064 }
 0x118   : > { %1128 = vst.msk [vmem:[#allocation4 + $0x6c] sm:$0xf] %vm1100_vm4, %v1059_v6  ;;  %1131 = vst.msk [vmem:[#allocation4 + $0x78] sm:$0xf] %vm1100_vm4, %v1065_v9  ;;  %v7510_v6 = vpack.c.bf16 %v1653_v56, %v1653_v56 }
 0x119   : > { %1560 = vrot.lane.b32.xlu1 %v9069_v63, %s8426_s21  ;;  %1566 = vrot.lane.b32.xlu0 %v7496_v4, %s8426_s21 }
 0x11b   : > { %v1063_v21 = vpop.permute.xlu1 %1062  ;;  %v1262_v28 = vpop.permute.xlu0 %1261 }
 0x11c   : > { %1130 = vst.msk [vmem:[#allocation4 + $0x74] sm:$0xf] %vm1100_vm4, %v1063_v21 }
 0x11d   : > { %1564 = vrot.lane.b32.xlu1 %v7495_v15, %s8426_s21  ;;  %1358 = vst.msk [vmem:[#allocation4] sm:$0xf] %vm1357_vm5, %v1262_v28  ;;  %1777 = vrot.lane.b32.xlu0 %v7505_v27, %s8427_s22 }
 0x11f   : > { %v1067_v39 = vpop.permute.xlu1 %1066  ;;  %v1266_v45 = vpop.permute.xlu0 %1265 }
 0x120   : > { %1132 = vst.msk [vmem:[#allocation4 + $0x7c] sm:$0xf] %vm1100_vm4, %v1067_v39 }
 0x121   : > { %1775 = vrot.lane.b32.xlu1 %v7504_v32, %s8427_s22  ;;  %1360 = vst.msk [vmem:[#allocation4 + $0x8] sm:$0xf] %vm1357_vm5, %v1266_v45  ;;  %1781 = vrot.lane.b32.xlu0 %v8840_v19, %s8427_s22  ;;  %v1657_v45 = vld [vmem:[#allocation2 + $0x92] sm:$0xff] }
 0x123   : > { %v1264_v52 = vpop.permute.xlu1 %1263  ;;  %v1270_v53 = vpop.permute.xlu0 %1269 }
 0x124   : > { %1359 = vst.msk [vmem:[#allocation4 + $0x4] sm:$0xf] %vm1357_vm5, %v1264_v52  ;;  %1362 = vst.msk [vmem:[#allocation4 + $0x10] sm:$0xf] %vm1357_vm5, %v1270_v53  ;;  %v1914_v53 = vld [vmem:[#allocation2 + $0x98] sm:$0xff] }
 0x125   : > { %1779 = vrot.lane.b32.xlu1 %v7506_v46, %s8427_s22  ;;  %2035 = vrot.lane.b32.xlu0 %v8703_v17, %s8428_s23 }
 0x127   : > { %v1268_v58 = vpop.permute.xlu1 %1267  ;;  %v1274_v1 = vpop.permute.xlu0 %1273 }
 0x128   : > { %1361 = vst.msk [vmem:[#allocation4 + $0xc] sm:$0xf] %vm1357_vm5, %v1268_v58  ;;  %1364 = vst.msk [vmem:[#allocation4 + $0x18] sm:$0xf] %vm1357_vm5, %v1274_v1  ;;  %v7514_v1 = vpack.c.bf16 %v1657_v45, %v1657_v45 }
 0x129   : > { %2033 = vrot.lane.b32.xlu1 %v8685_v8, %s8428_s23  ;;  %2039 = vrot.lane.b32.xlu0 %v8710_v23, %s8428_s23  ;;  %v2866_v8 = vsel %vm2864_vm6, %v8256_v2, 0 }
 0x12a   : > { %8088 = vmatpush3.bf16.msra.mxu0 %v2866_v8  ;;  %8198 = vmatpush3.bf16.msra.mxu1 %v2866_v8  ;;  %v1916_v8 = vld [vmem:[#allocation2 + $0xb0] sm:$0xff] }
 0x12b   : > { %v1272_v19 = vpop.permute.xlu1 %1271  ;;  %v1278_v17 = vpop.permute.xlu0 %1277  ;;  %8089 = vmatprep.subr.bf16.mxu0 %v8257_v33  ;;  %8196 = vmatprep.subr.bf16.mxu1 %v8257_v33 }
 0x12c   : > { %1363 = vst.msk [vmem:[#allocation4 + $0x14] sm:$0xf] %vm1357_vm5, %v1272_v19  ;;  %1366 = vst.msk [vmem:[#allocation4 + $0x20] sm:$0xf] %vm1357_vm5, %v1278_v17  ;;  %v1913_v19 = vld [vmem:[#allocation2 + $0x90] sm:$0xff]  ;;  %v7545_v17 = vpack.c.bf16 %v1914_v53, %v1914_v53 }
 0x12d   : > { %2037 = vrot.lane.b32.xlu1 %v8695_v13, %s8428_s23  ;;  %2292 = vrot.lane.b32.xlu0 %v8981_v59, %s8429_s9  ;;  %v2420_v13 = vld [vmem:[#allocation2 + $0x3a] sm:$0xff] }
 0x12e   : > { %8090 = vmatpush3.bf16.msra.mxu0 %v8257_v33  ;;  %v7601_v59 = vpack.c.bf16 %v2420_v13, %v2420_v13  ;;  %8199 = vmatpush3.bf16.msra.mxu1 %v8257_v33  ;;  %v7544_v33 = vpack.c.bf16 %v1913_v19, %v1913_v19  ;;  %v1915_v13 = vld [vmem:[#allocation2 + $0xa8] sm:$0xff] }
 0x12f   : > { %v1276_v23 = vpop.permute.xlu1 %1275  ;;  %v1282_v34 = vpop.permute.xlu0 %1281  ;;  %8091 = vmatprep.subr.bf16.mxu0 %v8258_v40  ;;  %8197 = vmatprep.subr.bf16.mxu1 %v8258_v40 }
 0x130   : > { %1365 = vst.msk [vmem:[#allocation4 + $0x1c] sm:$0xf] %vm1357_vm5, %v1276_v23  ;;  %1368 = vst.msk [vmem:[#allocation4 + $0x28] sm:$0xf] %vm1357_vm5, %v1282_v34 }
 0x131   : > { %2290 = vrot.lane.b32.xlu1 %v8970_v43, %s8429_s9  ;;  %2296 = vrot.lane.b32.xlu0 %v8991_v5, %s8429_s9 }
 0x132   : > { %8092 = vmatpush3.bf16.msra.mxu0 %v8258_v40  ;;  %8200 = vmatpush3.bf16.msra.mxu1 %v8258_v40  ;;  %v7546_v40 = vpack.c.bf16 %v1915_v13, %v1915_v13 }
 0x133   : > { %v1280_v36 = vpop.permute.xlu1 %1279  ;;  %v1286_v43 = vpop.permute.xlu0 %1285 }
 0x134   : > { %1367 = vst.msk [vmem:[#allocation4 + $0x24] sm:$0xf] %vm1357_vm5, %v1280_v36  ;;  %1370 = vst.msk [vmem:[#allocation4 + $0x30] sm:$0xf] %vm1357_vm5, %v1286_v43  ;;  %v7547_v36 = vpack.c.bf16 %v1916_v8, %v1916_v8 }
 0x135   : > { %2294 = vrot.lane.b32.xlu1 %v8977_v54, %s8429_s9  ;;  %2549 = vrot.lane.b32.xlu0 %v7601_v59, %s8430_s17 }
 0x137   : > { %v1284_v5 = vpop.permute.xlu1 %1283  ;;  %v1290_v48 = vpop.permute.xlu0 %1289 }
 0x138   : > { %1369 = vst.msk [vmem:[#allocation4 + $0x2c] sm:$0xf] %vm1357_vm5, %v1284_v5  ;;  %1372 = vst.msk [vmem:[#allocation4 + $0x38] sm:$0xf] %vm1357_vm5, %v1290_v48  ;;  %v2430_v48 = vld [vmem:[#allocation2 + $0xb2] sm:$0xff] }
 0x139   : > { %2547 = vrot.lane.b32.xlu1 %v7506_v46, %s8430_s17  ;;  %2553 = vrot.lane.b32.xlu0 %v7603_v26, %s8430_s17 }
 0x13b   : > { %v1288_v54 = vpop.permute.xlu1 %1287  ;;  %v1294_v55 = vpop.permute.xlu0 %1293 }
 0x13c   : > { %1371 = vst.msk [vmem:[#allocation4 + $0x34] sm:$0xf] %vm1357_vm5, %v1288_v54  ;;  %1374 = vst.msk [vmem:[#allocation4 + $0x40] sm:$0xf] %vm1357_vm5, %v1294_v55 }
 0x13d   : > { %2551 = vrot.lane.b32.xlu1 %v7602_v49, %s8430_s17  ;;  %1785 = vrot.lane.b32.xlu0 %v7603_v26, %s8427_s22 }
 0x13f   : > { %v1292_v60 = vpop.permute.xlu1 %1291  ;;  %v1298_v3 = vpop.permute.xlu0 %1297 }
 0x140   : > { %1373 = vst.msk [vmem:[#allocation4 + $0x3c] sm:$0xf] %vm1357_vm5, %v1292_v60  ;;  %1376 = vst.msk [vmem:[#allocation4 + $0x48] sm:$0xf] %vm1357_vm5, %v1298_v3  ;;  %v1661_v60 = vld [vmem:[#allocation2 + $0xc2] sm:$0xff] }
 0x141   : > { %1783 = vrot.lane.b32.xlu1 %v7602_v49, %s8427_s22  ;;  %1789 = vrot.lane.b32.xlu0 %v7511_v61, %s8427_s22 }
 0x143   : > { %v1296_v4 = vpop.permute.xlu1 %1295  ;;  %v1302_v10 = vpop.permute.xlu0 %1301 }
 0x144   : > { %1375 = vst.msk [vmem:[#allocation4 + $0x44] sm:$0xf] %vm1357_vm5, %v1296_v4  ;;  %1378 = vst.msk [vmem:[#allocation4 + $0x50] sm:$0xf] %vm1357_vm5, %v1302_v10  ;;  %v7518_v10 = vpack.c.bf16 %v1661_v60, %v1661_v60 }
 0x145   : > { %1787 = vrot.lane.b32.xlu1 %v7510_v6, %s8427_s22  ;;  %2043 = vrot.lane.b32.xlu0 %v8714_v25, %s8428_s23 }
 0x147   : > { %v1300_v9 = vpop.permute.xlu1 %1299  ;;  %v1306_v15 = vpop.permute.xlu0 %1305 }
 0x148   : > { %1377 = vst.msk [vmem:[#allocation4 + $0x4c] sm:$0xf] %vm1357_vm5, %v1300_v9  ;;  %1380 = vst.msk [vmem:[#allocation4 + $0x58] sm:$0xf] %vm1357_vm5, %v1306_v15  ;;  %v1917_v9 = vld [vmem:[#allocation2 + $0xc0] sm:$0xff] }
 0x149   : > { %2041 = vrot.lane.b32.xlu1 %v8705_v18, %s8428_s23  ;;  %2047 = vrot.lane.b32.xlu0 %v8722_v31, %s8428_s23 }
 0x14b   : > { %v1304_v16 = vpop.permute.xlu1 %1303  ;;  %v1310_v21 = vpop.permute.xlu0 %1309 }
 0x14c   : > { %1379 = vst.msk [vmem:[#allocation4 + $0x54] sm:$0xf] %vm1357_vm5, %v1304_v16  ;;  %1382 = vst.msk [vmem:[#allocation4 + $0x60] sm:$0xf] %vm1357_vm5, %v1310_v21  ;;  %v1920_v21 = vld [vmem:[#allocation2 + $0xe0] sm:$0xff] }
 0x14d   : > { %2045 = vrot.lane.b32.xlu1 %v8712_v24, %s8428_s23  ;;  %2300 = vrot.lane.b32.xlu0 %v9001_v11, %s8429_s9  ;;  %v2426_v24 = vld [vmem:[#allocation2 + $0x82] sm:$0xff]  ;;  %v2425_v11 = vld [vmem:[#allocation2 + $0x7a] sm:$0xff] }
 0x14f   : > { %v1308_v25 = vpop.permute.xlu1 %1307  ;;  %v1314_v18 = vpop.permute.xlu0 %1313 }
 0x150   : > { %1381 = vst.msk [vmem:[#allocation4 + $0x5c] sm:$0xf] %vm1357_vm5, %v1308_v25  ;;  %1384 = vst.msk [vmem:[#allocation4 + $0x68] sm:$0xf] %vm1357_vm5, %v1314_v18  ;;  %v7548_v18 = vpack.c.bf16 %v1917_v9, %v1917_v9  ;;  %v1926_v9 = vld [vmem:[#allocation2 + $0x128] sm:$0xff] }
 0x151   : > { %2298 = vrot.lane.b32.xlu1 %v8986_v62, %s8429_s9  ;;  %2304 = vrot.lane.b32.xlu0 %v9011_v30, %s8429_s9  ;;  %v7607_v62 = vpack.c.bf16 %v2426_v24, %v2426_v24  ;;  %v7606_v30 = vpack.c.bf16 %v2425_v11, %v2425_v11 }
 0x153   : > { %v1312_v31 = vpop.permute.xlu1 %1311  ;;  %v1318_v27 = vpop.permute.xlu0 %1317 }
 0x154   : > { %1383 = vst.msk [vmem:[#allocation4 + $0x64] sm:$0xf] %vm1357_vm5, %v1312_v31  ;;  %1386 = vst.msk [vmem:[#allocation4 + $0x70] sm:$0xf] %vm1357_vm5, %v1318_v27  ;;  %v1919_v31 = vld [vmem:[#allocation2 + $0xd8] sm:$0xff]  ;;  %v7551_v27 = vpack.c.bf16 %v1920_v21, %v1920_v21  ;;  %v1925_v21 = vld [vmem:[#allocation2 + $0x120] sm:$0xff] }
 0x155   : > { %2302 = vrot.lane.b32.xlu1 %v8996_v7, %s8429_s9  ;;  %2557 = vrot.lane.b32.xlu0 %v7511_v61, %s8430_s17  ;;  %v1658_v7 = vld [vmem:[#allocation2 + $0x9a] sm:$0xff] }
 0x156   : > { %v7515_v52 = vpack.c.bf16 %v1658_v7, %v1658_v7 }
 0x157   : > { %v1316_v28 = vpop.permute.xlu1 %1315  ;;  %v1322_v32 = vpop.permute.xlu0 %1321 }
 0x158   : > { %1385 = vst.msk [vmem:[#allocation4 + $0x6c] sm:$0xf] %vm1357_vm5, %v1316_v28  ;;  %1388 = vst.msk [vmem:[#allocation4 + $0x78] sm:$0xf] %vm1357_vm5, %v1322_v32  ;;  %v7550_v28 = vpack.c.bf16 %v1919_v31, %v1919_v31  ;;  %v1928_v31 = vld [vmem:[#allocation2 + $0x140] sm:$0xff] }
 0x159   : > { %2555 = vrot.lane.b32.xlu1 %v7510_v6, %s8430_s17  ;;  %2561 = vrot.lane.b32.xlu0 %v7607_v62, %s8430_s17  ;;  %v1918_v6 = vld [vmem:[#allocation2 + $0xc8] sm:$0xff] }
 0x15a   : > { %v7549_v16 = vpack.c.bf16 %v1918_v6, %v1918_v6  ;;  %v1669_v6 = vld [vmem:[#allocation2 + $0x122] sm:$0xff] }
 0x15b   : > { %v1320_v38 = vpop.permute.xlu1 %1319  ;;  %v1519_v39 = vpop.permute.xlu0 %1518 }
 0x15c   : > { %1387 = vst.msk [vmem:[#allocation4 + $0x74] sm:$0xf] %vm1357_vm5, %v1320_v38 }
 0x15d   : > { %2559 = vrot.lane.b32.xlu1 %v7606_v30, %s8430_s17  ;;  %1615 = vst.msk [vmem:[#allocation4] sm:$0xf] %vm1614_vm7, %v1519_v39  ;;  %1793 = vrot.lane.b32.xlu0 %v7607_v62, %s8427_s22  ;;  %v2434_v39 = vld [vmem:[#allocation2 + $0xe2] sm:$0xff] }
 0x15f   : > { %v1324_v46 = vpop.permute.xlu1 %1323  ;;  %v1523_v58 = vpop.permute.xlu0 %1522 }
 0x160   : > { %1389 = vst.msk [vmem:[#allocation4 + $0x7c] sm:$0xf] %vm1357_vm5, %v1324_v46 }
 0x161   : > { %1791 = vrot.lane.b32.xlu1 %v7606_v30, %s8427_s22  ;;  %1617 = vst.msk [vmem:[#allocation4 + $0x8] sm:$0xf] %vm1614_vm7, %v1523_v58  ;;  %1797 = vrot.lane.b32.xlu0 %v7515_v52, %s8427_s22 }
 0x163   : > { %v1521_v2 = vpop.permute.xlu1 %1520  ;;  %v1527_v23 = vpop.permute.xlu0 %1526 }
 0x164   : > { %1616 = vst.msk [vmem:[#allocation4 + $0x4] sm:$0xf] %vm1614_vm7, %v1521_v2  ;;  %1619 = vst.msk [vmem:[#allocation4 + $0x10] sm:$0xf] %vm1614_vm7, %v1527_v23 }
 0x165   : > { %1795 = vrot.lane.b32.xlu1 %v7514_v1, %s8427_s22  ;;  %2051 = vrot.lane.b32.xlu0 %v7545_v17, %s8428_s23  ;;  %v1922_v17 = vld [vmem:[#allocation2 + $0xf8] sm:$0xff] }
 0x167   : > { %v1525_v34 = vpop.permute.xlu1 %1524  ;;  %v1531_v59 = vpop.permute.xlu0 %1530 }
 0x168   : > { %1618 = vst.msk [vmem:[#allocation4 + $0xc] sm:$0xf] %vm1614_vm7, %v1525_v34  ;;  %1621 = vst.msk [vmem:[#allocation4 + $0x18] sm:$0xf] %vm1614_vm7, %v1531_v59  ;;  %v7553_v34 = vpack.c.bf16 %v1922_v17, %v1922_v17 }
 0x169   : > { %2049 = vrot.lane.b32.xlu1 %v7544_v33, %s8428_s23  ;;  %2055 = vrot.lane.b32.xlu0 %v7547_v36, %s8428_s23  ;;  %v1921_v33 = vld [vmem:[#allocation2 + $0xf0] sm:$0xff] }
 0x16a   : > { %v1924_v36 = vld [vmem:[#allocation2 + $0x110] sm:$0xff] }
 0x16b   : > { %v1529_v22 = vpop.permute.xlu1 %1528  ;;  %v1535_v43 = vpop.permute.xlu0 %1534 }
 0x16c   : > { %1620 = vst.msk [vmem:[#allocation4 + $0x14] sm:$0xf] %vm1614_vm7, %v1529_v22  ;;  %1623 = vst.msk [vmem:[#allocation4 + $0x20] sm:$0xf] %vm1614_vm7, %v1535_v43  ;;  %v1923_v22 = vld [vmem:[#allocation2 + $0x108] sm:$0xff] }
 0x16d   : > { %2053 = vrot.lane.b32.xlu1 %v7546_v40, %s8428_s23  ;;  %2308 = vrot.lane.b32.xlu0 %v9021_v44, %s8429_s9  ;;  %v2429_v44 = vld [vmem:[#allocation2 + $0xaa] sm:$0xff]  ;;  %v7552_v40 = vpack.c.bf16 %v1921_v33, %v1921_v33 }
 0x16f   : > { %v1533_v42 = vpop.permute.xlu1 %1532  ;;  %v1539_v5 = vpop.permute.xlu0 %1538 }
 0x170   : > { %1622 = vst.msk [vmem:[#allocation4 + $0x1c] sm:$0xf] %vm1614_vm7, %v1533_v42  ;;  %1625 = vst.msk [vmem:[#allocation4 + $0x28] sm:$0xf] %vm1614_vm7, %v1539_v5  ;;  %v7555_v42 = vpack.c.bf16 %v1924_v36, %v1924_v36 }
 0x171   : > { %2306 = vrot.lane.b32.xlu1 %v9006_v20, %s8429_s9  ;;  %2312 = vrot.lane.b32.xlu0 %v9031_v57, %s8429_s9  ;;  %v7611_v20 = vpack.c.bf16 %v2430_v48, %v2430_v48  ;;  %v7610_v57 = vpack.c.bf16 %v2429_v44, %v2429_v44 }
 0x173   : > { %v1537_v26 = vpop.permute.xlu1 %1536  ;;  %v1543_v49 = vpop.permute.xlu0 %1542 }
 0x174   : > { %1624 = vst.msk [vmem:[#allocation4 + $0x24] sm:$0xf] %vm1614_vm7, %v1537_v26  ;;  %1627 = vst.msk [vmem:[#allocation4 + $0x30] sm:$0xf] %vm1614_vm7, %v1543_v49  ;;  %v7554_v26 = vpack.c.bf16 %v1923_v22, %v1923_v22 }
 0x175   : > { %2310 = vrot.lane.b32.xlu1 %v9016_v37, %s8429_s9  ;;  %2565 = vrot.lane.b32.xlu0 %v7515_v52, %s8430_s17  ;;  %v1662_v37 = vld [vmem:[#allocation2 + $0xca] sm:$0xff] }
 0x176   : > { %v7519_v3 = vpack.c.bf16 %v1662_v37, %v1662_v37 }
 0x177   : > { %v1541_v54 = vpop.permute.xlu1 %1540  ;;  %v1547_v50 = vpop.permute.xlu0 %1546 }
 0x178   : > { %1626 = vst.msk [vmem:[#allocation4 + $0x2c] sm:$0xf] %vm1614_vm7, %v1541_v54  ;;  %1629 = vst.msk [vmem:[#allocation4 + $0x38] sm:$0xf] %vm1614_vm7, %v1547_v50 }
 0x179   : > { %2563 = vrot.lane.b32.xlu1 %v7514_v1, %s8430_s17  ;;  %2569 = vrot.lane.b32.xlu0 %v7611_v20, %s8430_s17  ;;  %v1665_v1 = vld [vmem:[#allocation2 + $0xf2] sm:$0xff] }
 0x17a   : > { %v7522_v23 = vpack.c.bf16 %v1665_v1, %v1665_v1 }
 0x17b   : > { %v1545_v55 = vpop.permute.xlu1 %1544  ;;  %v1551_v56 = vpop.permute.xlu0 %1550 }
 0x17c   : > { %1628 = vst.msk [vmem:[#allocation4 + $0x34] sm:$0xf] %vm1614_vm7, %v1545_v55  ;;  %1631 = vst.msk [vmem:[#allocation4 + $0x40] sm:$0xf] %vm1614_vm7, %v1551_v56 }
 0x17d   : > { %2567 = vrot.lane.b32.xlu1 %v7610_v57, %s8430_s17  ;;  %1801 = vrot.lane.b32.xlu0 %v7611_v20, %s8427_s22 }
 0x17f   : > { %v1549_v61 = vpop.permute.xlu1 %1548  ;;  %v1555_v4 = vpop.permute.xlu0 %1554 }
 0x180   : > { %1630 = vst.msk [vmem:[#allocation4 + $0x3c] sm:$0xf] %vm1614_vm7, %v1549_v61  ;;  %1633 = vst.msk [vmem:[#allocation4 + $0x48] sm:$0xf] %vm1614_vm7, %v1555_v4  ;;  %v1670_v61 = vld [vmem:[#allocation2 + $0x12a] sm:$0xff] }
 0x181   : > { %1799 = vrot.lane.b32.xlu1 %v7610_v57, %s8427_s22  ;;  %1805 = vrot.lane.b32.xlu0 %v7519_v3, %s8427_s22  ;;  %v2438_v57 = vld [vmem:[#allocation2 + $0x112] sm:$0xff] }
 0x182   : > { %v7619_v56 = vpack.c.bf16 %v2438_v57, %v2438_v57  ;;  %v1674_v57 = vld [vmem:[#allocation2 + $0x15a] sm:$0xff] }
 0x183   : > { %v1553_v15 = vpop.permute.xlu1 %1552  ;;  %v1559_v25 = vpop.permute.xlu0 %1558 }
 0x184   : > { %1632 = vst.msk [vmem:[#allocation4 + $0x44] sm:$0xf] %vm1614_vm7, %v1553_v15  ;;  %1635 = vst.msk [vmem:[#allocation4 + $0x50] sm:$0xf] %vm1614_vm7, %v1559_v25 }
 0x185   : > { %1803 = vrot.lane.b32.xlu1 %v7518_v10, %s8427_s22  ;;  %2059 = vrot.lane.b32.xlu0 %v7549_v16, %s8428_s23  ;;  %v7526_v16 = vpack.c.bf16 %v1669_v6, %v1669_v6  ;;  %v1932_v6 = vld [vmem:[#allocation2 + $0x170] sm:$0xff] }
 0x187   : > { %v1557_v24 = vpop.permute.xlu1 %1556  ;;  %v1563_v11 = vpop.permute.xlu0 %1562 }
 0x188   : > { %1634 = vst.msk [vmem:[#allocation4 + $0x4c] sm:$0xf] %vm1614_vm7, %v1557_v24  ;;  %1637 = vst.msk [vmem:[#allocation4 + $0x58] sm:$0xf] %vm1614_vm7, %v1563_v11  ;;  %v1927_v11 = vld [vmem:[#allocation2 + $0x138] sm:$0xff] }
 0x189   : > { %2057 = vrot.lane.b32.xlu1 %v7548_v18, %s8428_s23  ;;  %2063 = vrot.lane.b32.xlu0 %v7551_v27, %s8428_s23  ;;  %v7557_v18 = vpack.c.bf16 %v1926_v9, %v1926_v9  ;;  %v7556_v27 = vpack.c.bf16 %v1925_v21, %v1925_v21 }
 0x18b   : > { %v1561_v62 = vpop.permute.xlu1 %1560  ;;  %v1567_v32 = vpop.permute.xlu0 %1566 }
 0x18c   : > { %1636 = vst.msk [vmem:[#allocation4 + $0x54] sm:$0xf] %vm1614_vm7, %v1561_v62  ;;  %1639 = vst.msk [vmem:[#allocation4 + $0x60] sm:$0xf] %vm1614_vm7, %v1567_v32  ;;  %v7559_v62 = vpack.c.bf16 %v1928_v31, %v1928_v31  ;;  %v2183_v32 = vld [vmem:[#allocation2 + $0x129] sm:$0xff]  ;;  %v2189_v31 = vld [vmem:[#allocation2 + $0x171] sm:$0xff] }
 0x18d   : > { %2061 = vrot.lane.b32.xlu1 %v7550_v28, %s8428_s23  ;;  %2316 = vrot.lane.b32.xlu0 %v9041_v12, %s8429_s9  ;;  %v2433_v12 = vld [vmem:[#allocation2 + $0xda] sm:$0xff] }
 0x18f   : > { %v1565_v30 = vpop.permute.xlu1 %1564  ;;  %v1778_v38 = vpop.permute.xlu0 %1777 }
 0x190   : > { %1638 = vst.msk [vmem:[#allocation4 + $0x5c] sm:$0xf] %vm1614_vm7, %v1565_v30 }
 0x191   : > { %2314 = vrot.lane.b32.xlu1 %v9026_v51, %s8429_s9  ;;  %1873 = vst.msk [vmem:[#allocation4 + $0x4] sm:$0xf] %vm1871_vm8, %v1778_v38  ;;  %2320 = vrot.lane.b32.xlu0 %v9051_v41, %s8429_s9  ;;  %v7615_v51 = vpack.c.bf16 %v2434_v39, %v2434_v39  ;;  %v7614_v41 = vpack.c.bf16 %v2433_v12, %v2433_v12  ;;  %v2185_v12 = vld [vmem:[#allocation2 + $0x141] sm:$0xff] }
 0x192   : > { %v7558_v38 = vpack.c.bf16 %v1927_v11, %v1927_v11  ;;  %v2445_v11 = vld [vmem:[#allocation2 + $0x16a] sm:$0xff] }
 0x193   : > { %v1776_v7 = vpop.permute.xlu1 %1775  ;;  %v1782_v45 = vpop.permute.xlu0 %1781 }
 0x194   : > { %1872 = vst.msk [vmem:[#allocation4] sm:$0xf] %vm1871_vm8, %v1776_v7  ;;  %1875 = vst.msk [vmem:[#allocation4 + $0xc] sm:$0xf] %vm1871_vm8, %v1782_v45  ;;  %v2182_v7 = vld [vmem:[#allocation2 + $0x121] sm:$0xff]  ;;  %v7589_v45 = vpack.c.bf16 %v2183_v32, %v2183_v32 }
 0x195   : > { %2318 = vrot.lane.b32.xlu1 %v9036_v29, %s8429_s9  ;;  %2573 = vrot.lane.b32.xlu0 %v7519_v3, %s8430_s17  ;;  %v1666_v29 = vld [vmem:[#allocation2 + $0xfa] sm:$0xff] }
 0x196   : > { %v7523_v2 = vpack.c.bf16 %v1666_v29, %v1666_v29 }
 0x197   : > { %v1780_v46 = vpop.permute.xlu1 %1779  ;;  %v2036_v52 = vpop.permute.xlu0 %2035 }
 0x198   : > { %1874 = vst.msk [vmem:[#allocation4 + $0x8] sm:$0xf] %vm1871_vm8, %v1780_v46 }
 0x199   : > { %2571 = vrot.lane.b32.xlu1 %v7518_v10, %s8430_s17  ;;  %2131 = vst.msk [vmem:[#allocation4 + $0x4] sm:$0xf] %vm2129_vm9, %v2036_v52  ;;  %2577 = vrot.lane.b32.xlu0 %v7615_v51, %s8430_s17  ;;  %v7527_v10 = vpack.c.bf16 %v1670_v61, %v1670_v61  ;;  %v2184_v52 = vld [vmem:[#allocation2 + $0x139] sm:$0xff] }
 0x19b   : > { %v2034_v53 = vpop.permute.xlu1 %2033  ;;  %v2040_v58 = vpop.permute.xlu0 %2039 }
 0x19c   : > { %2130 = vst.msk [vmem:[#allocation4] sm:$0xf] %vm2129_vm9, %v2034_v53  ;;  %2133 = vst.msk [vmem:[#allocation4 + $0xc] sm:$0xf] %vm2129_vm9, %v2040_v58  ;;  %v7591_v53 = vpack.c.bf16 %v2185_v12, %v2185_v12  ;;  %v7590_v58 = vpack.c.bf16 %v2184_v52, %v2184_v52 }
 0x19d   : > { %2575 = vrot.lane.b32.xlu1 %v7614_v41, %s8430_s17  ;;  %1809 = vrot.lane.b32.xlu0 %v7615_v51, %s8427_s22  ;;  %v7588_v51 = vpack.c.bf16 %v2182_v7, %v2182_v7  ;;  %v2446_v7 = vld [vmem:[#allocation2 + $0x172] sm:$0xff] }
 0x19f   : > { %v2038_v19 = vpop.permute.xlu1 %2037  ;;  %v2293_v8 = vpop.permute.xlu0 %2292 }
 0x1a0   : > { %2132 = vst.msk [vmem:[#allocation4 + $0x8] sm:$0xf] %vm2129_vm9, %v2038_v19 }
 0x1a1   : > { %1807 = vrot.lane.b32.xlu1 %v7614_v41, %s8427_s22  ;;  %2388 = vst.msk [vmem:[#allocation4 + $0x4] sm:$0xf] %vm2386_vm10, %v2293_v8  ;;  %1813 = vrot.lane.b32.xlu0 %v7523_v2, %s8427_s22  ;;  %v2441_v8 = vld [vmem:[#allocation2 + $0x13a] sm:$0xff] }
 0x1a3   : > { %v2291_v13 = vpop.permute.xlu1 %2290  ;;  %v2297_v59 = vpop.permute.xlu0 %2296 }
 0x1a4   : > { %2387 = vst.msk [vmem:[#allocation4] sm:$0xf] %vm2386_vm10, %v2291_v13  ;;  %2390 = vst.msk [vmem:[#allocation4 + $0xc] sm:$0xf] %vm2386_vm10, %v2297_v59  ;;  %v7622_v59 = vpack.c.bf16 %v2441_v8, %v2441_v8 }
 0x1a5   : > { %1811 = vrot.lane.b32.xlu1 %v7522_v23, %s8427_s22  ;;  %2067 = vrot.lane.b32.xlu0 %v7553_v34, %s8428_s23  ;;  %v1416_v34 = vld [vmem:[#allocation2 + $0x151] sm:$0xff] }
 0x1a6   : > { %v7498_v22 = vpack.c.bf16 %v1416_v34, %v1416_v34  ;;  %v1935_v34 = vld [vmem:[#allocation2 + $0x198] sm:$0xff] }
 0x1a7   : > { %v2295_v43 = vpop.permute.xlu1 %2294  ;;  %v2550_v5 = vpop.permute.xlu0 %2549 }
 0x1a8   : > { %2389 = vst.msk [vmem:[#allocation4 + $0x8] sm:$0xf] %vm2386_vm10, %v2295_v43 }
 0x1a9   : > { %2065 = vrot.lane.b32.xlu1 %v7552_v40, %s8428_s23  ;;  %2645 = vst.msk [vmem:[#allocation4 + $0x4] sm:$0xf] %vm2643_vm11, %v2550_v5  ;;  %2071 = vrot.lane.b32.xlu0 %v7555_v42, %s8428_s23  ;;  %v1417_v42 = vld [vmem:[#allocation2 + $0x159] sm:$0xff] }
 0x1ab   : > { %v2548_v48 = vpop.permute.xlu1 %2547  ;;  %v2554_v49 = vpop.permute.xlu0 %2553 }
 0x1ac   : > { %2644 = vst.msk [vmem:[#allocation4] sm:$0xf] %vm2643_vm11, %v2548_v48  ;;  %2647 = vst.msk [vmem:[#allocation4 + $0xc] sm:$0xf] %vm2643_vm11, %v2554_v49  ;;  %v7499_v49 = vpack.c.bf16 %v1417_v42, %v1417_v42  ;;  %v7566_v42 = vpack.c.bf16 %v1935_v34, %v1935_v34 }
 0x1ad   : > { %2069 = vrot.lane.b32.xlu1 %v7554_v26, %s8428_s23  ;;  %2324 = vrot.lane.b32.xlu0 %v9061_v35, %s8429_s9  ;;  %v1673_v26 = vld [vmem:[#allocation2 + $0x152] sm:$0xff] }
 0x1af   : > { %v2552_v44 = vpop.permute.xlu1 %2551  ;;  %v1786_v54 = vpop.permute.xlu0 %1785 }
 0x1b0   : > { %2646 = vst.msk [vmem:[#allocation4 + $0x8] sm:$0xf] %vm2643_vm11, %v2552_v44 }
 0x1b1   : > { %2322 = vrot.lane.b32.xlu1 %v9046_v14, %s8429_s9  ;;  %1877 = vst.msk [vmem:[#allocation4 + $0x14] sm:$0xf] %vm1871_vm8, %v1786_v54  ;;  %2328 = vrot.lane.b32.xlu0 %v9069_v63, %s8429_s9  ;;  %v2437_v14 = vld [vmem:[#allocation2 + $0x10a] sm:$0xff]  ;;  %v7530_v54 = vpack.c.bf16 %v1673_v26, %v1673_v26 }
 0x1b2   : > { %v7618_v60 = vpack.c.bf16 %v2437_v14, %v2437_v14 }
 0x1b3   : > { %v1784_v20 = vpop.permute.xlu1 %1783  ;;  %v8259_v50 = vld [vmem:[#allocation4] sm:$0xff]   ;;  %v1790_v35 = vpop.permute.xlu0 %1789 }
 0x1b4   : > { %1876 = vst.msk [vmem:[#allocation4 + $0x10] sm:$0xf] %vm1871_vm8, %v1784_v20  ;;  %8093 = vmatprep.mubr.msk.bf16.mxu0 %vm2815_vm12, %v8259_v50  ;;  %1879 = vst.msk [vmem:[#allocation4 + $0x1c] sm:$0xf] %vm1871_vm8, %v1790_v35  ;;  %v1929_v20 = vld [vmem:[#allocation2 + $0x150] sm:$0xff] }
 0x1b5   : > { %2326 = vrot.lane.b32.xlu1 %v9056_v47, %s8429_s9  ;;  %2581 = vrot.lane.b32.xlu0 %v7523_v2, %s8430_s17  ;;  %v2442_v2 = vld [vmem:[#allocation2 + $0x142] sm:$0xff]  ;;  %v7560_v14 = vpack.c.bf16 %v1929_v20, %v1929_v20 }
 0x1b6   : > { %v7623_v13 = vpack.c.bf16 %v2442_v2, %v2442_v2 }
 0x1b7   : > { %v1788_v55 = vpop.permute.xlu1 %1787  ;;  %v8260_v37 = vld [vmem:[#allocation4 + $0x8] sm:$0xff]   ;;  %v2044_v63 = vpop.permute.xlu0 %2043 }
 0x1b8   : > { %1878 = vst.msk [vmem:[#allocation4 + $0x18] sm:$0xf] %vm1871_vm8, %v1788_v55  ;;  %8094 = vmatmul.mubr.msk.bf16.vlgmr.msra.gmra.mxu0 %vm2815_vm12, %v8260_v37  ;;  %v1931_v55 = vld [vmem:[#allocation2 + $0x168] sm:$0xff] }
 0x1b9   : > { %2579 = vrot.lane.b32.xlu1 %v7522_v23, %s8430_s17  ;;  %2135 = vst.msk [vmem:[#allocation4 + $0x14] sm:$0xf] %vm2129_vm9, %v2044_v63  ;;  %2585 = vrot.lane.b32.xlu0 %v7619_v56, %s8430_s17  ;;  %v1930_v63 = vld [vmem:[#allocation2 + $0x158] sm:$0xff] }
 0x1bb   : > { %v2042_v47 = vpop.permute.xlu1 %2041  ;;  %v2048_v3 = vpop.permute.xlu0 %2047 }
 0x1bc   : > { %2134 = vst.msk [vmem:[#allocation4 + $0x10] sm:$0xf] %vm2129_vm9, %v2042_v47  ;;  %2137 = vst.msk [vmem:[#allocation4 + $0x1c] sm:$0xf] %vm2129_vm9, %v2048_v3  ;;  %v7562_v47 = vpack.c.bf16 %v1931_v55, %v1931_v55  ;;  %v7561_v3 = vpack.c.bf16 %v1930_v63, %v1930_v63  ;;  %v2193_v55 = vld [vmem:[#allocation2 + $0x1a1] sm:$0xff] }
 0x1bd   : > { %2583 = vrot.lane.b32.xlu1 %v7618_v60, %s8430_s17  ;;  %1817 = vrot.lane.b32.xlu0 %v7619_v56, %s8427_s22  ;;  %v9341_v56 = vpack.c.bf16 %v1674_v57, %v1674_v57 }
 0x1bf   : > { %v2046_v4 = vpop.permute.xlu1 %2045  ;;  %v2301_v15 = vpop.permute.xlu0 %2300 }
 0x1c0   : > { %2136 = vst.msk [vmem:[#allocation4 + $0x18] sm:$0xf] %vm2129_vm9, %v2046_v4 }
 0x1c1   : > { %1815 = vrot.lane.b32.xlu1 %v7618_v60, %s8427_s22  ;;  %2392 = vst.msk [vmem:[#allocation4 + $0x14] sm:$0xf] %vm2386_vm10, %v2301_v15  ;;  %1821 = vrot.lane.b32.xlu0 %v7527_v10, %s8427_s22  ;;  %v7563_v15 = vpack.c.bf16 %v1932_v6, %v1932_v6 }
 0x1c3   : > { %v2299_v25 = vpop.permute.xlu1 %2298  ;;  %v2305_v24 = vpop.permute.xlu0 %2304 }
 0x1c4   : > { %2391 = vst.msk [vmem:[#allocation4 + $0x10] sm:$0xf] %vm2386_vm10, %v2299_v25  ;;  %2394 = vst.msk [vmem:[#allocation4 + $0x1c] sm:$0xf] %vm2386_vm10, %v2305_v24 }
 0x1c5   : > { %1819 = vrot.lane.b32.xlu1 %v7526_v16, %s8427_s22  ;;  %2075 = vrot.lane.b32.xlu0 %v7557_v18, %s8428_s23 }
 0x1c7   : > { %v2303_v28 = vpop.permute.xlu1 %2302  ;;  %v2558_v30 = vpop.permute.xlu0 %2557 }
 0x1c8   : > { %2393 = vst.msk [vmem:[#allocation4 + $0x18] sm:$0xf] %vm2386_vm10, %v2303_v28 }
 0x1c9   : > { %2073 = vrot.lane.b32.xlu1 %v7556_v27, %s8428_s23  ;;  %2649 = vst.msk [vmem:[#allocation4 + $0x14] sm:$0xf] %vm2643_vm11, %v2558_v30  ;;  %2079 = vrot.lane.b32.xlu0 %v7559_v62, %s8428_s23  ;;  %v9365_v62 = vpack.c.bf16 %v2189_v31, %v2189_v31  ;;  %v9369_v30 = vpack.c.bf16 %v2445_v11, %v2445_v11 }
 0x1cb   : > { %v2556_v39 = vpop.permute.xlu1 %2555  ;;  %v2562_v46 = vpop.permute.xlu0 %2561 }
 0x1cc   : > { %2648 = vst.msk [vmem:[#allocation4 + $0x10] sm:$0xf] %vm2643_vm11, %v2556_v39  ;;  %2651 = vst.msk [vmem:[#allocation4 + $0x1c] sm:$0xf] %vm2643_vm11, %v2562_v46  ;;  %v7627_v46 = vpack.c.bf16 %v2446_v7, %v2446_v7 }
 0x1cd   : > { %2077 = vrot.lane.b32.xlu1 %v7558_v38, %s8428_s23  ;;  %2332 = vrot.lane.b32.xlu0 %v7589_v45, %s8429_s9  ;;  %v1420_v45 = vld [vmem:[#allocation2 + $0x181] sm:$0xff] }
 0x1ce   : > { %v7502_v52 = vpack.c.bf16 %v1420_v45, %v1420_v45 }
 0x1cf   : > { %v2560_v41 = vpop.permute.xlu1 %2559  ;;  %v1794_v29 = vpop.permute.xlu0 %1793 }
 0x1d0   : > { %2650 = vst.msk [vmem:[#allocation4 + $0x18] sm:$0xf] %vm2643_vm11, %v2560_v41  ;;  %v1421_v41 = vld [vmem:[#allocation2 + $0x189] sm:$0xff] }
 0x1d1   : > { %2330 = vrot.lane.b32.xlu1 %v7588_v51, %s8429_s9  ;;  %1881 = vst.msk [vmem:[#allocation4 + $0x24] sm:$0xf] %vm1871_vm8, %v1794_v29  ;;  %2336 = vrot.lane.b32.xlu0 %v7591_v53, %s8429_s9  ;;  %v1677_v29 = vld [vmem:[#allocation2 + $0x182] sm:$0xff] }
 0x1d2   : > { %v7534_v2 = vpack.c.bf16 %v1677_v29, %v1677_v29 }
 0x1d3   : > { %v8261_v1 = vld [vmem:[#allocation4 + $0x10] sm:$0xff]   ;;  %v1792_v19 = vpop.permute.xlu1 %1791  ;;  %v1798_v17 = vpop.permute.xlu0 %1797 }
 0x1d4   : > { %1880 = vst.msk [vmem:[#allocation4 + $0x20] sm:$0xf] %vm1871_vm8, %v1792_v19  ;;  %8097 = vmatprep.mubr.msk.bf16.mxu0 %vm2815_vm12, %v8261_v1  ;;  %1883 = vst.msk [vmem:[#allocation4 + $0x2c] sm:$0xf] %vm1871_vm8, %v1798_v17  ;;  %v7503_v1 = vpack.c.bf16 %v1421_v41, %v1421_v41  ;;  %v1933_v17 = vld [vmem:[#allocation2 + $0x180] sm:$0xff] }
 0x1d5   : > { %2334 = vrot.lane.b32.xlu1 %v7590_v58, %s8429_s9  ;;  %2589 = vrot.lane.b32.xlu0 %v7527_v10, %s8430_s17  ;;  %v2188_v10 = vld [vmem:[#allocation2 + $0x169] sm:$0xff] }
 0x1d6   : > { %v9354_v25 = vpack.c.bf16 %v2188_v10, %v2188_v10 }
 0x1d7   : > { %v8262_v23 = vld [vmem:[#allocation4 + $0x18] sm:$0xff]   ;;  %v1796_v33 = vpop.permute.xlu1 %1795  ;;  %v2052_v36 = vpop.permute.xlu0 %2051 }
 0x1d8   : > { %1882 = vst.msk [vmem:[#allocation4 + $0x28] sm:$0xf] %vm1871_vm8, %v1796_v33  ;;  %8098 = vmatmul.mubr.msk.bf16.gmra.mxu0 %vm2815_vm12, %v8262_v23  ;;  %v1678_v23 = vld [vmem:[#allocation2 + $0x18a] sm:$0xff] }
 0x1d9   : > { %2587 = vrot.lane.b32.xlu1 %v7526_v16, %s8430_s17  ;;  %2139 = vst.msk [vmem:[#allocation4 + $0x24] sm:$0xf] %vm2129_vm9, %v2052_v36  ;;  %2593 = vrot.lane.b32.xlu0 %v7623_v13, %s8430_s17 }
 0x1db   : > { %v2050_v40 = vpop.permute.xlu1 %2049  ;;  %v2056_v43 = vpop.permute.xlu0 %2055 }
 0x1dc   : > { %2138 = vst.msk [vmem:[#allocation4 + $0x20] sm:$0xf] %vm2129_vm9, %v2050_v40  ;;  %2141 = vst.msk [vmem:[#allocation4 + $0x2c] sm:$0xf] %vm2129_vm9, %v2056_v43  ;;  %v1934_v40 = vld [vmem:[#allocation2 + $0x188] sm:$0xff] }
 0x1dd   : > { %2591 = vrot.lane.b32.xlu1 %v7622_v59, %s8430_s17  ;;  %1570 = vrot.lane.b32.xlu0 %v7498_v22, %s8426_s21  ;;  %v7565_v26 = vpack.c.bf16 %v1934_v40, %v1934_v40 }
 0x1df   : > { %v2054_v5 = vpop.permute.xlu1 %2053  ;;  %v2309_v48 = vpop.permute.xlu0 %2308 }
 0x1e0   : > { %2140 = vst.msk [vmem:[#allocation4 + $0x28] sm:$0xf] %vm2129_vm9, %v2054_v5 }
 0x1e1   : > { %1568 = vrot.lane.b32.xlu1 %v7591_v53, %s8426_s21  ;;  %2396 = vst.msk [vmem:[#allocation4 + $0x24] sm:$0xf] %vm2386_vm10, %v2309_v48  ;;  %1823 = vrot.lane.b32.xlu0 %v7622_v59, %s8427_s22  ;;  %v7535_v59 = vpack.c.bf16 %v1678_v23, %v1678_v23  ;;  %v1936_v48 = vld [vmem:[#allocation2 + $0x1a0] sm:$0xff] }
 0x1e3   : > { %v2307_v44 = vpop.permute.xlu1 %2306  ;;  %v2313_v50 = vpop.permute.xlu0 %2312 }
 0x1e4   : > { %2395 = vst.msk [vmem:[#allocation4 + $0x20] sm:$0xf] %vm2386_vm10, %v2307_v44  ;;  %2398 = vst.msk [vmem:[#allocation4 + $0x2c] sm:$0xf] %vm2386_vm10, %v2313_v50  ;;  %v7567_v50 = vpack.c.bf16 %v1936_v48, %v1936_v48 }
 0x1e5   : > { %1572 = vrot.lane.b32.xlu1 %v7499_v49, %s8426_s21  ;;  %1827 = vrot.lane.b32.xlu0 %v7530_v54, %s8427_s22 }
 0x1e7   : > { %v2311_v35 = vpop.permute.xlu1 %2310  ;;  %v2566_v37 = vpop.permute.xlu0 %2565 }
 0x1e8   : > { %2397 = vst.msk [vmem:[#allocation4 + $0x28] sm:$0xf] %vm2386_vm10, %v2311_v35 }
 0x1e9   : > { %1825 = vrot.lane.b32.xlu1 %v7623_v13, %s8427_s22  ;;  %2653 = vst.msk [vmem:[#allocation4 + $0x24] sm:$0xf] %vm2643_vm11, %v2566_v37  ;;  %2081 = vrot.lane.b32.xlu0 %v7560_v14, %s8428_s23  ;;  %v7564_v13 = vpack.c.bf16 %v1933_v17, %v1933_v17 }
 0x1eb   : > { %v2564_v60 = vpop.permute.xlu1 %2563  ;;  %v2570_v61 = vpop.permute.xlu0 %2569 }
 0x1ec   : > { %2652 = vst.msk [vmem:[#allocation4 + $0x20] sm:$0xf] %vm2643_vm11, %v2564_v60  ;;  %2655 = vst.msk [vmem:[#allocation4 + $0x2c] sm:$0xf] %vm2643_vm11, %v2570_v61  ;;  %v7599_v60 = vpack.c.bf16 %v2193_v55, %v2193_v55 }
 0x1ed   : > { %1829 = vrot.lane.b32.xlu1 %v9341_v56, %s8427_s22  ;;  %2085 = vrot.lane.b32.xlu0 %v7562_v47, %s8428_s23 }
 0x1ef   : > { %v2568_v4 = vpop.permute.xlu1 %2567  ;;  %v1802_v9 = vpop.permute.xlu0 %1801 }
 0x1f0   : > { %2654 = vst.msk [vmem:[#allocation4 + $0x28] sm:$0xf] %vm2643_vm11, %v2568_v4  ;;  %v2450_v4 = vld [vmem:[#allocation2 + $0x1a2] sm:$0xff] }
 0x1f1   : > { %2083 = vrot.lane.b32.xlu1 %v7561_v3, %s8428_s23  ;;  %1885 = vst.msk [vmem:[#allocation4 + $0x34] sm:$0xf] %vm1871_vm8, %v1802_v9  ;;  %2338 = vrot.lane.b32.xlu0 %v7498_v22, %s8429_s9  ;;  %v3286_v3 = vld [vmem:[#allocation3 + $0x1] sm:$0xff] }
 0x1f2   : > { %v7664_v9 = vpack.c.bf16 %v3286_v3, %v3286_v3 }
 0x1f3   : > { %v8263_v16 = vld [vmem:[#allocation4 + $0x20] sm:$0xff]   ;;  %v1800_v21 = vpop.permute.xlu1 %1799  ;;  %v1806_v18 = vpop.permute.xlu0 %1805 }
 0x1f4   : > { %1884 = vst.msk [vmem:[#allocation4 + $0x30] sm:$0xf] %vm1871_vm8, %v1800_v21  ;;  %8101 = vmatprep.mubr.msk.bf16.mxu0 %vm2815_vm12, %v8263_v16  ;;  %1887 = vst.msk [vmem:[#allocation4 + $0x3c] sm:$0xf] %vm1871_vm8, %v1806_v18  ;;  %v7631_v16 = vpack.c.bf16 %v2450_v4, %v2450_v4  ;;  %v3287_v21 = vld [vmem:[#allocation3 + $0x9] sm:$0xff] }
 0x1f5   : > { %2087 = vrot.lane.b32.xlu1 %v7563_v15, %s8428_s23  ;;  %2342 = vrot.lane.b32.xlu0 %v9354_v25, %s8429_s9  ;;  %v7665_v31 = vpack.c.bf16 %v3287_v21, %v3287_v21 }
 0x1f7   : > { %v8264_v24 = vld [vmem:[#allocation4 + $0x28] sm:$0xff]   ;;  %v1804_v27 = vpop.permute.xlu1 %1803  ;;  %v2060_v28 = vpop.permute.xlu0 %2059 }
 0x1f8   : > { %1886 = vst.msk [vmem:[#allocation4 + $0x38] sm:$0xf] %vm1871_vm8, %v1804_v27  ;;  %8102 = vmatmul.mubr.msk.bf16.gmra.mxu0 %vm2815_vm12, %v8264_v24  ;;  %v8272_v24 = vld [vmem:[%s10948_s3 + $0x88] sm:$0xff]  }
 0x1f9   : > { %2340 = vrot.lane.b32.xlu1 %v7499_v49, %s8429_s9  ;;  %2143 = vst.msk [vmem:[#allocation4 + $0x34] sm:$0xf] %vm2129_vm9, %v2060_v28  ;;  %2595 = vrot.lane.b32.xlu0 %v7530_v54, %s8430_s17  ;;  %v2192_v54 = vld [vmem:[#allocation2 + $0x199] sm:$0xff] }
 0x1fa   : > { %v7598_v35 = vpack.c.bf16 %v2192_v54, %v2192_v54  ;;  %8125 = vmatprep.subr.bf16.mxu0 %v8272_v24  ;;  %v8273_v28 = vld [vmem:[%s10948_s3 + $0x80] sm:$0xff]  }
 0x1fb   : > { %v2058_v32 = vpop.permute.xlu1 %2057  ;;  %v2064_v38 = vpop.permute.xlu0 %2063  ;;  %8126 = vmatpush3.bf16.msra.mxu0 %v8272_v24 }
 0x1fc   : > { %2142 = vst.msk [vmem:[#allocation4 + $0x30] sm:$0xf] %vm2129_vm9, %v2058_v32  ;;  %2145 = vst.msk [vmem:[#allocation4 + $0x3c] sm:$0xf] %vm2129_vm9, %v2064_v38  ;;  %8127 = vmatprep.subr.bf16.mxu0 %v8273_v28 }
 0x1fd   : > { %2344 = vrot.lane.b32.xlu1 %v9365_v62, %s8429_s9  ;;  %2599 = vrot.lane.b32.xlu0 %v9369_v30, %s8430_s17 }
 0x1ff   : > { %v2062_v39 = vpop.permute.xlu1 %2061  ;;  %v2317_v12 = vpop.permute.xlu0 %2316  ;;  %8128 = vmatpush3.bf16.msra.mxu0 %v8273_v28 }
 0x200   : > { %2144 = vst.msk [vmem:[#allocation4 + $0x38] sm:$0xf] %vm2129_vm9, %v2062_v39 }
 0x201   : > { %2597 = vrot.lane.b32.xlu1 %v9341_v56, %s8430_s17  ;;  %2400 = vst.msk [vmem:[#allocation4 + $0x34] sm:$0xf] %vm2386_vm10, %v2317_v12  ;;  %1574 = vrot.lane.b32.xlu0 %v9354_v25, %s8426_s21  ;;  %v2449_v56 = vld [vmem:[#allocation2 + $0x19a] sm:$0xff] }
 0x202   : > { %v7630_v61 = vpack.c.bf16 %v2449_v56, %v2449_v56 }
 0x203   : > { %v2315_v51 = vpop.permute.xlu1 %2314  ;;  %v2321_v0 = vpop.permute.xlu0 %2320 }
 0x204   : > { %2399 = vst.msk [vmem:[#allocation4 + $0x30] sm:$0xf] %vm2386_vm10, %v2315_v51  ;;  %2402 = vst.msk [vmem:[#allocation4 + $0x3c] sm:$0xf] %vm2386_vm10, %v2321_v0 }
 0x205   : > { %2601 = vrot.lane.b32.xlu1 %v7627_v46, %s8430_s17  ;;  %1578 = vrot.lane.b32.xlu0 %v7502_v52, %s8426_s21 }
 0x207   : > { %v2319_v53 = vpop.permute.xlu1 %2318  ;;  %v2574_v58 = vpop.permute.xlu0 %2573 }
 0x208   : > { %2401 = vst.msk [vmem:[#allocation4 + $0x38] sm:$0xf] %vm2386_vm10, %v2319_v53 }
 0x209   : > { %1576 = vrot.lane.b32.xlu1 %v9365_v62, %s8426_s21  ;;  %2657 = vst.msk [vmem:[#allocation4 + $0x34] sm:$0xf] %vm2643_vm11, %v2574_v58  ;;  %1831 = vrot.lane.b32.xlu0 %v9369_v30, %s8427_s22 }
 0x20b   : > { %v2572_v19 = vpop.permute.xlu1 %2571  ;;  %v2578_v8 = vpop.permute.xlu0 %2577 }
 0x20c   : > { %2656 = vst.msk [vmem:[#allocation4 + $0x30] sm:$0xf] %vm2643_vm11, %v2572_v19  ;;  %2659 = vst.msk [vmem:[#allocation4 + $0x3c] sm:$0xf] %vm2643_vm11, %v2578_v8 }
 0x20d   : > { %1580 = vrot.lane.b32.xlu1 %v7503_v1, %s8426_s21  ;;  %1835 = vrot.lane.b32.xlu0 %v7534_v2, %s8427_s22  ;;  %s8431_s21 = smov 64  }
 0x20f   : > { %v2576_v33 = vpop.permute.xlu1 %2575  ;;  %v1810_v36 = vpop.permute.xlu0 %1809 }
 0x210   : > { %2658 = vst.msk [vmem:[#allocation4 + $0x38] sm:$0xf] %vm2643_vm11, %v2576_v33 }
 0x211   : > { %1833 = vrot.lane.b32.xlu1 %v7627_v46, %s8427_s22  ;;  %1889 = vst.msk [vmem:[#allocation4 + $0x44] sm:$0xf] %vm1871_vm8, %v1810_v36  ;;  %2089 = vrot.lane.b32.xlu0 %v7564_v13, %s8428_s23 }
 0x213   : > { %v8265_v22 = vld [vmem:[#allocation4 + $0x30] sm:$0xff]   ;;  %v1808_v43 = vpop.permute.xlu1 %1807  ;;  %v1814_v5 = vpop.permute.xlu0 %1813 }
 0x214   : > { %1888 = vst.msk [vmem:[#allocation4 + $0x40] sm:$0xf] %vm1871_vm8, %v1808_v43  ;;  %8105 = vmatprep.mubr.msk.bf16.mxu0 %vm2815_vm12, %v8265_v22  ;;  %1891 = vst.msk [vmem:[#allocation4 + $0x4c] sm:$0xf] %vm1871_vm8, %v1814_v5 }
 0x215   : > { %1837 = vrot.lane.b32.xlu1 %v7535_v59, %s8427_s22  ;;  %2093 = vrot.lane.b32.xlu0 %v7566_v42, %s8428_s23  ;;  %s10732_s22 = scalar_lea.vmem [#allocation6], %s6607_s20 }
 0x216   : > { %s6541_s29 = sshll.u32 %s10732_s22, 4  ;;  %s10896_s29 = int_to_ptr.vmem [resolvable:$true] %s6541_s29 }
 0x217   : > { %v8266_v49 = vld [vmem:[#allocation4 + $0x38] sm:$0xff]   ;;  %v1812_v44 = vpop.permute.xlu1 %1811  ;;  %v2068_v20 = vpop.permute.xlu0 %2067 }
 0x218   : > { %1890 = vst.msk [vmem:[#allocation4 + $0x48] sm:$0xf] %vm1871_vm8, %v1812_v44  ;;  %8106 = vmatmul.mubr.msk.bf16.gmra.mxu0 %vm2815_vm12, %v8266_v49 }
 0x219   : > { %2091 = vrot.lane.b32.xlu1 %v7565_v26, %s8428_s23  ;;  %2147 = vst.msk [vmem:[#allocation4 + $0x44] sm:$0xf] %vm2129_vm9, %v2068_v20  ;;  %2346 = vrot.lane.b32.xlu0 %v7502_v52, %s8429_s9 }
 0x21b   : > { %v2066_v57 = vpop.permute.xlu1 %2065  ;;  %v2072_v14 = vpop.permute.xlu0 %2071 }
 0x21c   : > { %2146 = vst.msk [vmem:[#allocation4 + $0x40] sm:$0xf] %vm2129_vm9, %v2066_v57  ;;  %2149 = vst.msk [vmem:[#allocation4 + $0x4c] sm:$0xf] %vm2129_vm9, %v2072_v14  ;;  %v9544_v57 = vld [vmem:[%s10947_s2] ss:$0 sm:$0xff] }
 0x21d   : > { %2095 = vrot.lane.b32.xlu1 %v7567_v50, %s8428_s23  ;;  %2350 = vrot.lane.b32.xlu0 %v7598_v35, %s8429_s9  ;;  %v3093_v50 = vld [vmem:[#allocation3] sm:$0xff]  ;;  %s7920_s23 = sshll.u32 %s8497_s28, 12  ;;  %s10904_s28 = scalar_lea.sflag [#allocation7], %s269_s15 }
 0x21e   : > { %v7632_v14 = vpack.c.bf16 %v3093_v50, %v3093_v50  ;;  %s10894_s13 = scalar_lea.hbm %s10952_s7, %s7920_s23 }
 0x21f   : > { %v2070_v37 = vpop.permute.xlu1 %2069  ;;  %v2325_v63 = vpop.permute.xlu0 %2324 }
 0x220   : > { %2148 = vst.msk [vmem:[#allocation4 + $0x48] sm:$0xf] %vm2129_vm9, %v2070_v37 }
 0x221   : > { %2348 = vrot.lane.b32.xlu1 %v7503_v1, %s8429_s9  ;;  %2404 = vst.msk [vmem:[#allocation4 + $0x44] sm:$0xf] %vm2386_vm10, %v2325_v63  ;;  %2603 = vrot.lane.b32.xlu0 %v7534_v2, %s8430_s17  ;;  %v3094_v63 = vld [vmem:[#allocation3 + $0x8] sm:$0xff] }
 0x222   : > { %3254 = vst.msk [vmem:[#allocation5] sm:$0xf] %vm3253_vm15, %v7632_v14  ;;  %v7633_v3 = vpack.c.bf16 %v3094_v63, %v3094_v63 }
 0x223   : > { %v2323_v47 = vpop.permute.xlu1 %2322  ;;  %v2329_v6 = vpop.permute.xlu0 %2328 }
 0x224   : > { %2403 = vst.msk [vmem:[#allocation4 + $0x40] sm:$0xf] %vm2386_vm10, %v2323_v47  ;;  %2406 = vst.msk [vmem:[#allocation4 + $0x4c] sm:$0xf] %vm2386_vm10, %v2329_v6 }
 0x225   : > { %2352 = vrot.lane.b32.xlu1 %v7599_v60, %s8429_s9  ;;  %2607 = vrot.lane.b32.xlu0 %v7630_v61, %s8430_s17  ;;  %3255 = vst.msk [vmem:[#allocation5 + $0xc] sm:$0xf] %vm3253_vm15, %v7633_v3 }
 0x227   : > { %v2327_v10 = vpop.permute.xlu1 %2326  ;;  %v2582_v15 = vpop.permute.xlu0 %2581 }
 0x228   : > { %2405 = vst.msk [vmem:[#allocation4 + $0x48] sm:$0xf] %vm2386_vm10, %v2327_v10 }
 0x229   : > { %2605 = vrot.lane.b32.xlu1 %v7535_v59, %s8430_s17  ;;  %2661 = vst.msk [vmem:[#allocation4 + $0x44] sm:$0xf] %vm2643_vm11, %v2582_v15  ;;  %3414 = vrot.lane.b32.xlu0 %v7664_v9, %s8430_s17 }
 0x22b   : > { %v2580_v25 = vpop.permute.xlu1 %2579  ;;  %v2586_v18 = vpop.permute.xlu0 %2585 }
 0x22c   : > { %2660 = vst.msk [vmem:[#allocation4 + $0x40] sm:$0xf] %vm2643_vm11, %v2580_v25  ;;  %2663 = vst.msk [vmem:[#allocation4 + $0x4c] sm:$0xf] %vm2643_vm11, %v2586_v18 }
 0x22d   : > { %2609 = vrot.lane.b32.xlu1 %v7631_v16, %s8430_s17 }
 0x22f   : > { %v2584_v27 = vpop.permute.xlu1 %2583  ;;  %v1818_v11 = vpop.permute.xlu0 %1817 }
 0x230   : > { %2662 = vst.msk [vmem:[#allocation4 + $0x48] sm:$0xf] %vm2643_vm11, %v2584_v27 }
 0x231   : > { %3416 = vrot.lane.b32.xlu1 %v7665_v31, %s8430_s17  ;;  %1893 = vst.msk [vmem:[#allocation4 + $0x54] sm:$0xf] %vm1871_vm8, %v1818_v11 }
 0x233   : > { %v8267_v62 = vld [vmem:[#allocation4 + $0x40] sm:$0xff]   ;;  %v1816_v32 = vpop.permute.xlu1 %1815  ;;  %v1822_v30 = vpop.permute.xlu0 %1821 }
 0x234   : > { %1892 = vst.msk [vmem:[#allocation4 + $0x50] sm:$0xf] %vm1871_vm8, %v1816_v32  ;;  %8109 = vmatprep.mubr.msk.bf16.mxu1 %vm2815_vm12, %v8267_v62  ;;  %1895 = vst.msk [vmem:[#allocation4 + $0x5c] sm:$0xf] %vm1871_vm8, %v1822_v30 }
 0x237   : > { %v8268_v38 = vld [vmem:[#allocation4 + $0x48] sm:$0xff]   ;;  %v1820_v7 = vpop.permute.xlu1 %1819  ;;  %v2076_v39 = vpop.permute.xlu0 %2075 }
 0x238   : > { %1894 = vst.msk [vmem:[#allocation4 + $0x58] sm:$0xf] %vm1871_vm8, %v1820_v7  ;;  %8110 = vmatmul.mubr.msk.bf16.vlgmr.msra.gmra.mxu1 %vm2815_vm12, %v8268_v38 }
 0x239   : > { %2151 = vst.msk [vmem:[#allocation4 + $0x54] sm:$0xf] %vm2129_vm9, %v2076_v39 }
 0x23b   : > { %v2074_v45 = vpop.permute.xlu1 %2073  ;;  %v2080_v12 = vpop.permute.xlu0 %2079 }
 0x23c   : > { %2150 = vst.msk [vmem:[#allocation4 + $0x50] sm:$0xf] %vm2129_vm9, %v2074_v45  ;;  %2153 = vst.msk [vmem:[#allocation4 + $0x5c] sm:$0xf] %vm2129_vm9, %v2080_v12 }
 0x23f   : > { %v2078_v46 = vpop.permute.xlu1 %2077  ;;  %v2333_v51 = vpop.permute.xlu0 %2332 }
 0x240   : > { %2152 = vst.msk [vmem:[#allocation4 + $0x58] sm:$0xf] %vm2129_vm9, %v2078_v46 }
 0x241   : > { %2408 = vst.msk [vmem:[#allocation4 + $0x54] sm:$0xf] %vm2386_vm10, %v2333_v51 }
 0x243   : > { %v2331_v52 = vpop.permute.xlu1 %2330  ;;  %v2337_v0 = vpop.permute.xlu0 %2336 }
 0x244   : > { %2407 = vst.msk [vmem:[#allocation4 + $0x50] sm:$0xf] %vm2386_vm10, %v2331_v52  ;;  %2410 = vst.msk [vmem:[#allocation4 + $0x5c] sm:$0xf] %vm2386_vm10, %v2337_v0 }
 0x247   : > { %v2335_v41 = vpop.permute.xlu1 %2334  ;;  %v2590_v53 = vpop.permute.xlu0 %2589 }
 0x248   : > { %2409 = vst.msk [vmem:[#allocation4 + $0x58] sm:$0xf] %vm2386_vm10, %v2335_v41 }
 0x249   : > { %2665 = vst.msk [vmem:[#allocation4 + $0x54] sm:$0xf] %vm2643_vm11, %v2590_v53 }
 0x24b   : > { %v2588_v29 = vpop.permute.xlu1 %2587  ;;  %v2594_v58 = vpop.permute.xlu0 %2593 }
 0x24c   : > { %2664 = vst.msk [vmem:[#allocation4 + $0x50] sm:$0xf] %vm2643_vm11, %v2588_v29  ;;  %2667 = vst.msk [vmem:[#allocation4 + $0x5c] sm:$0xf] %vm2643_vm11, %v2594_v58 }
 0x24f   : > { %v2592_v1 = vpop.permute.xlu1 %2591  ;;  %v1571_v19 = vpop.permute.xlu0 %1570 }
 0x250   : > { %2666 = vst.msk [vmem:[#allocation4 + $0x58] sm:$0xf] %vm2643_vm11, %v2592_v1 }
 0x251   : > { %1641 = vst.msk [vmem:[#allocation4 + $0x68] sm:$0xf] %vm1614_vm7, %v1571_v19 }
 0x253   : > { %v8270_v2 = vld [vmem:[#allocation4 + $0x50] sm:$0xff]   ;;  %v1569_v17 = vpop.permute.xlu1 %1568  ;;  %v1824_v8 = vpop.permute.xlu0 %1823 }
 0x254   : > { %1640 = vst.msk [vmem:[#allocation4 + $0x64] sm:$0xf] %vm1614_vm7, %v1569_v17  ;;  %8113 = vmatprep.mubr.msk.bf16.mxu1 %vm2815_vm12, %v8270_v2 }
 0x255   : > { %1896 = vst.msk [vmem:[#allocation4 + $0x60] sm:$0xf] %vm1871_vm8, %v1824_v8 }
 0x257   : > { %v8271_v23 = vld [vmem:[#allocation4 + $0x58] sm:$0xff]   ;;  %v1573_v33 = vpop.permute.xlu1 %1572  ;;  %v1828_v13 = vpop.permute.xlu0 %1827 }
 0x258   : > { %1642 = vst.msk [vmem:[#allocation4 + $0x6c] sm:$0xf] %vm1614_vm7, %v1573_v33  ;;  %8114 = vmatmul.mubr.msk.bf16.gmra.mxu1 %vm2815_vm12, %v8271_v23 }
 0x259   : > { %1898 = vst.msk [vmem:[#allocation4 + $0x68] sm:$0xf] %vm1871_vm8, %v1828_v13 }
 0x25b   : > { %v1826_v34 = vpop.permute.xlu1 %1825  ;;  %v2082_v36 = vpop.permute.xlu0 %2081 }
 0x25c   : > { %1897 = vst.msk [vmem:[#allocation4 + $0x64] sm:$0xf] %vm1871_vm8, %v1826_v34 }
 0x25d   : > { %2154 = vst.msk [vmem:[#allocation4 + $0x60] sm:$0xf] %vm2129_vm9, %v2082_v36 }
 0x25f   : > { %v1830_v59 = vpop.permute.xlu1 %1829  ;;  %v2086_v40 = vpop.permute.xlu0 %2085 }
 0x260   : > { %1899 = vst.msk [vmem:[#allocation4 + $0x6c] sm:$0xf] %vm1871_vm8, %v1830_v59 }
 0x261   : > { %2156 = vst.msk [vmem:[#allocation4 + $0x68] sm:$0xf] %vm2129_vm9, %v2086_v40 }
 0x263   : > { %v2084_v22 = vpop.permute.xlu1 %2083  ;;  %v2339_v43 = vpop.permute.xlu0 %2338 }
 0x264   : > { %2155 = vst.msk [vmem:[#allocation4 + $0x64] sm:$0xf] %vm2129_vm9, %v2084_v22 }
 0x265   : > { %2411 = vst.msk [vmem:[#allocation4 + $0x60] sm:$0xf] %vm2386_vm10, %v2339_v43 }
 0x267   : > { %v2088_v42 = vpop.permute.xlu1 %2087  ;;  %v2343_v5 = vpop.permute.xlu0 %2342 }
 0x268   : > { %2157 = vst.msk [vmem:[#allocation4 + $0x6c] sm:$0xf] %vm2129_vm9, %v2088_v42 }
 0x269   : > { %2413 = vst.msk [vmem:[#allocation4 + $0x68] sm:$0xf] %vm2386_vm10, %v2343_v5 }
 0x26b   : > { %v2341_v26 = vpop.permute.xlu1 %2340  ;;  %v2596_v48 = vpop.permute.xlu0 %2595 }
 0x26c   : > { %2412 = vst.msk [vmem:[#allocation4 + $0x64] sm:$0xf] %vm2386_vm10, %v2341_v26 }
 0x26d   : > { %2668 = vst.msk [vmem:[#allocation4 + $0x60] sm:$0xf] %vm2643_vm11, %v2596_v48 }
 0x26f   : > { %v2345_v49 = vpop.permute.xlu1 %2344  ;;  %v2600_v44 = vpop.permute.xlu0 %2599 }
 0x270   : > { %2414 = vst.msk [vmem:[#allocation4 + $0x6c] sm:$0xf] %vm2386_vm10, %v2345_v49 }
 0x271   : > { %2670 = vst.msk [vmem:[#allocation4 + $0x68] sm:$0xf] %vm2643_vm11, %v2600_v44 }
 0x273   : > { %v2598_v54 = vpop.permute.xlu1 %2597  ;;  %v1575_v20 = vpop.permute.xlu0 %1574 }
 0x274   : > { %2669 = vst.msk [vmem:[#allocation4 + $0x64] sm:$0xf] %vm2643_vm11, %v2598_v54 }
 0x275   : > { %1643 = vst.msk [vmem:[#allocation4 + $0x70] sm:$0xf] %vm1614_vm7, %v1575_v20 }
 0x277   : > { %v2602_v35 = vpop.permute.xlu1 %2601  ;;  %v1579_v37 = vpop.permute.xlu0 %1578 }
 0x278   : > { %2671 = vst.msk [vmem:[#allocation4 + $0x6c] sm:$0xf] %vm2643_vm11, %v2602_v35  ;;  %v8095_v55 = vpop.f32.mrf.mxu0 }
 0x279   : > { %v2911_v56 = vadd.f32 %v8095_v55, %v9544_v57  ;;  %1645 = vst.msk [vmem:[#allocation4 + $0x78] sm:$0xf] %vm1614_vm7, %v1579_v37 }
 0x27a   : > { %v2902_v60 = vpop.f32.mrf.mxu0 }
 0x27b   : > { %v1577_v47 = vpop.permute.xlu1 %1576  ;;  %v8276_v61 = vld [vmem:[#allocation4 + $0x60] sm:$0xff]   ;;  %v3031_v6 = vmax.f32 %v2911_v56, 0.0  ;;  %v2903_v4 = vadd.f32 %v9544_v57, %v2902_v60  ;;  %v1832_v9 = vpop.permute.xlu0 %1831 }
 0x27c   : > { %1644 = vst.msk [vmem:[#allocation4 + $0x74] sm:$0xf] %vm1614_vm7, %v1577_v47  ;;  %v8096_v10 = vpop.f32.mrf.mxu0  ;;  %8117 = vmatprep.mubr.msk.bf16.mxu1 %vm2815_vm12, %v8276_v61  ;;  %v8282_v47 = vld [vmem:[%s10948_s3 + $0x78] sm:$0xff]  }
 0x27d   : > { %3063 = vst.msk [vmem:[#allocation3 + $0x31] sm:$0xff] %vm320_vm13, %v3031_v6  ;;  %v3029_v15 = vmax.f32 %v2903_v4, 0.0  ;;  %v2914_v16 = vadd.f32 %v8096_v10, %v9544_v57  ;;  %v8283_v6 = vld [vmem:[%s10948_s3 + $0x38] sm:$0xff]   ;;  %7940 = vmatprep.subr.bf16.mxu1 %v8282_v47  ;;  %v8295_v47 = vld [vmem:[%s10948_s3 + $0x10] sm:$0xff]  }
 0x27e   : > { %1900 = vst.msk [vmem:[#allocation4 + $0x70] sm:$0xf] %vm1871_vm8, %v1832_v9  ;;  %v2905_v21 = vpop.f32.mrf.mxu0  ;;  %7941 = vmatpush3.bf16.msra.mxu1 %v8283_v6  ;;  %v8296_v6 = vld [vmem:[%s10948_s3 + $0x48] sm:$0xff]  }
 0x27f   : > { %v1581_v25 = vpop.permute.xlu1 %1580  ;;  %v8277_v18 = vld [vmem:[#allocation4 + $0x68] sm:$0xff]   ;;  %3061 = vst.msk [vmem:[#allocation3 + $0x19] sm:$0xff] %vm320_vm13, %v3029_v15  ;;  %v3032_v31 = vmax.f32 %v2914_v16, 0.0  ;;  %v2906_v24 = vadd.f32 %v9544_v57, %v2905_v21  ;;  %v1836_v27 = vpop.permute.xlu0 %1835  ;;  %v8284_v15 = vld [vmem:[%s10948_s3 + $0x70] sm:$0xff]  }
 0x280   : > { %1646 = vst.msk [vmem:[#allocation4 + $0x7c] sm:$0xf] %vm1614_vm7, %v1581_v25  ;;  %8118 = vmatmul.mubr.msk.bf16.gmra.mxu1 %vm2815_vm12, %v8277_v18  ;;  %v8286_v25 = vld [vmem:[%s10948_s3 + $0x30] sm:$0xff]   ;;  %7942 = vmatprep.subr.bf16.mxu1 %v8284_v15  ;;  %v8298_v15 = vld [vmem:[%s10948_s3 + $0x40] sm:$0xff]  }
 0x281   : > { %3064 = vst.msk [vmem:[#allocation3 + $0x39] sm:$0xff] %vm320_vm13, %v3032_v31  ;;  %v3030_v11 = vmax.f32 %v2906_v24, 0.0 }
 0x282   : > { %1902 = vst.msk [vmem:[#allocation4 + $0x78] sm:$0xf] %vm1871_vm8, %v1836_v27  ;;  %7943 = vmatpush3.bf16.msra.mxu1 %v8286_v25  ;;  %v8287_v27 = vld [vmem:[%s10948_s3 + $0x68] sm:$0xff]  }
 0x283   : > { %v1834_v28 = vpop.permute.xlu1 %1833  ;;  %3062 = vst.msk [vmem:[#allocation3 + $0x21] sm:$0xff] %vm320_vm13, %v3030_v11  ;;  %v2090_v32 = vpop.permute.xlu0 %2089  ;;  %7944 = vmatprep.subr.bf16.mxu1 %v8287_v27 }
 0x284   : > { %1901 = vst.msk [vmem:[#allocation4 + $0x74] sm:$0xf] %vm1871_vm8, %v1834_v28  ;;  %v4506_v62 = vld [vmem:[#allocation3 + $0x30] sm:$0xff] }
 0x285   : > { %v4059_v30 = vld [vmem:[#allocation3 + $0x31] sm:$0xff]  ;;  %v9565_v38 = vpack.c.bf16 %v4506_v62, %v4506_v62  ;;  %2158 = vst.msk [vmem:[#allocation4 + $0x70] sm:$0xf] %vm2129_vm9, %v2090_v32 }
 0x286   : > { %v7762_v7 = vpack.c.bf16 %v4059_v30, %v4059_v30  ;;  %v3288_v39 = vld [vmem:[#allocation3 + $0x19] sm:$0xff]  ;;  %v3290_v41 = vld [vmem:[#allocation3 + $0x31] sm:$0xff] }
 0x287   : > { %v3800_v45 = vld [vmem:[#allocation3 + $0x18] sm:$0xff]  ;;  %v1838_v12 = vpop.permute.xlu1 %1837  ;;  %v7666_v46 = vpack.c.bf16 %v3288_v39, %v3288_v39  ;;  %3258 = vst.msk [vmem:[#allocation5 + $0x30] sm:$0xf] %vm3253_vm15, %v9565_v38  ;;  %v2094_v53 = vpop.permute.xlu0 %2093  ;;  %v9589_v13 = vpack.c.bf16 %v3290_v41, %v3290_v41 }
 0x288   : > { %v9568_v51 = vpack.c.bf16 %v3800_v45, %v3800_v45  ;;  %1903 = vst.msk [vmem:[#allocation4 + $0x7c] sm:$0xf] %vm1871_vm8, %v1838_v12  ;;  %v5018_v52 = vld [vmem:[#allocation3 + $0x32] sm:$0xff]  ;;  %v5019_v0 = vld [vmem:[#allocation3 + $0x3a] sm:$0xff] }
 0x289   : > { %4219 = vst.msk [vmem:[#allocation5 + $0x1c] sm:$0xf] %vm3253_vm15, %v7762_v7  ;;  %v9574_v29 = vpack.c.bf16 %v5018_v52, %v5018_v52  ;;  %v9576_v58 = vpack.c.bf16 %v5019_v0, %v5019_v0  ;;  %3418 = vrot.lane.b32.xlu0 %v7666_v46, %s8430_s17  ;;  %v4507_v1 = vld [vmem:[#allocation3 + $0x38] sm:$0xff]  ;;  %4217 = vst.msk [vmem:[#allocation5 + $0x4] sm:$0xf] %vm3253_vm15, %v7666_v46  ;;  %v3543_v0 = vld [vmem:[#allocation3 + $0x2] sm:$0xff] }
 0x28a   : > { %2160 = vst.msk [vmem:[#allocation4 + $0x78] sm:$0xf] %vm2129_vm9, %v2094_v53  ;;  %v4060_v19 = vld [vmem:[#allocation3 + $0x39] sm:$0xff]  ;;  %v3289_v2 = vld [vmem:[#allocation3 + $0x21] sm:$0xff]  ;;  %v9583_v17 = vpack.c.bf16 %v4507_v1, %v4507_v1 }
 0x28b   : > { %3256 = vst.msk [vmem:[#allocation5 + $0x18] sm:$0xf] %vm3253_vm15, %v9568_v51  ;;  %v2092_v8 = vpop.permute.xlu1 %2091  ;;  %v7763_v23 = vpack.c.bf16 %v4060_v19, %v4060_v19  ;;  %5178 = vst.msk [vmem:[#allocation5 + $0x8] sm:$0xf] %vm3253_vm15, %v9574_v29  ;;  %v7667_v33 = vpack.c.bf16 %v3289_v2, %v3289_v2  ;;  %v3801_v34 = vld [vmem:[#allocation3 + $0x20] sm:$0xff]  ;;  %v2347_v40 = vpop.permute.xlu0 %2346  ;;  %v8288_v39 = vld [vmem:[%s10948_s3 + $0x28] sm:$0xff]  }
 0x28c   : > { %5179 = vst.msk [vmem:[#allocation5 + $0x14] sm:$0xf] %vm3253_vm15, %v9576_v58  ;;  %v3291_v36 = vld [vmem:[#allocation3 + $0x39] sm:$0xff]  ;;  %v9592_v59 = vpack.c.bf16 %v3801_v34, %v3801_v34  ;;  %3259 = vst.msk [vmem:[#allocation5 + $0x3c] sm:$0xf] %vm3253_vm15, %v9583_v17  ;;  %v8290_v2 = vld [vmem:[%s10948_s3 + $0x60] sm:$0xff]   ;;  %7945 = vmatpush3.bf16.msra.mxu1 %v8288_v39 }
 0x28d   : > { %2159 = vst.msk [vmem:[#allocation4 + $0x74] sm:$0xf] %vm2129_vm9, %v2092_v8  ;;  %3420 = vrot.lane.b32.xlu1 %v7667_v33, %s8430_s17  ;;  %3422 = vrot.lane.b32.xlu0 %v9589_v13, %s8430_s17  ;;  %v9604_v43 = vpack.c.bf16 %v3291_v36, %v3291_v36  ;;  %v4249_v52 = vld [vmem:[#allocation3 + $0x1a] sm:$0xff] }
 0x28e   : > { %4220 = vst.msk [vmem:[#allocation5 + $0x28] sm:$0xf] %vm3253_vm15, %v7763_v23  ;;  %4218 = vst.msk [vmem:[#allocation5 + $0x10] sm:$0xf] %vm3253_vm15, %v7667_v33  ;;  %7946 = vmatprep.subr.bf16.mxu1 %v8290_v2 }
 0x28f   : > { %2415 = vst.msk [vmem:[#allocation4 + $0x70] sm:$0xf] %vm2386_vm10, %v2347_v40  ;;  %v2096_v22 = vpop.permute.xlu1 %2095  ;;  %v2351_v42 = vpop.permute.xlu0 %2350 }
 0x290   : > { %3257 = vst.msk [vmem:[#allocation5 + $0x24] sm:$0xf] %vm3253_vm15, %v9592_v59 }
 0x291   : > { %2161 = vst.msk [vmem:[#allocation4 + $0x7c] sm:$0xf] %vm2129_vm9, %v2096_v22  ;;  %3424 = vrot.lane.b32.xlu1 %v9604_v43, %s8430_s17 }
 0x292   : > { %2417 = vst.msk [vmem:[#allocation4 + $0x78] sm:$0xf] %vm2386_vm10, %v2351_v42 }
 0x293   : > { %v8269_v5 = vld [vmem:[#allocation5 + $0x8] ss:$12 sps:$4 sm:$0xff]   ;;  %v2349_v26 = vpop.permute.xlu1 %2348  ;;  %v2604_v48 = vpop.permute.xlu0 %2603 }
 0x294   : > { %2416 = vst.msk [vmem:[#allocation4 + $0x74] sm:$0xf] %vm2386_vm10, %v2349_v26  ;;  %8129 = vmatprep.mubr.msk.bf16.mxu0 %vm320_vm13, %v8269_v5  ;;  %v9680_v26 = vpack.c.bf16 %v4249_v52, %v4249_v52 }
 0x295   : > { %2672 = vst.msk [vmem:[#allocation4 + $0x70] sm:$0xf] %vm2643_vm11, %v2604_v48 }
 0x297   : > { %v2353_v49 = vpop.permute.xlu1 %2352  ;;  %v2608_v54 = vpop.permute.xlu0 %2607 }
 0x298   : > { %2418 = vst.msk [vmem:[#allocation4 + $0x7c] sm:$0xf] %vm2386_vm10, %v2353_v49  ;;  %v8099_v44 = vpop.f32.mrf.mxu0  ;;  %v8291_v49 = vld [vmem:[%s10948_s3 + $0x20] sm:$0xff]  }
 0x299   : > { %v2927_v20 = vadd.f32 %v8099_v44, %v9544_v57  ;;  %2674 = vst.msk [vmem:[#allocation4 + $0x78] sm:$0xf] %vm2643_vm11, %v2608_v54  ;;  %v4250_v54 = vld [vmem:[#allocation3 + $0x22] sm:$0xff]  ;;  %7947 = vmatpush3.bf16.msra.mxu1 %v8291_v49 }
 0x29a   : > { %v2918_v50 = vpop.f32.mrf.mxu0 }
 0x29b   : > { %v2606_v35 = vpop.permute.xlu1 %2605  ;;  %v3035_v14 = vmax.f32 %v2927_v20, 0.0  ;;  %v2919_v55 = vadd.f32 %v9544_v57, %v2918_v50  ;;  %v3415_v56 = vpop.permute.xlu0 %3414 }
 0x29c   : > { %2673 = vst.msk [vmem:[#allocation4 + $0x74] sm:$0xf] %vm2643_vm11, %v2606_v35  ;;  %v8100_v37 = vpop.f32.mrf.mxu0  ;;  %v7696_v35 = vpack.c.bf16 %v3543_v0, %v3543_v0 }
 0x29d   : > { %3067 = vst.msk [vmem:[#allocation3 + $0x61] sm:$0xff] %vm320_vm13, %v3035_v14  ;;  %v3033_v63 = vmax.f32 %v2919_v55, 0.0  ;;  %v2930_v60 = vadd.f32 %v8100_v37, %v9544_v57  ;;  %v8292_v14 = vld [vmem:[%s10948_s3 + $0x58] sm:$0xff]  }
 0x29e   : > { %3511 = vst.msk [vmem:[#allocation5] sm:$0xf] %vm3510_vm1, %v3415_v56  ;;  %v2921_v61 = vpop.f32.mrf.mxu0  ;;  %v3544_v55 = vld [vmem:[#allocation3 + $0xa] sm:$0xff]  ;;  %v7793_v56 = vpack.c.bf16 %v4250_v54, %v4250_v54  ;;  %7948 = vmatprep.subr.bf16.mxu1 %v8292_v14 }
 0x29f   : > { %v2610_v3 = vpop.permute.xlu1 %2609  ;;  %3065 = vst.msk [vmem:[#allocation3 + $0x49] sm:$0xff] %vm320_vm13, %v3033_v63  ;;  %v3036_v4 = vmax.f32 %v2930_v60, 0.0  ;;  %v2922_v10 = vadd.f32 %v9544_v57, %v2921_v61  ;;  %v8293_v37 = vld [vmem:[%s10948_s3 + $0x18] sm:$0xff]   ;;  %v7697_v63 = vpack.c.bf16 %v3544_v55, %v3544_v55  ;;  %v8294_v60 = vld [vmem:[%s10948_s3 + $0x50] sm:$0xff]  }
 0x2a0   : > { %2675 = vst.msk [vmem:[#allocation4 + $0x7c] sm:$0xf] %vm2643_vm11, %v2610_v3  ;;  %7949 = vmatpush3.bf16.msra.mxu1 %v8293_v37 }
 0x2a1   : > { %3068 = vst.msk [vmem:[#allocation3 + $0x69] sm:$0xff] %vm320_vm13, %v3036_v4  ;;  %v3034_v9 = vmax.f32 %v2922_v10, 0.0  ;;  %7950 = vmatprep.subr.bf16.mxu1 %v8294_v60  ;;  %v8297_v4 = vld [vmem:[%s10948_s3 + $0x8] sm:$0xff]  }
 0x2a3   : > { %v3417_v16 = vpop.permute.xlu1 %3416  ;;  %v8280_v21 = vld [vmem:[#allocation4 + $0x70] sm:$0xff]   ;;  %3066 = vst.msk [vmem:[#allocation3 + $0x51] sm:$0xff] %vm320_vm13, %v3034_v9 }
 0x2a4   : > { %3512 = vst.msk [vmem:[#allocation5 + $0xc] sm:$0xf] %vm3510_vm1, %v3417_v16  ;;  %v4766_v18 = vld [vmem:[#allocation3 + $0x61] sm:$0xff]  ;;  %8121 = vmatprep.mubr.msk.bf16.mxu1 %vm2815_vm12, %v8280_v21  ;;  %7951 = vmatpush3.bf16.msra.mxu1 %v8295_v47  ;;  %v8299_v21 = vld [vmem:[%s10948_s3] sm:$0xff]  }
 0x2a5   : > { %v3101_v31 = vld [vmem:[#allocation3 + $0x60] sm:$0xff]  ;;  %v9640_v24 = vpack.c.bf16 %v4766_v18, %v4766_v18  ;;  %7952 = vmatprep.subr.bf16.mxu1 %v8296_v6 }
 0x2a6   : > { %v7640_v11 = vpack.c.bf16 %v3101_v31, %v3101_v31  ;;  %v3292_v28 = vld [vmem:[#allocation3 + $0x49] sm:$0xff] }
 0x2a7   : > { %v4508_v62 = vld [vmem:[#allocation3 + $0x48] sm:$0xff]  ;;  %v9645_v32 = vpack.c.bf16 %v3292_v28, %v3292_v28  ;;  %4223 = vst.msk [vmem:[#allocation5 + $0x4c] sm:$0xf] %vm3253_vm15, %v9640_v24 }
 0x2a8   : > { %v9647_v30 = vpack.c.bf16 %v4508_v62, %v4508_v62  ;;  %v8281_v7 = vld [vmem:[#allocation4 + $0x78] sm:$0xff]   ;;  %3262 = vst.msk [vmem:[#allocation5 + $0x60] sm:$0xf] %vm3253_vm15, %v7640_v11  ;;  %7953 = vmatpush3.bf16.msra.mxu1 %v8297_v4 }
 0x2a9   : > { %v4061_v45 = vld [vmem:[#allocation3 + $0x49] sm:$0xff]  ;;  %3426 = vrot.lane.b32.xlu0 %v9645_v32, %s8430_s17  ;;  %8122 = vmatmul.mubr.msk.bf16.gmra.mxu1 %vm2815_vm12, %v8281_v7 }
 0x2aa   : > { %v5022_v12 = vld [vmem:[#allocation3 + $0x62] sm:$0xff]  ;;  %v5023_v46 = vld [vmem:[#allocation3 + $0x6a] sm:$0xff]  ;;  %v7764_v41 = vpack.c.bf16 %v4061_v45, %v4061_v45  ;;  %3260 = vst.msk [vmem:[#allocation5 + $0x48] sm:$0xf] %vm3253_vm15, %v9647_v30  ;;  %v5021_v33 = vld [vmem:[#allocation3 + $0x52] sm:$0xff]  ;;  %7954 = vmatprep.subr.bf16.mxu1 %v8298_v15 }
 0x2ab   : > { %v9655_v53 = vpack.c.bf16 %v5022_v12, %v5022_v12  ;;  %v9657_v1 = vpack.c.bf16 %v5023_v46, %v5023_v46  ;;  %v4767_v19 = vld [vmem:[#allocation3 + $0x69] sm:$0xff]  ;;  %v3293_v34 = vld [vmem:[#allocation3 + $0x51] sm:$0xff]  ;;  %v9676_v42 = vpack.c.bf16 %v5021_v33, %v5021_v33 }
 0x2ac   : > { %v3102_v8 = vld [vmem:[#allocation3 + $0x68] sm:$0xff]  ;;  %v9667_v36 = vpack.c.bf16 %v4767_v19, %v4767_v19  ;;  %4221 = vst.msk [vmem:[#allocation5 + $0x34] sm:$0xf] %vm3253_vm15, %v7764_v41  ;;  %v9678_v5 = vpack.c.bf16 %v3293_v34, %v3293_v34  ;;  %v4509_v48 = vld [vmem:[#allocation3 + $0x50] sm:$0xff]  ;;  %7955 = vmatpush3.bf16.msra.mxu1 %v8299_v21 }
 0x2ad   : > { %v5020_v23 = vld [vmem:[#allocation3 + $0x4a] sm:$0xff]  ;;  %v7641_v40 = vpack.c.bf16 %v3102_v8, %v3102_v8  ;;  %5182 = vst.msk [vmem:[#allocation5 + $0x38] sm:$0xf] %vm3253_vm15, %v9655_v53  ;;  %5183 = vst.msk [vmem:[#allocation5 + $0x44] sm:$0xf] %vm3253_vm15, %v9657_v1  ;;  %v9685_v20 = vpack.c.bf16 %v4509_v48, %v4509_v48  ;;  %4377 = vrot.lane.b32.xlu0 %v9680_v26, %s8430_s17 }
 0x2ae   : > { %v9674_v22 = vpack.c.bf16 %v5020_v23, %v5020_v23  ;;  %v4062_v44 = vld [vmem:[#allocation3 + $0x51] sm:$0xff]  ;;  %4224 = vst.msk [vmem:[#allocation5 + $0x58] sm:$0xf] %vm3253_vm15, %v9667_v36  ;;  %5181 = vst.msk [vmem:[#allocation5 + $0x2c] sm:$0xf] %vm3253_vm15, %v9676_v42  ;;  %3428 = vrot.lane.b32.xlu1 %v9678_v5, %s8430_s17  ;;  %v4511_v60 = vld [vmem:[#allocation3 + $0x68] sm:$0xff] }
 0x2af   : > { %v7765_v50 = vpack.c.bf16 %v4062_v44, %v4062_v44  ;;  %3263 = vst.msk [vmem:[#allocation5 + $0x6c] sm:$0xf] %vm3253_vm15, %v7641_v40  ;;  %3261 = vst.msk [vmem:[#allocation5 + $0x54] sm:$0xf] %vm3253_vm15, %v9685_v20  ;;  %v9811_v6 = vpack.c.bf16 %v4511_v60, %v4511_v60 }
 0x2b0   : > { %5180 = vst.msk [vmem:[#allocation5 + $0x20] sm:$0xf] %vm3253_vm15, %v9674_v22 }
 0x2b1   : > { %4222 = vst.msk [vmem:[#allocation5 + $0x40] sm:$0xf] %vm3253_vm15, %v7765_v50  ;;  %3671 = vrot.lane.b32.xlu0 %v7696_v35, %s8431_s21 }
 0x2b2   : > { %4379 = vrot.lane.b32.xlu1 %v7793_v56, %s8430_s17 }
 0x2b4   : > { %v8275_v3 = vld [vmem:[#allocation5 + $0x38] ss:$12 sps:$4 sm:$0xff]  }
 0x2b5   : > { %4634 = vrot.lane.b32.xlu0 %v9565_v38, %s8431_s21 }
 0x2b6   : > { %3673 = vrot.lane.b32.xlu1 %v7697_v63, %s8431_s21 }
 0x2b7   : > { %v8274_v61 = vld [vmem:[#allocation5 + $0x20] ss:$12 sps:$4 sm:$0xff]  }
 0x2b8   : > { %8130 = vmatmul.mubr.msk.bf16.vlgmr.msra.gmra.mxu0 %vm320_vm13, %v8274_v61  ;;  %v8103_v10 = vpop.f32.mrf.mxu0 }
 0x2b9   : > { %8133 = vmatprep.mubr.msk.bf16.mxu0 %vm320_vm13, %v8275_v3  ;;  %3928 = vrot.lane.b32.xlu0 %v9568_v51, %s8432_s16  ;;  %v2943_v9 = vadd.f32 %v8103_v10, %v9544_v57 }
 0x2ba   : > { %4636 = vrot.lane.b32.xlu1 %v9583_v17, %s8431_s21  ;;  %v2934_v16 = vpop.f32.mrf.mxu0 }
 0x2bb   : > { %v3039_v25 = vmax.f32 %v2943_v9, 0.0  ;;  %v2935_v18 = vadd.f32 %v9544_v57, %v2934_v16 }
 0x2bc   : > { %v8104_v31 = vpop.f32.mrf.mxu0 }
 0x2bd   : > { %4890 = vrot.lane.b32.xlu0 %v9589_v13, %s8432_s16  ;;  %3071 = vst.msk [vmem:[#allocation3 + $0x91] sm:$0xff] %vm320_vm13, %v3039_v25  ;;  %v3037_v51 = vmax.f32 %v2935_v18, 0.0  ;;  %v2946_v27 = vadd.f32 %v8104_v31, %v9544_v57 }
 0x2be   : > { %3930 = vrot.lane.b32.xlu1 %v9592_v59, %s8432_s16  ;;  %v2937_v11 = vpop.f32.mrf.mxu0 }
 0x2bf   : > { %3069 = vst.msk [vmem:[#allocation3 + $0x79] sm:$0xff] %vm320_vm13, %v3037_v51  ;;  %v3040_v28 = vmax.f32 %v2946_v27, 0.0  ;;  %v2938_v62 = vadd.f32 %v9544_v57, %v2937_v11 }
 0x2c1   : > { %4381 = vrot.lane.b32.xlu0 %v9574_v29, %s8430_s17  ;;  %3072 = vst.msk [vmem:[#allocation3 + $0x99] sm:$0xff] %vm320_vm13, %v3040_v28  ;;  %v3038_v13 = vmax.f32 %v2938_v62, 0.0 }
 0x2c2   : > { %4892 = vrot.lane.b32.xlu1 %v9604_v43, %s8432_s16 }
 0x2c3   : > { %3070 = vst.msk [vmem:[#allocation3 + $0x81] sm:$0xff] %vm320_vm13, %v3038_v13 }
 0x2c4   : > { %v4067_v59 = vld [vmem:[#allocation3 + $0x91] sm:$0xff] }
 0x2c5   : > { %3675 = vrot.lane.b32.xlu0 %v9680_v26, %s8431_s21  ;;  %v7770_v7 = vpack.c.bf16 %v4067_v59, %v4067_v59  ;;  %v3105_v39 = vld [vmem:[#allocation3 + $0x90] sm:$0xff] }
 0x2c6   : > { %4383 = vrot.lane.b32.xlu1 %v9576_v58, %s8430_s17  ;;  %v4065_v45 = vld [vmem:[#allocation3 + $0x79] sm:$0xff]  ;;  %v7644_v12 = vpack.c.bf16 %v3105_v39, %v3105_v39 }
 0x2c7   : > { %v7768_v43 = vpack.c.bf16 %v4065_v45, %v4065_v45  ;;  %v3103_v46 = vld [vmem:[#allocation3 + $0x78] sm:$0xff]  ;;  %4227 = vst.msk [vmem:[#allocation5 + $0x7c] sm:$0xf] %vm3253_vm15, %v7770_v7 }
 0x2c8   : > { %v5026_v52 = vld [vmem:[#allocation3 + $0x92] sm:$0xff]  ;;  %v5027_v0 = vld [vmem:[#allocation3 + $0x9a] sm:$0xff]  ;;  %v7642_v41 = vpack.c.bf16 %v3103_v46, %v3103_v46  ;;  %3266 = vst.msk [vmem:[#allocation5 + $0x90] sm:$0xf] %vm3253_vm15, %v7644_v12 }
 0x2c9   : > { %4638 = vrot.lane.b32.xlu0 %v9647_v30, %s8431_s21  ;;  %v9761_v19 = vpack.c.bf16 %v5026_v52, %v5026_v52  ;;  %v9763_v2 = vpack.c.bf16 %v5027_v0, %v5027_v0  ;;  %4225 = vst.msk [vmem:[#allocation5 + $0x64] sm:$0xf] %vm3253_vm15, %v7768_v43  ;;  %v4068_v8 = vld [vmem:[#allocation3 + $0x99] sm:$0xff] }
 0x2ca   : > { %3677 = vrot.lane.b32.xlu1 %v7793_v56, %s8431_s21  ;;  %v3106_v23 = vld [vmem:[#allocation3 + $0x98] sm:$0xff]  ;;  %v5025_v34 = vld [vmem:[#allocation3 + $0x82] sm:$0xff]  ;;  %3264 = vst.msk [vmem:[#allocation5 + $0x78] sm:$0xf] %vm3253_vm15, %v7642_v41  ;;  %v7771_v40 = vpack.c.bf16 %v4068_v8, %v4068_v8 }
 0x2cb   : > { %v5024_v33 = vld [vmem:[#allocation3 + $0x7a] sm:$0xff]  ;;  %v7645_v26 = vpack.c.bf16 %v3106_v23, %v3106_v23  ;;  %5186 = vst.msk [vmem:[#allocation5 + $0x68] sm:$0xf] %vm3253_vm15, %v9761_v19  ;;  %5187 = vst.msk [vmem:[#allocation5 + $0x74] sm:$0xf] %vm3253_vm15, %v9763_v2  ;;  %v9773_v49 = vpack.c.bf16 %v5025_v34, %v5025_v34 }
 0x2cc   : > { %v9771_v48 = vpack.c.bf16 %v5024_v33, %v5024_v33  ;;  %v4066_v44 = vld [vmem:[#allocation3 + $0x81] sm:$0xff]  ;;  %4228 = vst.msk [vmem:[#allocation5 + $0x88] sm:$0xf] %vm3253_vm15, %v7771_v40  ;;  %v4512_v52 = vld [vmem:[#allocation3 + $0x78] sm:$0xff] }
 0x2cd   : > { %v3104_v54 = vld [vmem:[#allocation3 + $0x80] sm:$0xff]  ;;  %v7769_v50 = vpack.c.bf16 %v4066_v44, %v4066_v44  ;;  %3267 = vst.msk [vmem:[#allocation5 + $0x9c] sm:$0xf] %vm3253_vm15, %v7645_v26  ;;  %3932 = vrot.lane.b32.xlu0 %v9565_v38, %s8432_s16  ;;  %5185 = vst.msk [vmem:[#allocation5 + $0x5c] sm:$0xf] %vm3253_vm15, %v9773_v49  ;;  %v9863_v8 = vpack.c.bf16 %v4512_v52, %v4512_v52 }
 0x2ce   : > { %v7643_v35 = vpack.c.bf16 %v3104_v54, %v3104_v54  ;;  %4640 = vrot.lane.b32.xlu1 %v9685_v20, %s8431_s21  ;;  %5184 = vst.msk [vmem:[#allocation5 + $0x50] sm:$0xf] %vm3253_vm15, %v9771_v48  ;;  %v4510_v38 = vld [vmem:[#allocation3 + $0x60] sm:$0xff] }
 0x2cf   : > { %4226 = vst.msk [vmem:[#allocation5 + $0x70] sm:$0xf] %vm3253_vm15, %v7769_v50  ;;  %v9802_v56 = vpack.c.bf16 %v4510_v38, %v4510_v38  ;;  %v4513_v23 = vld [vmem:[#allocation3 + $0x80] sm:$0xff] }
 0x2d0   : > { %3265 = vst.msk [vmem:[#allocation5 + $0x84] sm:$0xf] %vm3253_vm15, %v7643_v35  ;;  %v4768_v33 = vld [vmem:[#allocation3 + $0x79] sm:$0xff] }
 0x2d1   : > { %4894 = vrot.lane.b32.xlu0 %v9645_v32, %s8432_s16  ;;  %v9876_v26 = vpack.c.bf16 %v4768_v33, %v4768_v33 }
 0x2d2   : > { %3934 = vrot.lane.b32.xlu1 %v9583_v17, %s8432_s16  ;;  %v8279_v14 = vld [vmem:[#allocation5 + $0x68] ss:$12 sps:$4 sm:$0xff]  }
 0x2d5   : > { %v8278_v55 = vld [vmem:[#allocation5 + $0x50] ss:$12 sps:$4 sm:$0xff]   ;;  %4385 = vrot.lane.b32.xlu0 %v9674_v22, %s8430_s17 }
 0x2d6   : > { %4896 = vrot.lane.b32.xlu1 %v9678_v5, %s8432_s16  ;;  %8134 = vmatmul.mubr.msk.bf16.gmra.mxu0 %vm320_vm13, %v8278_v55 }
 0x2d7   : > { %8137 = vmatprep.mubr.msk.bf16.mxu0 %vm320_vm13, %v8279_v14 }
 0x2d8   : > { %v8107_v37 = vpop.f32.mrf.mxu0 }
 0x2d9   : > { %3679 = vrot.lane.b32.xlu0 %v9574_v29, %s8431_s21  ;;  %v2959_v17 = vadd.f32 %v8107_v37, %v9544_v57 }
 0x2da   : > { %4387 = vrot.lane.b32.xlu1 %v9676_v42, %s8430_s17  ;;  %v2950_v32 = vpop.f32.mrf.mxu0 }
 0x2db   : > { %v3043_v5 = vmax.f32 %v2959_v17, 0.0  ;;  %v2951_v63 = vadd.f32 %v9544_v57, %v2950_v32 }
 0x2dc   : > { %v8108_v47 = vpop.f32.mrf.mxu0 }
 0x2dd   : > { %4642 = vrot.lane.b32.xlu0 %v9802_v56, %s8431_s21  ;;  %3075 = vst.msk [vmem:[#allocation3 + $0xc1] sm:$0xff] %vm320_vm13, %v3043_v5  ;;  %v3041_v61 = vmax.f32 %v2951_v63, 0.0  ;;  %v2962_v29 = vadd.f32 %v8108_v47, %v9544_v57 }
 0x2de   : > { %3681 = vrot.lane.b32.xlu1 %v9576_v58, %s8431_s21  ;;  %v2953_v3 = vpop.f32.mrf.mxu0 }
 0x2df   : > { %3073 = vst.msk [vmem:[#allocation3 + $0xa9] sm:$0xff] %vm320_vm13, %v3041_v61  ;;  %v3044_v4 = vmax.f32 %v2962_v29, 0.0  ;;  %v2954_v10 = vadd.f32 %v9544_v57, %v2953_v3  ;;  %v4514_v29 = vld [vmem:[#allocation3 + $0x90] sm:$0xff] }
 0x2e1   : > { %3936 = vrot.lane.b32.xlu0 %v9647_v30, %s8432_s16  ;;  %3076 = vst.msk [vmem:[#allocation3 + $0xc9] sm:$0xff] %vm320_vm13, %v3044_v4  ;;  %v3042_v58 = vmax.f32 %v2954_v10, 0.0 }
 0x2e2   : > { %4644 = vrot.lane.b32.xlu1 %v9811_v6, %s8431_s21 }
 0x2e3   : > { %3074 = vst.msk [vmem:[#allocation3 + $0xb1] sm:$0xff] %vm320_vm13, %v3042_v58 }
 0x2e4   : > { %v4774_v9 = vld [vmem:[#allocation3 + $0xc1] sm:$0xff] }
 0x2e5   : > { %v3109_v15 = vld [vmem:[#allocation3 + $0xc0] sm:$0xff]  ;;  %4898 = vrot.lane.b32.xlu0 %v9640_v24, %s8432_s16  ;;  %v9825_v16 = vpack.c.bf16 %v4774_v9, %v4774_v9  ;;  %v9911_v9 = vpack.c.bf16 %v4514_v29, %v4514_v29 }
 0x2e6   : > { %3938 = vrot.lane.b32.xlu1 %v9685_v20, %s8432_s16  ;;  %v7648_v21 = vpack.c.bf16 %v3109_v15, %v3109_v15  ;;  %v4069_v25 = vld [vmem:[#allocation3 + $0xa9] sm:$0xff] }
 0x2e7   : > { %v7772_v18 = vpack.c.bf16 %v4069_v25, %v4069_v25  ;;  %v3107_v31 = vld [vmem:[#allocation3 + $0xa8] sm:$0xff]  ;;  %4231 = vst.msk [vmem:[#allocation5 + $0xac] sm:$0xf] %vm3253_vm15, %v9825_v16  ;;  %v4515_v25 = vld [vmem:[#allocation3 + $0x98] sm:$0xff] }
 0x2e8   : > { %3270 = vst.msk [vmem:[#allocation5 + $0xc0] sm:$0xf] %vm3253_vm15, %v7648_v21  ;;  %v5030_v30 = vld [vmem:[#allocation3 + $0xc2] sm:$0xff]  ;;  %v5031_v51 = vld [vmem:[#allocation3 + $0xca] sm:$0xff]  ;;  %v7646_v27 = vpack.c.bf16 %v3107_v31, %v3107_v31 }
 0x2e9   : > { %4389 = vrot.lane.b32.xlu0 %v9655_v53, %s8430_s17  ;;  %v9834_v20 = vpack.c.bf16 %v5030_v30, %v5030_v30  ;;  %v9836_v11 = vpack.c.bf16 %v5031_v51, %v5031_v51  ;;  %v4775_v28 = vld [vmem:[#allocation3 + $0xc9] sm:$0xff]  ;;  %4229 = vst.msk [vmem:[#allocation5 + $0x94] sm:$0xf] %vm3253_vm15, %v7772_v18 }
 0x2ea   : > { %4900 = vrot.lane.b32.xlu1 %v9667_v36, %s8432_s16  ;;  %v3110_v62 = vld [vmem:[#allocation3 + $0xc8] sm:$0xff]  ;;  %v5029_v59 = vld [vmem:[#allocation3 + $0xb2] sm:$0xff]  ;;  %v9839_v7 = vpack.c.bf16 %v4775_v28, %v4775_v28  ;;  %3268 = vst.msk [vmem:[#allocation5 + $0xa8] sm:$0xf] %vm3253_vm15, %v7646_v27 }
 0x2eb   : > { %v5028_v13 = vld [vmem:[#allocation3 + $0xaa] sm:$0xff]  ;;  %v7649_v39 = vpack.c.bf16 %v3110_v62, %v3110_v62  ;;  %5190 = vst.msk [vmem:[#allocation5 + $0x98] sm:$0xf] %vm3253_vm15, %v9834_v20  ;;  %5191 = vst.msk [vmem:[#allocation5 + $0xa4] sm:$0xf] %vm3253_vm15, %v9836_v11  ;;  %v9848_v12 = vpack.c.bf16 %v5029_v59, %v5029_v59 }
 0x2ec   : > { %v9846_v45 = vpack.c.bf16 %v5028_v13, %v5028_v13  ;;  %v4070_v43 = vld [vmem:[#allocation3 + $0xb1] sm:$0xff]  ;;  %4232 = vst.msk [vmem:[#allocation5 + $0xb8] sm:$0xf] %vm3253_vm15, %v9839_v7 }
 0x2ed   : > { %v3108_v46 = vld [vmem:[#allocation3 + $0xb0] sm:$0xff]  ;;  %v7773_v0 = vpack.c.bf16 %v4070_v43, %v4070_v43  ;;  %3271 = vst.msk [vmem:[#allocation5 + $0xcc] sm:$0xf] %vm3253_vm15, %v7649_v39  ;;  %3683 = vrot.lane.b32.xlu0 %v9674_v22, %s8431_s21  ;;  %5189 = vst.msk [vmem:[#allocation5 + $0x8c] sm:$0xf] %vm3253_vm15, %v9848_v12  ;;  %v9869_v22 = vpack.c.bf16 %v4513_v23, %v4513_v23 }
 0x2ee   : > { %v7647_v41 = vpack.c.bf16 %v3108_v46, %v3108_v46  ;;  %4391 = vrot.lane.b32.xlu1 %v9657_v1, %s8430_s17  ;;  %5188 = vst.msk [vmem:[#allocation5 + $0x80] sm:$0xf] %vm3253_vm15, %v9846_v45 }
 0x2ef   : > { %4230 = vst.msk [vmem:[#allocation5 + $0xa0] sm:$0xf] %vm3253_vm15, %v7773_v0  ;;  %v4770_v0 = vld [vmem:[#allocation3 + $0x91] sm:$0xff] }
 0x2f0   : > { %3269 = vst.msk [vmem:[#allocation5 + $0xb4] sm:$0xf] %vm3253_vm15, %v7647_v41  ;;  %v9957_v33 = vpack.c.bf16 %v4770_v0, %v4770_v0 }
 0x2f1   : > { %4646 = vrot.lane.b32.xlu0 %v9863_v8, %s8431_s21 }
 0x2f2   : > { %3685 = vrot.lane.b32.xlu1 %v9676_v42, %s8431_s21  ;;  %v8289_v34 = vld [vmem:[#allocation5 + $0x98] ss:$12 sps:$4 sm:$0xff]  }
 0x2f3   : > { %v4769_v42 = vld [vmem:[#allocation3 + $0x81] sm:$0xff] }
 0x2f4   : > { %v9884_v14 = vpack.c.bf16 %v4769_v42, %v4769_v42 }
 0x2f5   : > { %v8285_v40 = vld [vmem:[#allocation5 + $0x80] ss:$12 sps:$4 sm:$0xff]   ;;  %3940 = vrot.lane.b32.xlu0 %v9802_v56, %s8432_s16 }
 0x2f6   : > { %4648 = vrot.lane.b32.xlu1 %v9869_v22, %s8431_s21  ;;  %8138 = vmatmul.mubr.msk.bf16.gmra.mxu0 %vm320_vm13, %v8285_v40 }
 0x2f7   : > { %8141 = vmatprep.mubr.msk.bf16.mxu0 %vm320_vm13, %v8289_v34  ;;  %v4771_v34 = vld [vmem:[#allocation3 + $0x99] sm:$0xff] }
 0x2f8   : > { %v8111_v44 = vpop.f32.mrf.mxu1 }
 0x2f9   : > { %4902 = vrot.lane.b32.xlu0 %v9876_v26, %s8432_s16  ;;  %v2975_v54 = vadd.f32 %v8111_v44, %v9544_v57 }
 0x2fa   : > { %3942 = vrot.lane.b32.xlu1 %v9811_v6, %s8432_s16  ;;  %v2966_v50 = vpop.f32.mrf.mxu1 }
 0x2fb   : > { %v3419_v35 = vpop.permute.xlu0 %3418  ;;  %v3047_v55 = vmax.f32 %v2975_v54, 0.0  ;;  %v2967_v38 = vadd.f32 %v9544_v57, %v2966_v50 }
 0x2fc   : > { %3513 = vst.msk [vmem:[#allocation5 + $0x18] sm:$0xf] %vm3510_vm1, %v3419_v35  ;;  %v8112_v37 = vpop.f32.mrf.mxu1 }
 0x2fd   : > { %3430 = vrot.lane.b32.xlu0 %v9640_v24, %s8430_s17  ;;  %3079 = vst.msk [vmem:[#allocation3 + $0xf1] sm:$0xff] %vm320_vm13, %v3047_v55  ;;  %v3045_v17 = vmax.f32 %v2967_v38, 0.0  ;;  %v2978_v32 = vadd.f32 %v8112_v37, %v9544_v57  ;;  %v9986_v37 = vld [vmem:[%s10947_s2] ss:$0 sm:$0xff] }
 0x2fe   : > { %4904 = vrot.lane.b32.xlu1 %v9884_v14, %s8432_s16  ;;  %v2969_v56 = vpop.f32.mrf.mxu1 }
 0x2ff   : > { %v3421_v5 = vpop.permute.xlu1 %3420  ;;  %v3423_v63 = vpop.permute.xlu0 %3422  ;;  %3077 = vst.msk [vmem:[#allocation3 + $0xd9] sm:$0xff] %vm320_vm13, %v3045_v17  ;;  %v3048_v60 = vmax.f32 %v2978_v32, 0.0  ;;  %v2970_v47 = vadd.f32 %v9544_v57, %v2969_v56 }
 0x300   : > { %3514 = vst.msk [vmem:[#allocation5 + $0x24] sm:$0xf] %vm3510_vm1, %v3421_v5  ;;  %3515 = vst.msk [vmem:[#allocation5 + $0x30] sm:$0xf] %vm3510_vm1, %v3423_v63 }
 0x301   : > { %4393 = vrot.lane.b32.xlu0 %v9771_v48, %s8430_s17  ;;  %3080 = vst.msk [vmem:[#allocation3 + $0xf9] sm:$0xff] %vm320_vm13, %v3048_v60  ;;  %v3046_v24 = vmax.f32 %v2970_v47, 0.0  ;;  %v4517_v60 = vld [vmem:[#allocation3 + $0xb0] sm:$0xff] }
 0x302   : > { %3432 = vrot.lane.b32.xlu1 %v9667_v36, %s8430_s17  ;;  %v10000_v29 = vpack.c.bf16 %v4517_v60, %v4517_v60 }
 0x303   : > { %v3425_v61 = vpop.permute.xlu1 %3424  ;;  %3078 = vst.msk [vmem:[#allocation3 + $0xe1] sm:$0xff] %vm320_vm13, %v3046_v24 }
 0x304   : > { %3516 = vst.msk [vmem:[#allocation5 + $0x3c] sm:$0xf] %vm3510_vm1, %v3425_v61  ;;  %v4778_v3 = vld [vmem:[#allocation3 + $0xf1] sm:$0xff] }
 0x305   : > { %v3113_v6 = vld [vmem:[#allocation3 + $0xf0] sm:$0xff]  ;;  %3687 = vrot.lane.b32.xlu0 %v9655_v53, %s8431_s21  ;;  %v9909_v36 = vpack.c.bf16 %v4778_v3, %v4778_v3 }
 0x306   : > { %4395 = vrot.lane.b32.xlu1 %v9773_v49, %s8430_s17  ;;  %v7652_v4 = vpack.c.bf16 %v3113_v6, %v3113_v6  ;;  %v4776_v10 = vld [vmem:[#allocation3 + $0xd9] sm:$0xff]  ;;  %v4772_v3 = vld [vmem:[#allocation3 + $0xa9] sm:$0xff] }
 0x307   : > { %v3111_v58 = vld [vmem:[#allocation3 + $0xd8] sm:$0xff]  ;;  %v9913_v15 = vpack.c.bf16 %v4776_v10, %v4776_v10  ;;  %4235 = vst.msk [vmem:[#allocation5 + $0xdc] sm:$0xf] %vm3253_vm15, %v9909_v36 }
 0x308   : > { %v7650_v21 = vpack.c.bf16 %v3111_v58, %v3111_v58  ;;  %3274 = vst.msk [vmem:[#allocation5 + $0xf0] sm:$0xf] %vm3253_vm15, %v7652_v4  ;;  %v5034_v18 = vld [vmem:[#allocation3 + $0xf2] sm:$0xff]  ;;  %v5035_v31 = vld [vmem:[#allocation3 + $0xfa] sm:$0xff] }
 0x309   : > { %4650 = vrot.lane.b32.xlu0 %v9911_v9, %s8431_s21  ;;  %v9922_v53 = vpack.c.bf16 %v5034_v18, %v5034_v18  ;;  %v9924_v30 = vpack.c.bf16 %v5035_v31, %v5035_v31  ;;  %v4779_v51 = vld [vmem:[#allocation3 + $0xf9] sm:$0xff]  ;;  %4233 = vst.msk [vmem:[#allocation5 + $0xc4] sm:$0xf] %vm3253_vm15, %v9913_v15  ;;  %v10011_v31 = vpack.c.bf16 %v4772_v3, %v4772_v3 }
 0x30a   : > { %3689 = vrot.lane.b32.xlu1 %v9657_v1, %s8431_s21  ;;  %3272 = vst.msk [vmem:[#allocation5 + $0xd8] sm:$0xf] %vm3253_vm15, %v7650_v21  ;;  %v3114_v27 = vld [vmem:[#allocation3 + $0xf8] sm:$0xff]  ;;  %v5033_v62 = vld [vmem:[#allocation3 + $0xe2] sm:$0xff]  ;;  %v9929_v13 = vpack.c.bf16 %v4779_v51, %v4779_v51  ;;  %v9931_v1 = vpack.c.bf16 %v4515_v25, %v4515_v25 }
 0x30b   : > { %v5032_v28 = vld [vmem:[#allocation3 + $0xda] sm:$0xff]  ;;  %v7653_v59 = vpack.c.bf16 %v3114_v27, %v3114_v27  ;;  %5194 = vst.msk [vmem:[#allocation5 + $0xc8] sm:$0xf] %vm3253_vm15, %v9922_v53  ;;  %5195 = vst.msk [vmem:[#allocation5 + $0xd4] sm:$0xf] %vm3253_vm15, %v9924_v30  ;;  %v9939_v43 = vpack.c.bf16 %v5033_v62, %v5033_v62 }
 0x30c   : > { %v9937_v39 = vpack.c.bf16 %v5032_v28, %v5032_v28  ;;  %v4777_v46 = vld [vmem:[#allocation3 + $0xe1] sm:$0xff]  ;;  %4236 = vst.msk [vmem:[#allocation5 + $0xe8] sm:$0xf] %vm3253_vm15, %v9929_v13 }
 0x30d   : > { %v3112_v52 = vld [vmem:[#allocation3 + $0xe0] sm:$0xff]  ;;  %v9941_v41 = vpack.c.bf16 %v4777_v46, %v4777_v46  ;;  %3275 = vst.msk [vmem:[#allocation5 + $0xfc] sm:$0xf] %vm3253_vm15, %v7653_v59  ;;  %3944 = vrot.lane.b32.xlu0 %v9863_v8, %s8432_s16  ;;  %5193 = vst.msk [vmem:[#allocation5 + $0xbc] sm:$0xf] %vm3253_vm15, %v9939_v43  ;;  %v9963_v8 = vpack.c.bf16 %v4771_v34, %v4771_v34 }
 0x30e   : > { %v7651_v23 = vpack.c.bf16 %v3112_v52, %v3112_v52  ;;  %4652 = vrot.lane.b32.xlu1 %v9931_v1, %s8431_s21  ;;  %5192 = vst.msk [vmem:[#allocation5 + $0xb0] sm:$0xf] %vm3253_vm15, %v9937_v39 }
 0x30f   : > { %4234 = vst.msk [vmem:[#allocation5 + $0xd0] sm:$0xf] %vm3253_vm15, %v9941_v41 }
 0x310   : > { %3273 = vst.msk [vmem:[#allocation5 + $0xe4] sm:$0xf] %vm3253_vm15, %v7651_v23 }
 0x311   : > { %4906 = vrot.lane.b32.xlu0 %v9957_v33, %s8432_s16 }
 0x312   : > { %3946 = vrot.lane.b32.xlu1 %v9869_v22, %s8432_s16  ;;  %v8306_v40 = vld [vmem:[#allocation5 + $0xc8] ss:$12 sps:$4 sm:$0xff]  }
 0x315   : > { %v8305_v42 = vld [vmem:[#allocation5 + $0xb0] ss:$12 sps:$4 sm:$0xff]   ;;  %3434 = vrot.lane.b32.xlu0 %v9876_v26, %s8430_s17 }
 0x316   : > { %4908 = vrot.lane.b32.xlu1 %v9963_v8, %s8432_s16  ;;  %8142 = vmatmul.mubr.msk.bf16.gmra.mxu0 %vm320_vm13, %v8305_v42  ;;  %v4516_v26 = vld [vmem:[#allocation3 + $0xa8] sm:$0xff] }
 0x317   : > { %8145 = vmatprep.mubr.msk.bf16.mxu0 %vm320_vm13, %v8306_v40  ;;  %v9989_v5 = vpack.c.bf16 %v4516_v26, %v4516_v26 }
 0x318   : > { %v8115_v44 = vpop.f32.mrf.mxu1 }
 0x319   : > { %4397 = vrot.lane.b32.xlu0 %v9761_v19, %s8430_s17  ;;  %v2991_v22 = vadd.f32 %v8115_v44, %v9544_v57 }
 0x31a   : > { %3436 = vrot.lane.b32.xlu1 %v9884_v14, %s8430_s17  ;;  %v2982_v54 = vpop.f32.mrf.mxu1 }
 0x31b   : > { %v3427_v50 = vpop.permute.xlu0 %3426  ;;  %v3051_v35 = vmax.f32 %v2991_v22, 0.0  ;;  %v2983_v55 = vadd.f32 %v9544_v57, %v2982_v54 }
 0x31c   : > { %3517 = vst.msk [vmem:[#allocation5 + $0x48] sm:$0xf] %vm3510_vm1, %v3427_v50  ;;  %v8116_v38 = vpop.f32.mrf.mxu1 }
 0x31d   : > { %3691 = vrot.lane.b32.xlu0 %v9771_v48, %s8431_s21  ;;  %3083 = vst.msk [vmem:[#allocation3 + $0x121] sm:$0xff] %vm320_vm13, %v3051_v35  ;;  %v3049_v14 = vmax.f32 %v2983_v55, 0.0  ;;  %v2994_v57 = vadd.f32 %v9986_v37, %v8116_v38 }
 0x31e   : > { %4399 = vrot.lane.b32.xlu1 %v9763_v2, %s8430_s17  ;;  %v2985_v17 = vpop.f32.mrf.mxu1 }
 0x31f   : > { %v4378_v56 = vpop.permute.xlu0 %4377  ;;  %3081 = vst.msk [vmem:[#allocation3 + $0x109] sm:$0xff] %vm320_vm13, %v3049_v14  ;;  %v3052_v63 = vmax.f32 %v2994_v57, 0.0  ;;  %v2986_v48 = vadd.f32 %v9986_v37, %v2985_v17 }
 0x320   : > { %v3429_v32 = vpop.permute.xlu1 %3428  ;;  %4473 = vst.msk [vmem:[#allocation5 + $0x4] sm:$0xf] %vm3510_vm1, %v4378_v56 }
 0x321   : > { %3518 = vst.msk [vmem:[#allocation5 + $0x54] sm:$0xf] %vm3510_vm1, %v3429_v32  ;;  %4654 = vrot.lane.b32.xlu0 %v9989_v5, %s8431_s21  ;;  %v3050_v47 = vmax.f32 %v2986_v48, 0.0  ;;  %v4518_v32 = vld [vmem:[#allocation3 + $0xc0] sm:$0xff] }
 0x322   : > { %3693 = vrot.lane.b32.xlu1 %v9773_v49, %s8431_s21  ;;  %3084 = vst.msk [vmem:[#allocation3 + $0x129] sm:$0xff] %vm320_vm13, %v3052_v63  ;;  %v10074_v60 = vpack.c.bf16 %v4518_v32, %v4518_v32 }
 0x323   : > { %v3672_v61 = vpop.permute.xlu0 %3671  ;;  %3082 = vst.msk [vmem:[#allocation3 + $0x111] sm:$0xff] %vm320_vm13, %v3050_v47  ;;  %v4519_v47 = vld [vmem:[#allocation3 + $0xc8] sm:$0xff] }
 0x324   : > { %v4380_v24 = vpop.permute.xlu1 %4379  ;;  %3768 = vst.msk [vmem:[#allocation5] sm:$0xf] %vm3767_vm2, %v3672_v61  ;;  %v4782_v6 = vld [vmem:[#allocation3 + $0x121] sm:$0xff]  ;;  %v10083_v61 = vpack.c.bf16 %v4519_v47, %v4519_v47 }
 0x325   : > { %4474 = vst.msk [vmem:[#allocation5 + $0x10] sm:$0xf] %vm3510_vm1, %v4380_v24  ;;  %v3117_v49 = vld [vmem:[#allocation3 + $0x120] sm:$0xff]  ;;  %3948 = vrot.lane.b32.xlu0 %v9911_v9, %s8432_s16  ;;  %v10009_v4 = vpack.c.bf16 %v4782_v6, %v4782_v6  ;;  %v4773_v9 = vld [vmem:[#allocation3 + $0xb1] sm:$0xff] }
 0x326   : > { %4656 = vrot.lane.b32.xlu1 %v10000_v29, %s8431_s21  ;;  %v7656_v10 = vpack.c.bf16 %v3117_v49, %v3117_v49  ;;  %v4780_v58 = vld [vmem:[#allocation3 + $0x109] sm:$0xff]  ;;  %v10033_v22 = vpack.c.bf16 %v4773_v9, %v4773_v9 }
 0x327   : > { %v3115_v21 = vld [vmem:[#allocation3 + $0x108] sm:$0xff]  ;;  %v4635_v18 = vpop.permute.xlu0 %4634  ;;  %v10013_v51 = vpack.c.bf16 %v4780_v58, %v4780_v58  ;;  %4239 = vst.msk [vmem:[#allocation5 + $0x10c] sm:$0xf] %vm3253_vm15, %v10009_v4 }
 0x328   : > { %v3674_v25 = vpop.permute.xlu1 %3673  ;;  %v7654_v27 = vpack.c.bf16 %v3115_v21, %v3115_v21  ;;  %3278 = vst.msk [vmem:[#allocation5 + $0x120] sm:$0xf] %vm3253_vm15, %v7656_v10 }
 0x329   : > { %3769 = vst.msk [vmem:[#allocation5 + $0xc] sm:$0xf] %vm3767_vm2, %v3674_v25  ;;  %4730 = vst.msk [vmem:[#allocation5 + $0x4] sm:$0xf] %vm3767_vm2, %v4635_v18  ;;  %v5038_v28 = vld [vmem:[#allocation3 + $0x122] sm:$0xff]  ;;  %v5039_v62 = vld [vmem:[#allocation3 + $0x12a] sm:$0xff]  ;;  %4910 = vrot.lane.b32.xlu0 %v10011_v31, %s8432_s16 }
 0x32a   : > { %3950 = vrot.lane.b32.xlu1 %v9931_v1, %s8432_s16  ;;  %v10024_v59 = vpack.c.bf16 %v5038_v28, %v5038_v28  ;;  %v10026_v46 = vpack.c.bf16 %v5039_v62, %v5039_v62  ;;  %v4783_v52 = vld [vmem:[#allocation3 + $0x129] sm:$0xff]  ;;  %4237 = vst.msk [vmem:[#allocation5 + $0xf4] sm:$0xf] %vm3253_vm15, %v10013_v51  ;;  %3276 = vst.msk [vmem:[#allocation5 + $0x108] sm:$0xf] %vm3253_vm15, %v7654_v27  ;;  %v5037_v34 = vld [vmem:[#allocation3 + $0x112] sm:$0xff] }
 0x32b   : > { %v3118_v0 = vld [vmem:[#allocation3 + $0x128] sm:$0xff]  ;;  %v10031_v40 = vpack.c.bf16 %v4783_v52, %v4783_v52  ;;  %v3929_v44 = vpop.permute.xlu0 %3928  ;;  %v10041_v50 = vpack.c.bf16 %v5037_v34, %v5037_v34  ;;  %v4781_v35 = vld [vmem:[#allocation3 + $0x111] sm:$0xff] }
 0x32c   : > { %v5036_v23 = vld [vmem:[#allocation3 + $0x10a] sm:$0xff]  ;;  %v7657_v1 = vpack.c.bf16 %v3118_v0, %v3118_v0  ;;  %v4637_v42 = vpop.permute.xlu1 %4636  ;;  %5198 = vst.msk [vmem:[#allocation5 + $0xf8] sm:$0xf] %vm3253_vm15, %v10024_v59  ;;  %5199 = vst.msk [vmem:[#allocation5 + $0x104] sm:$0xf] %vm3253_vm15, %v10026_v46  ;;  %v10045_v26 = vpack.c.bf16 %v4781_v35, %v4781_v35 }
 0x32d   : > { %v10039_v54 = vpack.c.bf16 %v5036_v23, %v5036_v23  ;;  %v3116_v55 = vld [vmem:[#allocation3 + $0x110] sm:$0xff]  ;;  %4731 = vst.msk [vmem:[#allocation5 + $0x10] sm:$0xf] %vm3767_vm2, %v4637_v42  ;;  %3438 = vrot.lane.b32.xlu0 %v9957_v33, %s8430_s17 }
 0x32e   : > { %4025 = vst.msk [vmem:[#allocation5] sm:$0xf] %vm4024_vm3, %v3929_v44  ;;  %v7655_v38 = vpack.c.bf16 %v3116_v55, %v3116_v55  ;;  %4912 = vrot.lane.b32.xlu1 %v10033_v22, %s8432_s16  ;;  %v4520_v44 = vld [vmem:[#allocation3 + $0xd8] sm:$0xff] }
 0x32f   : > { %4240 = vst.msk [vmem:[#allocation5 + $0x118] sm:$0xf] %vm3253_vm15, %v10031_v40  ;;  %3279 = vst.msk [vmem:[#allocation5 + $0x12c] sm:$0xf] %vm3253_vm15, %v7657_v1  ;;  %v4891_v57 = vpop.permute.xlu0 %4890  ;;  %v10125_v32 = vpack.c.bf16 %v4520_v44, %v4520_v44 }
 0x330   : > { %5196 = vst.msk [vmem:[#allocation5 + $0xe0] sm:$0xf] %vm3253_vm15, %v10039_v54  ;;  %5197 = vst.msk [vmem:[#allocation5 + $0xec] sm:$0xf] %vm3253_vm15, %v10041_v50  ;;  %v3931_v14 = vpop.permute.xlu1 %3930 }
 0x331   : > { %4238 = vst.msk [vmem:[#allocation5 + $0x100] sm:$0xf] %vm3253_vm15, %v10045_v26  ;;  %3277 = vst.msk [vmem:[#allocation5 + $0x114] sm:$0xf] %vm3253_vm15, %v7655_v38  ;;  %4401 = vrot.lane.b32.xlu0 %v9846_v45, %s8430_s17 }
 0x332   : > { %4026 = vst.msk [vmem:[#allocation5 + $0xc] sm:$0xf] %vm4024_vm3, %v3931_v14  ;;  %4986 = vst.msk [vmem:[#allocation5 + $0x4] sm:$0xf] %vm4024_vm3, %v4891_v57  ;;  %3440 = vrot.lane.b32.xlu1 %v9963_v8, %s8430_s17 }
 0x333   : > { %v4382_v17 = vpop.permute.xlu0 %4381  ;;  %v8312_v56 = vld [vmem:[#allocation5 + $0xf8] ss:$12 sps:$4 sm:$0xff]  }
 0x334   : > { %v4893_v33 = vpop.permute.xlu1 %4892  ;;  %4475 = vst.msk [vmem:[#allocation5 + $0x1c] sm:$0xf] %vm3510_vm1, %v4382_v17 }
 0x335   : > { %4987 = vst.msk [vmem:[#allocation5 + $0x10] sm:$0xf] %vm4024_vm3, %v4893_v33  ;;  %3695 = vrot.lane.b32.xlu0 %v9761_v19, %s8431_s21 }
 0x336   : > { %4403 = vrot.lane.b32.xlu1 %v9848_v12, %s8430_s17 }
 0x337   : > { %v8311_v63 = vld [vmem:[#allocation5 + $0xe0] ss:$12 sps:$4 sm:$0xff]   ;;  %v3676_v48 = vpop.permute.xlu0 %3675 }
 0x338   : > { %8146 = vmatmul.mubr.msk.bf16.gmra.mxu0 %vm320_vm13, %v8311_v63  ;;  %v4384_v8 = vpop.permute.xlu1 %4383  ;;  %3770 = vst.msk [vmem:[#allocation5 + $0x18] sm:$0xf] %vm3767_vm2, %v3676_v48 }
 0x339   : > { %8149 = vmatprep.mubr.msk.bf16.mxu0 %vm320_vm13, %v8312_v56  ;;  %4476 = vst.msk [vmem:[#allocation5 + $0x28] sm:$0xf] %vm3510_vm1, %v4384_v8  ;;  %4658 = vrot.lane.b32.xlu0 %v10074_v60, %s8431_s21  ;;  %v8300_v3 = vld [vmem:[#allocation5] ss:$12 sps:$4 sm:$0xff]  }
 0x33a   : > { %3697 = vrot.lane.b32.xlu1 %v9763_v2, %s8431_s21 }
 0x33b   : > { %v4639_v24 = vpop.permute.xlu0 %4638 }
 0x33c   : > { %v3678_v19 = vpop.permute.xlu1 %3677  ;;  %v8302_v6 = vld [vmem:[#allocation5 + $0x4] ss:$12 sps:$4 sm:$0xff]   ;;  %4732 = vst.msk [vmem:[#allocation5 + $0x1c] sm:$0xf] %vm3767_vm2, %v4639_v24 }
 0x33d   : > { %3771 = vst.msk [vmem:[#allocation5 + $0x24] sm:$0xf] %vm3767_vm2, %v3678_v19  ;;  %3952 = vrot.lane.b32.xlu0 %v9989_v5, %s8432_s16  ;;  %5745 = vmatprep.mubr.bf16.mxu1 %v8302_v6  ;;  %v4521_v19 = vld [vmem:[#allocation3 + $0xe0] sm:$0xff] }
 0x33e   : > { %4660 = vrot.lane.b32.xlu1 %v10083_v61, %s8431_s21  ;;  %5746 = vmatmul.mubr.bf16.vlgmr.msra.gmra.mxu1 %v8300_v3 }
 0x33f   : > { %v3933_v49 = vpop.permute.xlu0 %3932 }
 0x340   : > { %v4641_v2 = vpop.permute.xlu1 %4640  ;;  %4027 = vst.msk [vmem:[#allocation5 + $0x18] sm:$0xf] %vm4024_vm3, %v3933_v49  ;;  %v8119_v10 = vpop.f32.mrf.mxu1 }
 0x341   : > { %4733 = vst.msk [vmem:[#allocation5 + $0x28] sm:$0xf] %vm3767_vm2, %v4641_v2  ;;  %4914 = vrot.lane.b32.xlu0 %v9825_v16, %s8432_s16  ;;  %v3007_v58 = vadd.f32 %v9986_v37, %v8119_v10 }
 0x342   : > { %3954 = vrot.lane.b32.xlu1 %v10000_v29, %s8432_s16  ;;  %v2998_v21 = vpop.f32.mrf.mxu1 }
 0x343   : > { %v4895_v5 = vpop.permute.xlu0 %4894  ;;  %v3055_v18 = vmax.f32 %v3007_v58, 0.0  ;;  %v2999_v27 = vadd.f32 %v9986_v37, %v2998_v21 }
 0x344   : > { %v3935_v25 = vpop.permute.xlu1 %3934  ;;  %4988 = vst.msk [vmem:[#allocation5 + $0x1c] sm:$0xf] %vm4024_vm3, %v4895_v5  ;;  %v8120_v9 = vpop.f32.mrf.mxu1 }
 0x345   : > { %4028 = vst.msk [vmem:[#allocation5 + $0x24] sm:$0xf] %vm4024_vm3, %v3935_v25  ;;  %3442 = vrot.lane.b32.xlu0 %v10011_v31, %s8430_s17  ;;  %v3053_v29 = vmax.f32 %v2999_v27, 0.0  ;;  %v3010_v28 = vadd.f32 %v9986_v37, %v8120_v9  ;;  %v10147_v27 = vpack.c.bf16 %v4521_v19, %v4521_v19 }
 0x346   : > { %4916 = vrot.lane.b32.xlu1 %v9839_v7, %s8432_s16  ;;  %3087 = vst.msk [vmem:[#allocation3 + $0x151] sm:$0xff] %vm320_vm13, %v3055_v18  ;;  %v3001_v62 = vpop.f32.mrf.mxu1 }
 0x347   : > { %v4386_v0 = vpop.permute.xlu0 %4385  ;;  %3085 = vst.msk [vmem:[#allocation3 + $0x139] sm:$0xff] %vm320_vm13, %v3053_v29  ;;  %v3056_v23 = vmax.f32 %v3010_v28, 0.0  ;;  %v3002_v34 = vadd.f32 %v9986_v37, %v3001_v62 }
 0x348   : > { %v4897_v52 = vpop.permute.xlu1 %4896  ;;  %4477 = vst.msk [vmem:[#allocation5 + $0x34] sm:$0xf] %vm3510_vm1, %v4386_v0 }
 0x349   : > { %4989 = vst.msk [vmem:[#allocation5 + $0x28] sm:$0xf] %vm4024_vm3, %v4897_v52  ;;  %4405 = vrot.lane.b32.xlu0 %v9834_v20, %s8430_s17  ;;  %v3054_v31 = vmax.f32 %v3002_v34, 0.0 }
 0x34a   : > { %3444 = vrot.lane.b32.xlu1 %v10033_v22, %s8430_s17  ;;  %3088 = vst.msk [vmem:[#allocation3 + $0x159] sm:$0xff] %vm320_vm13, %v3056_v23 }
 0x34b   : > { %v3680_v42 = vpop.permute.xlu0 %3679  ;;  %3086 = vst.msk [vmem:[#allocation3 + $0x141] sm:$0xff] %vm320_vm13, %v3054_v31  ;;  %v5214_v56 = vld [vmem:[#allocation5 + $0x18] sm:$0xff] }
 0x34c   : > { %v4388_v1 = vpop.permute.xlu1 %4387  ;;  %3772 = vst.msk [vmem:[#allocation5 + $0x30] sm:$0xf] %vm3767_vm2, %v3680_v42 }
 0x34d   : > { %4478 = vst.msk [vmem:[#allocation5 + $0x40] sm:$0xf] %vm3510_vm1, %v4388_v1  ;;  %v4786_v35 = vld [vmem:[#allocation3 + $0x151] sm:$0xff]  ;;  %3699 = vrot.lane.b32.xlu0 %v9846_v45, %s8431_s21 }
 0x34e   : > { %v3121_v55 = vld [vmem:[#allocation3 + $0x150] sm:$0xff]  ;;  %4407 = vrot.lane.b32.xlu1 %v9836_v11, %s8430_s17  ;;  %v10123_v22 = vpack.c.bf16 %v4786_v35, %v4786_v35  ;;  %v4784_v14 = vld [vmem:[#allocation3 + $0x139] sm:$0xff] }
 0x34f   : > { %v7660_v38 = vpack.c.bf16 %v3121_v55, %v3121_v55  ;;  %v3119_v57 = vld [vmem:[#allocation3 + $0x138] sm:$0xff]  ;;  %v4643_v17 = vpop.permute.xlu0 %4642  ;;  %v10127_v48 = vpack.c.bf16 %v4784_v14, %v4784_v14 }
 0x350   : > { %v3682_v33 = vpop.permute.xlu1 %3681  ;;  %v5216_v63 = vld [vmem:[#allocation5 + $0x24] sm:$0xff]  ;;  %v7658_v47 = vpack.c.bf16 %v3119_v57, %v3119_v57  ;;  %4243 = vst.msk [vmem:[#allocation5 + $0x13c] sm:$0xf] %vm3253_vm15, %v10123_v22 }
 0x351   : > { %v8303_v8 = vld [vmem:[#allocation5 + $0x1c] ss:$12 sps:$4 sm:$0xff]   ;;  %3282 = vst.msk [vmem:[#allocation5 + $0x150] sm:$0xf] %vm3253_vm15, %v7660_v38  ;;  %v7226_v45 = vcombine.low %v5214_v56, %v5216_v63  ;;  %4662 = vrot.lane.b32.xlu0 %v10125_v32, %s8431_s21  ;;  %4241 = vst.msk [vmem:[#allocation5 + $0x124] sm:$0xf] %vm3253_vm15, %v10127_v48 }
 0x352   : > { %3773 = vst.msk [vmem:[#allocation5 + $0x3c] sm:$0xf] %vm3767_vm2, %v3682_v33  ;;  %4734 = vst.msk [vmem:[#allocation5 + $0x34] sm:$0xf] %vm3767_vm2, %v4643_v17  ;;  %v5042_v24 = vld [vmem:[#allocation3 + $0x152] sm:$0xff]  ;;  %v5043_v3 = vld [vmem:[#allocation3 + $0x15a] sm:$0xff]  ;;  %3701 = vrot.lane.b32.xlu1 %v9848_v12, %s8431_s21  ;;  %5753 = vmatprep.mubr.bf16.mxu1 %v8303_v8 }
 0x353   : > { %v10138_v6 = vpack.c.bf16 %v5042_v24, %v5042_v24  ;;  %v10140_v2 = vpack.c.bf16 %v5043_v3, %v5043_v3  ;;  %v4787_v49 = vld [vmem:[#allocation3 + $0x159] sm:$0xff]  ;;  %3280 = vst.msk [vmem:[#allocation5 + $0x138] sm:$0xf] %vm3253_vm15, %v7658_v47  ;;  %v5041_v21 = vld [vmem:[#allocation3 + $0x142] sm:$0xff]  ;;  %v3937_v18 = vpop.permute.xlu0 %3936  ;;  %5754 = vmatmul.mubr.bf16.gmra.mxu1 %v7226_v45  ;;  %v4522_v33 = vld [vmem:[#allocation3 + $0xf0] sm:$0xff] }
 0x354   : > { %v3122_v10 = vld [vmem:[#allocation3 + $0x158] sm:$0xff]  ;;  %v10145_v25 = vpack.c.bf16 %v4787_v49, %v4787_v49  ;;  %v4645_v5 = vpop.permute.xlu1 %4644  ;;  %v10155_v29 = vpack.c.bf16 %v5041_v21, %v5041_v21  ;;  %v4785_v28 = vld [vmem:[#allocation3 + $0x141] sm:$0xff]  ;;  %4029 = vst.msk [vmem:[#allocation5 + $0x30] sm:$0xf] %vm4024_vm3, %v3937_v18  ;;  %v10201_v56 = vpack.c.bf16 %v4522_v33, %v4522_v33 }
 0x355   : > { %v5040_v58 = vld [vmem:[#allocation3 + $0x13a] sm:$0xff]  ;;  %v7661_v12 = vpack.c.bf16 %v3122_v10, %v3122_v10  ;;  %5202 = vst.msk [vmem:[#allocation5 + $0x128] sm:$0xf] %vm3253_vm15, %v10138_v6  ;;  %5203 = vst.msk [vmem:[#allocation5 + $0x134] sm:$0xf] %vm3253_vm15, %v10140_v2  ;;  %v10159_v52 = vpack.c.bf16 %v4785_v28, %v4785_v28  ;;  %3956 = vrot.lane.b32.xlu0 %v10074_v60, %s8432_s16 }
 0x356   : > { %v10153_v9 = vpack.c.bf16 %v5040_v58, %v5040_v58  ;;  %v3120_v62 = vld [vmem:[#allocation3 + $0x140] sm:$0xff]  ;;  %4735 = vst.msk [vmem:[#allocation5 + $0x40] sm:$0xf] %vm3767_vm2, %v4645_v5  ;;  %4664 = vrot.lane.b32.xlu1 %v10147_v27, %s8431_s21  ;;  %v4523_v63 = vld [vmem:[#allocation3 + $0xf8] sm:$0xff] }
 0x357   : > { %v7659_v0 = vpack.c.bf16 %v3120_v62, %v3120_v62  ;;  %4244 = vst.msk [vmem:[#allocation5 + $0x148] sm:$0xf] %vm3253_vm15, %v10145_v25  ;;  %3283 = vst.msk [vmem:[#allocation5 + $0x15c] sm:$0xf] %vm3253_vm15, %v7661_v12  ;;  %v4899_v34 = vpop.permute.xlu0 %4898  ;;  %v10210_v19 = vpack.c.bf16 %v4523_v63, %v4523_v63 }
 0x358   : > { %5200 = vst.msk [vmem:[#allocation5 + $0x110] sm:$0xf] %vm3253_vm15, %v10153_v9  ;;  %5201 = vst.msk [vmem:[#allocation5 + $0x11c] sm:$0xf] %vm3253_vm15, %v10155_v29  ;;  %v3939_v23 = vpop.permute.xlu1 %3938 }
 0x359   : > { %4242 = vst.msk [vmem:[#allocation5 + $0x130] sm:$0xf] %vm3253_vm15, %v10159_v52  ;;  %3281 = vst.msk [vmem:[#allocation5 + $0x144] sm:$0xf] %vm3253_vm15, %v7659_v0  ;;  %4918 = vrot.lane.b32.xlu0 %v9913_v15, %s8432_s16 }
 0x35a   : > { %4030 = vst.msk [vmem:[#allocation5 + $0x3c] sm:$0xf] %vm4024_vm3, %v3939_v23  ;;  %4990 = vst.msk [vmem:[#allocation5 + $0x34] sm:$0xf] %vm4024_vm3, %v4899_v34  ;;  %3958 = vrot.lane.b32.xlu1 %v10083_v61, %s8432_s16 }
 0x35b   : > { %v4390_v31 = vpop.permute.xlu0 %4389 }
 0x35c   : > { %v4901_v60 = vpop.permute.xlu1 %4900  ;;  %v8322_v1 = vld [vmem:[#allocation5 + $0x128] ss:$12 sps:$4 sm:$0xff]   ;;  %4479 = vst.msk [vmem:[#allocation5 + $0x4c] sm:$0xf] %vm3510_vm1, %v4390_v31 }
 0x35d   : > { %4991 = vst.msk [vmem:[#allocation5 + $0x40] sm:$0xf] %vm4024_vm3, %v4901_v60  ;;  %3446 = vrot.lane.b32.xlu0 %v9825_v16, %s8430_s17 }
 0x35e   : > { %4920 = vrot.lane.b32.xlu1 %v9941_v41, %s8432_s16 }
 0x35f   : > { %v8320_v42 = vld [vmem:[#allocation5 + $0x110] ss:$12 sps:$4 sm:$0xff]   ;;  %v3684_v44 = vpop.permute.xlu0 %3683 }
 0x360   : > { %8150 = vmatmul.mubr.msk.bf16.gmra.mxu0 %vm320_vm13, %v8320_v42  ;;  %v4392_v61 = vpop.permute.xlu1 %4391  ;;  %3774 = vst.msk [vmem:[#allocation5 + $0x48] sm:$0xf] %vm3767_vm2, %v3684_v44 }
 0x361   : > { %8153 = vmatprep.mubr.msk.bf16.mxu0 %vm320_vm13, %v8322_v1  ;;  %4480 = vst.msk [vmem:[#allocation5 + $0x58] sm:$0xf] %vm3510_vm1, %v4392_v61  ;;  %4409 = vrot.lane.b32.xlu0 %v9937_v39, %s8430_s17  ;;  %v5218_v38 = vld [vmem:[#allocation5 + $0x30] sm:$0xff] }
 0x362   : > { %3448 = vrot.lane.b32.xlu1 %v9839_v7, %s8430_s17 }
 0x363   : > { %v4647_v55 = vpop.permute.xlu0 %4646 }
 0x364   : > { %v3686_v35 = vpop.permute.xlu1 %3685  ;;  %v5220_v16 = vld [vmem:[#allocation5 + $0x3c] sm:$0xff]  ;;  %4736 = vst.msk [vmem:[#allocation5 + $0x4c] sm:$0xf] %vm3767_vm2, %v4647_v55 }
 0x365   : > { %v8307_v14 = vld [vmem:[#allocation5 + $0x34] ss:$12 sps:$4 sm:$0xff]   ;;  %3775 = vst.msk [vmem:[#allocation5 + $0x54] sm:$0xf] %vm3767_vm2, %v3686_v35  ;;  %v7229_v57 = vcombine.low %v5218_v38, %v5220_v16  ;;  %3703 = vrot.lane.b32.xlu0 %v9834_v20, %s8431_s21 }
 0x366   : > { %4411 = vrot.lane.b32.xlu1 %v9939_v43, %s8430_s17  ;;  %5761 = vmatprep.mubr.bf16.mxu1 %v8307_v14 }
 0x367   : > { %v3941_v17 = vpop.permute.xlu0 %3940  ;;  %5762 = vmatmul.mubr.bf16.gmra.mxu1 %v7229_v57  ;;  %v4524_v57 = vld [vmem:[#allocation3 + $0x108] sm:$0xff] }
 0x368   : > { %v4649_v7 = vpop.permute.xlu1 %4648  ;;  %4031 = vst.msk [vmem:[#allocation5 + $0x48] sm:$0xf] %vm4024_vm3, %v3941_v17 }
 0x369   : > { %4737 = vst.msk [vmem:[#allocation5 + $0x58] sm:$0xf] %vm3767_vm2, %v4649_v7  ;;  %4666 = vrot.lane.b32.xlu0 %v10201_v56, %s8431_s21  ;;  %v8123_v8 = vpop.f32.mrf.mxu1 }
 0x36a   : > { %3705 = vrot.lane.b32.xlu1 %v9836_v11, %s8431_s21  ;;  %v3023_v20 = vadd.f32 %v9986_v37, %v8123_v8 }
 0x36b   : > { %v4903_v45 = vpop.permute.xlu0 %4902  ;;  %v3014_v3 = vpop.f32.mrf.mxu1 }
 0x36c   : > { %v3943_v47 = vpop.permute.xlu1 %3942  ;;  %4992 = vst.msk [vmem:[#allocation5 + $0x4c] sm:$0xf] %vm4024_vm3, %v4903_v45  ;;  %v3059_v24 = vmax.f32 %v3023_v20, 0.0  ;;  %v3015_v11 = vadd.f32 %v9986_v37, %v3014_v3 }
 0x36d   : > { %4032 = vst.msk [vmem:[#allocation5 + $0x54] sm:$0xf] %vm4024_vm3, %v3943_v47  ;;  %3960 = vrot.lane.b32.xlu0 %v10125_v32, %s8432_s16  ;;  %v8124_v49 = vpop.f32.mrf.mxu1 }
 0x36e   : > { %4668 = vrot.lane.b32.xlu1 %v10210_v19, %s8431_s21  ;;  %3091 = vst.msk [vmem:[#allocation3 + $0x181] sm:$0xff] %vm320_vm13, %v3059_v24  ;;  %v3057_v21 = vmax.f32 %v3015_v11, 0.0  ;;  %v3026_v12 = vadd.f32 %v9986_v37, %v8124_v49  ;;  %v5048_v11 = vld [vmem:[#allocation3 + $0x19a] sm:$0xff]  ;;  %v5049_v49 = vld [vmem:[#allocation3 + $0x1a2] sm:$0xff] }
 0x36f   : > { %v3431_v58 = vpop.permute.xlu0 %3430  ;;  %v3017_v5 = vpop.f32.mrf.mxu1 }
 0x370   : > { %v4905_v10 = vpop.permute.xlu1 %4904  ;;  %3519 = vst.msk [vmem:[#allocation5 + $0x60] sm:$0xf] %vm3510_vm1, %v3431_v58  ;;  %v3060_v32 = vmax.f32 %v3026_v12, 0.0  ;;  %v3018_v18 = vadd.f32 %v9986_v37, %v3017_v5  ;;  %v7918_v58 = vpack.c.bf16 %v5048_v11, %v5048_v11  ;;  %v10281_v5 = vpack.c.bf16 %v4524_v57, %v4524_v57 }
 0x371   : > { %4993 = vst.msk [vmem:[#allocation5 + $0x58] sm:$0xf] %vm4024_vm3, %v4905_v10  ;;  %4922 = vrot.lane.b32.xlu0 %v9909_v36, %s8432_s16 }
 0x372   : > { %3962 = vrot.lane.b32.xlu1 %v10147_v27, %s8432_s16  ;;  %3089 = vst.msk [vmem:[#allocation3 + $0x169] sm:$0xff] %vm320_vm13, %v3057_v21  ;;  %3092 = vst.msk [vmem:[#allocation3 + $0x189] sm:$0xff] %vm320_vm13, %v3060_v32  ;;  %v3058_v0 = vmax.f32 %v3018_v18, 0.0  ;;  %v7919_v21 = vpack.c.bf16 %v5049_v49, %v5049_v49  ;;  %v4525_v32 = vld [vmem:[#allocation3 + $0x110] sm:$0xff] }
 0x373   : > { %v4394_v62 = vpop.permute.xlu0 %4393  ;;  %v5222_v60 = vld [vmem:[#allocation5 + $0x48] sm:$0xff]  ;;  %5208 = vst.msk [vmem:[#allocation5 + $0x170] sm:$0xf] %vm3253_vm15, %v7918_v58 }
 0x374   : > { %v3433_v28 = vpop.permute.xlu1 %3432  ;;  %4481 = vst.msk [vmem:[#allocation5 + $0x64] sm:$0xf] %vm3510_vm1, %v4394_v62  ;;  %v10299_v62 = vpack.c.bf16 %v4525_v32, %v4525_v32  ;;  %v8316_v58 = vld [vmem:[#allocation4 + $0x8] sm:$0xff]  }
 0x375   : > { %3520 = vst.msk [vmem:[#allocation5 + $0x6c] sm:$0xf] %vm3510_vm1, %v3433_v28  ;;  %3450 = vrot.lane.b32.xlu0 %v9913_v15, %s8430_s17  ;;  %v4790_v27 = vld [vmem:[#allocation3 + $0x181] sm:$0xff] }
 0x376   : > { %4924 = vrot.lane.b32.xlu1 %v9929_v13, %s8432_s16  ;;  %3090 = vst.msk [vmem:[#allocation3 + $0x171] sm:$0xff] %vm320_vm13, %v3058_v0  ;;  %v10237_v23 = vpack.c.bf16 %v4790_v27, %v4790_v27 }
 0x377   : > { %v3688_v34 = vpop.permute.xlu0 %3687  ;;  %5209 = vst.msk [vmem:[#allocation5 + $0x17c] sm:$0xf] %vm3253_vm15, %v7919_v21 }
 0x378   : > { %v4396_v37 = vpop.permute.xlu1 %4395  ;;  %v5224_v31 = vld [vmem:[#allocation5 + $0x54] sm:$0xff]  ;;  %3776 = vst.msk [vmem:[#allocation5 + $0x60] sm:$0xf] %vm3767_vm2, %v3688_v34 }
 0x379   : > { %v8309_v1 = vld [vmem:[#allocation5 + $0x4c] ss:$12 sps:$4 sm:$0xff]   ;;  %4482 = vst.msk [vmem:[#allocation5 + $0x70] sm:$0xf] %vm3510_vm1, %v4396_v37  ;;  %v7232_v42 = vcombine.low %v5222_v60, %v5224_v31  ;;  %4413 = vrot.lane.b32.xlu0 %v9922_v53, %s8430_s17 }
 0x37a   : > { %v4532_v61 = vld [vmem:[#allocation3 + $0x168] sm:$0xff]  ;;  %4247 = vst.msk [vmem:[#allocation5 + $0x16c] sm:$0xf] %vm3253_vm15, %v10237_v23  ;;  %3452 = vrot.lane.b32.xlu1 %v9941_v41, %s8430_s17  ;;  %5769 = vmatprep.mubr.bf16.mxu1 %v8309_v1 }
 0x37b   : > { %v4788_v44 = vld [vmem:[#allocation3 + $0x169] sm:$0xff]  ;;  %v10247_v15 = vpack.c.bf16 %v4532_v61, %v4532_v61  ;;  %v4651_v14 = vpop.permute.xlu0 %4650  ;;  %5770 = vmatmul.mubr.bf16.gmra.mxu1 %v7232_v42 }
 0x37c   : > { %v10249_v35 = vpack.c.bf16 %v4788_v44, %v4788_v44  ;;  %v5046_v55 = vld [vmem:[#allocation3 + $0x182] sm:$0xff]  ;;  %v5047_v38 = vld [vmem:[#allocation3 + $0x18a] sm:$0xff]  ;;  %v3690_v16 = vpop.permute.xlu1 %3689  ;;  %4738 = vst.msk [vmem:[#allocation5 + $0x64] sm:$0xf] %vm3767_vm2, %v4651_v14 }
 0x37d   : > { %v10251_v33 = vpack.c.bf16 %v5046_v55, %v5046_v55  ;;  %v10253_v7 = vpack.c.bf16 %v5047_v38, %v5047_v38  ;;  %v4791_v17 = vld [vmem:[#allocation3 + $0x189] sm:$0xff]  ;;  %3284 = vst.msk [vmem:[#allocation5 + $0x168] sm:$0xf] %vm3253_vm15, %v10247_v15  ;;  %v5045_v63 = vld [vmem:[#allocation3 + $0x172] sm:$0xff]  ;;  %3707 = vrot.lane.b32.xlu0 %v9937_v39, %s8431_s21 }
 0x37e   : > { %4245 = vst.msk [vmem:[#allocation5 + $0x154] sm:$0xf] %vm3253_vm15, %v10249_v35  ;;  %v5044_v41 = vld [vmem:[#allocation3 + $0x16a] sm:$0xff]  ;;  %v10261_v20 = vpack.c.bf16 %v4791_v17, %v4791_v17  ;;  %4415 = vrot.lane.b32.xlu1 %v9924_v30, %s8430_s17  ;;  %v10273_v45 = vpack.c.bf16 %v5045_v63, %v5045_v63  ;;  %v4526_v17 = vld [vmem:[#allocation3 + $0x120] sm:$0xff] }
 0x37f   : > { %3777 = vst.msk [vmem:[#allocation5 + $0x6c] sm:$0xf] %vm3767_vm2, %v3690_v16  ;;  %v4533_v8 = vld [vmem:[#allocation3 + $0x170] sm:$0xff]  ;;  %v10271_v47 = vpack.c.bf16 %v5044_v41, %v5044_v41  ;;  %v3945_v12 = vpop.permute.xlu0 %3944  ;;  %v8336_v60 = vld [vmem:[#allocation5 + $0x170] ss:$12 sps:$4 sm:$0xff]  }
 0x380   : > { %5206 = vst.msk [vmem:[#allocation5 + $0x158] sm:$0xf] %vm3253_vm15, %v10251_v33  ;;  %5207 = vst.msk [vmem:[#allocation5 + $0x164] sm:$0xf] %vm3253_vm15, %v10253_v7  ;;  %v10275_v24 = vpack.c.bf16 %v4533_v8, %v4533_v8  ;;  %v4789_v3 = vld [vmem:[#allocation3 + $0x171] sm:$0xff]  ;;  %v4653_v39 = vpop.permute.xlu1 %4652  ;;  %v4527_v41 = vld [vmem:[#allocation3 + $0x128] sm:$0xff] }
 0x381   : > { %v10277_v10 = vpack.c.bf16 %v4789_v3, %v4789_v3  ;;  %4248 = vst.msk [vmem:[#allocation5 + $0x178] sm:$0xf] %vm3253_vm15, %v10261_v20  ;;  %5204 = vst.msk [vmem:[#allocation5 + $0x140] sm:$0xf] %vm3253_vm15, %v10271_v47  ;;  %4670 = vrot.lane.b32.xlu0 %v10281_v5, %s8431_s21  ;;  %v6099_v55 = vld [vmem:[%s10950_s5] sm:$0x3]  ;;  %v10344_v3 = vpack.c.bf16 %v4526_v17, %v4526_v17  ;;  %v10346_v11 = vpack.c.bf16 %v4527_v41, %v4527_v41 }
 0x382   : > { %5205 = vst.msk [vmem:[#allocation5 + $0x14c] sm:$0xf] %vm3253_vm15, %v10273_v45  ;;  %3285 = vst.msk [vmem:[#allocation5 + $0x174] sm:$0xf] %vm3253_vm15, %v10275_v24  ;;  %3709 = vrot.lane.b32.xlu1 %v9939_v43, %s8431_s21  ;;  %8203 = vmatprep.subr.msk.bf16.mxu0 %vm2864_vm6, %v6099_v55  ;;  %v8315_v14 = vld [vmem:[#allocation4] sm:$0xff]  }
 0x383   : > { %4739 = vst.msk [vmem:[#allocation5 + $0x70] sm:$0xf] %vm3767_vm2, %v4653_v39  ;;  %v4907_v28 = vpop.permute.xlu0 %4906 }
 0x384   : > { %4033 = vst.msk [vmem:[#allocation5 + $0x60] sm:$0xf] %vm4024_vm3, %v3945_v12  ;;  %v3947_v18 = vpop.permute.xlu1 %3946  ;;  %4994 = vst.msk [vmem:[#allocation5 + $0x64] sm:$0xf] %vm4024_vm3, %v4907_v28 }
 0x385   : > { %4246 = vst.msk [vmem:[#allocation5 + $0x160] sm:$0xf] %vm3253_vm15, %v10277_v10  ;;  %3964 = vrot.lane.b32.xlu0 %v10201_v56, %s8432_s16 }
 0x386   : > { %4034 = vst.msk [vmem:[#allocation5 + $0x6c] sm:$0xf] %vm4024_vm3, %v3947_v18  ;;  %4672 = vrot.lane.b32.xlu1 %v10299_v62, %s8431_s21 }
 0x387   : > { %v8333_v0 = vld [vmem:[#allocation5 + $0x158] ss:$12 sps:$4 sm:$0xff]   ;;  %v3435_v37 = vpop.permute.xlu0 %3434 }
 0x388   : > { %v4909_v43 = vpop.permute.xlu1 %4908  ;;  %3521 = vst.msk [vmem:[#allocation5 + $0x78] sm:$0xf] %vm3510_vm1, %v3435_v37  ;;  %v8319_v37 = vld [vmem:[#allocation4 + $0x10] sm:$0xff]  }
 0x389   : > { %v8330_v27 = vld [vmem:[#allocation5 + $0x140] ss:$12 sps:$4 sm:$0xff]   ;;  %4995 = vst.msk [vmem:[#allocation5 + $0x70] sm:$0xf] %vm4024_vm3, %v4909_v43  ;;  %4926 = vrot.lane.b32.xlu0 %v10013_v51, %s8432_s16 }
 0x38a   : > { %8154 = vmatmul.mubr.msk.bf16.gmra.mxu0 %vm320_vm13, %v8330_v27  ;;  %3966 = vrot.lane.b32.xlu1 %v10210_v19, %s8432_s16 }
 0x38b   : > { %8157 = vmatprep.mubr.msk.bf16.mxu0 %vm320_vm13, %v8333_v0  ;;  %v4398_v56 = vpop.permute.xlu0 %4397  ;;  %v5226_v1 = vld [vmem:[#allocation5 + $0x60] sm:$0xff] }
 0x38c   : > { %v3437_v34 = vpop.permute.xlu1 %3436  ;;  %4483 = vst.msk [vmem:[#allocation5 + $0x7c] sm:$0xf] %vm3510_vm1, %v4398_v56  ;;  %v4529_v56 = vld [vmem:[#allocation3 + $0x140] sm:$0xff] }
 0x38d   : > { %3522 = vst.msk [vmem:[#allocation5 + $0x84] sm:$0xf] %vm3510_vm1, %v3437_v34  ;;  %3454 = vrot.lane.b32.xlu0 %v9909_v36, %s8430_s17  ;;  %v6268_v36 = vsel %vm2864_vm6, %v6099_v55, 0 }
 0x38e   : > { %4928 = vrot.lane.b32.xlu1 %v10045_v26, %s8432_s16  ;;  %8162 = vmatpush3.bf16.msra.mxu0 %v6268_v36 }
 0x38f   : > { %v3692_v19 = vpop.permute.xlu0 %3691 }
 0x390   : > { %v4400_v31 = vpop.permute.xlu1 %4399  ;;  %v5228_v42 = vld [vmem:[#allocation5 + $0x6c] sm:$0xff]  ;;  %3778 = vst.msk [vmem:[#allocation5 + $0x78] sm:$0xf] %vm3767_vm2, %v3692_v19 }
 0x391   : > { %v8313_v61 = vld [vmem:[#allocation5 + $0x64] ss:$12 sps:$4 sm:$0xff]   ;;  %4484 = vst.msk [vmem:[#allocation5 + $0x88] sm:$0xf] %vm3510_vm1, %v4400_v31  ;;  %v7235_v44 = vcombine.low %v5226_v1, %v5228_v42  ;;  %4417 = vrot.lane.b32.xlu0 %v10039_v54, %s8430_s17  ;;  %v10390_v1 = vpack.c.bf16 %v4529_v56, %v4529_v56 }
 0x392   : > { %8158 = vmatmul.mubr.msk.bf16.gmra.mxu0 %vm320_vm13, %v8336_v60  ;;  %3456 = vrot.lane.b32.xlu1 %v9929_v13, %s8430_s17 }
 0x393   : > { %5777 = vmatprep.mubr.bf16.mxu1 %v8313_v61  ;;  %v4655_v16 = vpop.permute.xlu0 %4654  ;;  %v8321_v61 = vld [vmem:[#allocation4 + $0x18] sm:$0xff]  }
 0x394   : > { %v3694_v38 = vpop.permute.xlu1 %3693  ;;  %5778 = vmatmul.mubr.bf16.gmra.mxu1 %v7235_v44  ;;  %4740 = vst.msk [vmem:[#allocation5 + $0x7c] sm:$0xf] %vm3767_vm2, %v4655_v16 }
 0x395   : > { %3779 = vst.msk [vmem:[#allocation5 + $0x84] sm:$0xf] %vm3767_vm2, %v3694_v38  ;;  %6187 = vrot.lane.b32.xlu0 %v8315_v14, %s8433_s14 }
 0x396   : > { %4419 = vrot.lane.b32.xlu1 %v10041_v50, %s8430_s17 }
 0x397   : > { %v3949_v57 = vpop.permute.xlu0 %3948 }
 0x398   : > { %v4657_v13 = vpop.permute.xlu1 %4656  ;;  %4035 = vst.msk [vmem:[#allocation5 + $0x78] sm:$0xf] %vm4024_vm3, %v3949_v57 }
 0x399   : > { %4741 = vst.msk [vmem:[#allocation5 + $0x88] sm:$0xf] %vm3767_vm2, %v4657_v13  ;;  %3713 = vrot.lane.b32.xlu0 %v9924_v30, %s8431_s21 }
 0x39a   : > { %3711 = vrot.lane.b32.xlu1 %v9922_v53, %s8431_s21 }
 0x39b   : > { %v4911_v8 = vpop.permute.xlu0 %4910 }
 0x39c   : > { %v3951_v63 = vpop.permute.xlu1 %3950  ;;  %4996 = vst.msk [vmem:[#allocation5 + $0x7c] sm:$0xf] %vm4024_vm3, %v4911_v8  ;;  %v8325_v8 = vld [vmem:[#allocation4 + $0x20] sm:$0xff]  }
 0x39d   : > { %4036 = vst.msk [vmem:[#allocation5 + $0x84] sm:$0xf] %vm4024_vm3, %v3951_v63  ;;  %4676 = vrot.lane.b32.xlu0 %v10346_v11, %s8431_s21 }
 0x39e   : > { %4674 = vrot.lane.b32.xlu1 %v10344_v3, %s8431_s21 }
 0x39f   : > { %v3439_v49 = vpop.permute.xlu0 %3438 }
 0x3a0   : > { %v4913_v53 = vpop.permute.xlu1 %4912  ;;  %3523 = vst.msk [vmem:[#allocation5 + $0x90] sm:$0xf] %vm3510_vm1, %v3439_v49 }
 0x3a1   : > { %4997 = vst.msk [vmem:[#allocation5 + $0x88] sm:$0xf] %vm4024_vm3, %v4913_v53  ;;  %3968 = vrot.lane.b32.xlu0 %v10281_v5, %s8432_s16 }
 0x3a2   : > { %6189 = vrot.lane.b32.xlu1 %v8316_v58, %s8433_s14 }
 0x3a3   : > { %v4402_v21 = vpop.permute.xlu0 %4401  ;;  %v5230_v32 = vld [vmem:[#allocation5 + $0x78] sm:$0xff] }
 0x3a4   : > { %v3441_v30 = vpop.permute.xlu1 %3440  ;;  %4485 = vst.msk [vmem:[#allocation5 + $0x94] sm:$0xf] %vm3510_vm1, %v4402_v21 }
 0x3a5   : > { %3524 = vst.msk [vmem:[#allocation5 + $0x9c] sm:$0xf] %vm3510_vm1, %v3441_v30  ;;  %4930 = vrot.lane.b32.xlu0 %v10009_v4, %s8432_s16 }
 0x3a6   : > { %3970 = vrot.lane.b32.xlu1 %v10299_v62, %s8432_s16 }
 0x3a7   : > { %v3696_v12 = vpop.permute.xlu0 %3695 }
 0x3a8   : > { %v4404_v39 = vpop.permute.xlu1 %4403  ;;  %v5232_v18 = vld [vmem:[#allocation5 + $0x84] sm:$0xff]  ;;  %3780 = vst.msk [vmem:[#allocation5 + $0x90] sm:$0xf] %vm3767_vm2, %v3696_v12 }
 0x3a9   : > { %v8317_v28 = vld [vmem:[#allocation5 + $0x7c] ss:$12 sps:$4 sm:$0xff]   ;;  %4486 = vst.msk [vmem:[#allocation5 + $0xa0] sm:$0xf] %vm3510_vm1, %v4404_v39  ;;  %v7238_v5 = vcombine.low %v5230_v32, %v5232_v18  ;;  %3458 = vrot.lane.b32.xlu0 %v10013_v51, %s8430_s17 }
 0x3aa   : > { %4932 = vrot.lane.b32.xlu1 %v10031_v40, %s8432_s16  ;;  %5785 = vmatprep.mubr.bf16.mxu1 %v8317_v28 }
 0x3ab   : > { %v4659_v0 = vpop.permute.xlu0 %4658  ;;  %5786 = vmatmul.mubr.bf16.gmra.mxu1 %v7238_v5 }
 0x3ac   : > { %v3698_v62 = vpop.permute.xlu1 %3697  ;;  %4742 = vst.msk [vmem:[#allocation5 + $0x94] sm:$0xf] %vm3767_vm2, %v4659_v0 }
 0x3ad   : > { %3781 = vst.msk [vmem:[#allocation5 + $0x9c] sm:$0xf] %vm3767_vm2, %v3698_v62  ;;  %4421 = vrot.lane.b32.xlu0 %v10024_v59, %s8430_s17 }
 0x3ae   : > { %3460 = vrot.lane.b32.xlu1 %v10045_v26, %s8430_s17  ;;  %v4528_v26 = vld [vmem:[#allocation3 + $0x138] sm:$0xff] }
 0x3af   : > { %v3953_v43 = vpop.permute.xlu0 %3952  ;;  %v10388_v19 = vpack.c.bf16 %v4528_v26, %v4528_v26 }
 0x3b0   : > { %v4661_v27 = vpop.permute.xlu1 %4660  ;;  %4037 = vst.msk [vmem:[#allocation5 + $0x90] sm:$0xf] %vm4024_vm3, %v3953_v43 }
 0x3b1   : > { %4743 = vst.msk [vmem:[#allocation5 + $0xa0] sm:$0xf] %vm3767_vm2, %v4661_v27  ;;  %6191 = vrot.lane.b32.xlu0 %v8319_v37, %s8433_s14 }
 0x3b2   : > { %4423 = vrot.lane.b32.xlu1 %v10026_v46, %s8430_s17 }
 0x3b3   : > { %v4915_v34 = vpop.permute.xlu0 %4914 }
 0x3b4   : > { %v3955_v51 = vpop.permute.xlu1 %3954  ;;  %4998 = vst.msk [vmem:[#allocation5 + $0x94] sm:$0xf] %vm4024_vm3, %v4915_v34  ;;  %v8329_v34 = vld [vmem:[#allocation4 + $0x30] sm:$0xff]  }
 0x3b5   : > { %4038 = vst.msk [vmem:[#allocation5 + $0x9c] sm:$0xf] %vm4024_vm3, %v3955_v51  ;;  %3717 = vrot.lane.b32.xlu0 %v10041_v50, %s8431_s21 }
 0x3b6   : > { %3715 = vrot.lane.b32.xlu1 %v10039_v54, %s8431_s21 }
 0x3b7   : > { %v3443_v31 = vpop.permute.xlu0 %3442 }
 0x3b8   : > { %v4917_v60 = vpop.permute.xlu1 %4916  ;;  %3525 = vst.msk [vmem:[#allocation5 + $0xa8] sm:$0xf] %vm3510_vm1, %v3443_v31 }
 0x3b9   : > { %4999 = vst.msk [vmem:[#allocation5 + $0xa0] sm:$0xf] %vm4024_vm3, %v4917_v60  ;;  %4680 = vrot.lane.b32.xlu0 %v10390_v1, %s8431_s21 }
 0x3ba   : > { %4678 = vrot.lane.b32.xlu1 %v10388_v19, %s8431_s21 }
 0x3bb   : > { %v4406_v42 = vpop.permute.xlu0 %4405  ;;  %v5234_v55 = vld [vmem:[#allocation5 + $0x90] sm:$0xff] }
 0x3bc   : > { %v3445_v54 = vpop.permute.xlu1 %3444  ;;  %4487 = vst.msk [vmem:[#allocation5 + $0xac] sm:$0xf] %vm3510_vm1, %v4406_v42 }
 0x3bd   : > { %3526 = vst.msk [vmem:[#allocation5 + $0xb4] sm:$0xf] %vm3510_vm1, %v3445_v54  ;;  %3972 = vrot.lane.b32.xlu0 %v10344_v3, %s8432_s16 }
 0x3be   : > { %6193 = vrot.lane.b32.xlu1 %v8321_v61, %s8433_s14 }
 0x3bf   : > { %v3700_v44 = vpop.permute.xlu0 %3699 }
 0x3c0   : > { %v4408_v50 = vpop.permute.xlu1 %4407  ;;  %v5236_v36 = vld [vmem:[#allocation5 + $0x9c] sm:$0xff]  ;;  %3782 = vst.msk [vmem:[#allocation5 + $0xa8] sm:$0xf] %vm3767_vm2, %v3700_v44 }
 0x3c1   : > { %v8323_v38 = vld [vmem:[#allocation5 + $0x94] ss:$12 sps:$4 sm:$0xff]   ;;  %4488 = vst.msk [vmem:[#allocation5 + $0xb8] sm:$0xf] %vm3510_vm1, %v4408_v50  ;;  %v7241_v16 = vcombine.low %v5234_v55, %v5236_v36  ;;  %4934 = vrot.lane.b32.xlu0 %v10127_v48, %s8432_s16 }
 0x3c2   : > { %3974 = vrot.lane.b32.xlu1 %v10346_v11, %s8432_s16  ;;  %5793 = vmatprep.mubr.bf16.mxu1 %v8323_v38  ;;  %v4531_v11 = vld [vmem:[#allocation3 + $0x158] sm:$0xff] }
 0x3c3   : > { %v4663_v13 = vpop.permute.xlu0 %4662  ;;  %5794 = vmatmul.mubr.bf16.gmra.mxu1 %v7241_v16  ;;  %v10434_v30 = vpack.c.bf16 %v4531_v11, %v4531_v11  ;;  %v8335_v16 = vld [vmem:[#allocation4 + $0x40] sm:$0xff]  }
 0x3c4   : > { %v3702_v14 = vpop.permute.xlu1 %3701  ;;  %4744 = vst.msk [vmem:[#allocation5 + $0xac] sm:$0xf] %vm3767_vm2, %v4663_v13 }
 0x3c5   : > { %3783 = vst.msk [vmem:[#allocation5 + $0xb4] sm:$0xf] %vm3767_vm2, %v3702_v14  ;;  %3462 = vrot.lane.b32.xlu0 %v10009_v4, %s8430_s17 }
 0x3c6   : > { %4936 = vrot.lane.b32.xlu1 %v10159_v52, %s8432_s16 }
 0x3c7   : > { %v3957_v17 = vpop.permute.xlu0 %3956 }
 0x3c8   : > { %v4665_v57 = vpop.permute.xlu1 %4664  ;;  %4039 = vst.msk [vmem:[#allocation5 + $0xa8] sm:$0xf] %vm4024_vm3, %v3957_v17 }
 0x3c9   : > { %4745 = vst.msk [vmem:[#allocation5 + $0xb8] sm:$0xf] %vm3767_vm2, %v4665_v57  ;;  %4425 = vrot.lane.b32.xlu0 %v10153_v9, %s8430_s17 }
 0x3ca   : > { %3464 = vrot.lane.b32.xlu1 %v10031_v40, %s8430_s17  ;;  %v4530_v40 = vld [vmem:[#allocation3 + $0x150] sm:$0xff] }
 0x3cb   : > { %v4919_v63 = vpop.permute.xlu0 %4918  ;;  %v10432_v58 = vpack.c.bf16 %v4530_v40, %v4530_v40 }
 0x3cc   : > { %v3959_v41 = vpop.permute.xlu1 %3958  ;;  %5000 = vst.msk [vmem:[#allocation5 + $0xac] sm:$0xf] %vm4024_vm3, %v4919_v63  ;;  %v4534_v63 = vld [vmem:[#allocation3 + $0x180] sm:$0xff] }
 0x3cd   : > { %4040 = vst.msk [vmem:[#allocation5 + $0xb4] sm:$0xf] %vm4024_vm3, %v3959_v41  ;;  %6195 = vrot.lane.b32.xlu0 %v8325_v8, %s8433_s14  ;;  %v4535_v8 = vld [vmem:[#allocation3 + $0x188] sm:$0xff] }
 0x3ce   : > { %4427 = vrot.lane.b32.xlu1 %v10155_v29, %s8430_s17  ;;  %v10519_v11 = vpack.c.bf16 %v4535_v8, %v4535_v8 }
 0x3cf   : > { %v3447_v3 = vpop.permute.xlu0 %3446 }
 0x3d0   : > { %v4921_v4 = vpop.permute.xlu1 %4920  ;;  %3527 = vst.msk [vmem:[#allocation5 + $0xc0] sm:$0xf] %vm3510_vm1, %v3447_v3  ;;  %v10516_v3 = vpack.c.bf16 %v4534_v63, %v4534_v63 }
 0x3d1   : > { %5001 = vst.msk [vmem:[#allocation5 + $0xb8] sm:$0xf] %vm4024_vm3, %v4921_v4  ;;  %3721 = vrot.lane.b32.xlu0 %v10026_v46, %s8431_s21 }
 0x3d2   : > { %3719 = vrot.lane.b32.xlu1 %v10024_v59, %s8431_s21  ;;  %v8326_v59 = vld [vmem:[#allocation4 + $0x28] sm:$0xff]  }
 0x3d3   : > { %v4410_v49 = vpop.permute.xlu0 %4409  ;;  %v5238_v46 = vld [vmem:[#allocation5 + $0xa8] sm:$0xff] }
 0x3d4   : > { %v3449_v53 = vpop.permute.xlu1 %3448  ;;  %4489 = vst.msk [vmem:[#allocation5 + $0xc4] sm:$0xf] %vm3510_vm1, %v4410_v49 }
 0x3d5   : > { %3528 = vst.msk [vmem:[#allocation5 + $0xcc] sm:$0xf] %vm3510_vm1, %v3449_v53  ;;  %4684 = vrot.lane.b32.xlu0 %v10434_v30, %s8431_s21 }
 0x3d6   : > { %4682 = vrot.lane.b32.xlu1 %v10432_v58, %s8431_s21 }
 0x3d7   : > { %v3704_v39 = vpop.permute.xlu0 %3703 }
 0x3d8   : > { %v4412_v21 = vpop.permute.xlu1 %4411  ;;  %v5240_v12 = vld [vmem:[#allocation5 + $0xb4] sm:$0xff]  ;;  %3784 = vst.msk [vmem:[#allocation5 + $0xc0] sm:$0xf] %vm3767_vm2, %v3704_v39 }
 0x3d9   : > { %v8327_v32 = vld [vmem:[#allocation5 + $0xac] ss:$12 sps:$4 sm:$0xff]   ;;  %4490 = vst.msk [vmem:[#allocation5 + $0xd0] sm:$0xf] %vm3510_vm1, %v4412_v21  ;;  %v7244_v18 = vcombine.low %v5238_v46, %v5240_v12  ;;  %3976 = vrot.lane.b32.xlu0 %v10388_v19, %s8432_s16  ;;  %v4537_v39 = vld [vmem:[#allocation3 + $0x1a0] sm:$0xff] }
 0x3da   : > { %6197 = vrot.lane.b32.xlu1 %v8326_v59, %s8433_s14  ;;  %5801 = vmatprep.mubr.bf16.mxu1 %v8327_v32 }
 0x3db   : > { %v4667_v5 = vpop.permute.xlu0 %4666  ;;  %5802 = vmatmul.mubr.bf16.gmra.mxu1 %v7244_v18 }
 0x3dc   : > { %v3706_v28 = vpop.permute.xlu1 %3705  ;;  %4746 = vst.msk [vmem:[#allocation5 + $0xc4] sm:$0xf] %vm3767_vm2, %v4667_v5 }
 0x3dd   : > { %3785 = vst.msk [vmem:[#allocation5 + $0xcc] sm:$0xf] %vm3767_vm2, %v3706_v28  ;;  %4938 = vrot.lane.b32.xlu0 %v10123_v22, %s8432_s16 }
 0x3de   : > { %3978 = vrot.lane.b32.xlu1 %v10390_v1, %s8432_s16 }
 0x3df   : > { %v3961_v0 = vpop.permute.xlu0 %3960 }
 0x3e0   : > { %v4669_v62 = vpop.permute.xlu1 %4668  ;;  %4041 = vst.msk [vmem:[#allocation5 + $0xc0] sm:$0xf] %vm4024_vm3, %v3961_v0 }
 0x3e1   : > { %4747 = vst.msk [vmem:[#allocation5 + $0xd0] sm:$0xf] %vm3767_vm2, %v4669_v62  ;;  %3466 = vrot.lane.b32.xlu0 %v10127_v48, %s8430_s17 }
 0x3e2   : > { %4940 = vrot.lane.b32.xlu1 %v10145_v25, %s8432_s16 }
 0x3e3   : > { %v4923_v43 = vpop.permute.xlu0 %4922 }
 0x3e4   : > { %v3963_v27 = vpop.permute.xlu1 %3962  ;;  %5002 = vst.msk [vmem:[#allocation5 + $0xc4] sm:$0xf] %vm4024_vm3, %v4923_v43 }
 0x3e5   : > { %4042 = vst.msk [vmem:[#allocation5 + $0xcc] sm:$0xf] %vm4024_vm3, %v3963_v27  ;;  %4429 = vrot.lane.b32.xlu0 %v10138_v6, %s8430_s17  ;;  %v8343_v27 = vld [vmem:[#allocation4 + $0x58] sm:$0xff]  }
 0x3e6   : > { %3468 = vrot.lane.b32.xlu1 %v10159_v52, %s8430_s17 }
 0x3e7   : > { %v3451_v51 = vpop.permute.xlu0 %3450 }
 0x3e8   : > { %v4925_v37 = vpop.permute.xlu1 %4924  ;;  %3529 = vst.msk [vmem:[#allocation5 + $0xd8] sm:$0xf] %vm3510_vm1, %v3451_v51 }
 0x3e9   : > { %5003 = vst.msk [vmem:[#allocation5 + $0xd0] sm:$0xf] %vm4024_vm3, %v4925_v37  ;;  %6199 = vrot.lane.b32.xlu0 %v8329_v34, %s8433_s14  ;;  %v4793_v37 = vld [vmem:[#allocation3 + $0x1a1] sm:$0xff] }
 0x3ea   : > { %4431 = vrot.lane.b32.xlu1 %v10140_v2, %s8430_s17 }
 0x3eb   : > { %v4414_v26 = vpop.permute.xlu0 %4413  ;;  %v5242_v60 = vld [vmem:[#allocation5 + $0xc0] sm:$0xff] }
 0x3ec   : > { %v3453_v48 = vpop.permute.xlu1 %3452  ;;  %4491 = vst.msk [vmem:[#allocation5 + $0xdc] sm:$0xf] %vm3510_vm1, %v4414_v26 }
 0x3ed   : > { %3530 = vst.msk [vmem:[#allocation5 + $0xe4] sm:$0xf] %vm3510_vm1, %v3453_v48  ;;  %3725 = vrot.lane.b32.xlu0 %v10155_v29, %s8431_s21  ;;  %v8334_v29 = vld [vmem:[#allocation4 + $0x38] sm:$0xff]   ;;  %v7887_v48 = vpack.c.bf16 %v4793_v37, %v4793_v37 }
 0x3ee   : > { %3723 = vrot.lane.b32.xlu1 %v10153_v9, %s8431_s21 }
 0x3ef   : > { %v3708_v56 = vpop.permute.xlu0 %3707 }
 0x3f0   : > { %v4416_v52 = vpop.permute.xlu1 %4415  ;;  %v5244_v31 = vld [vmem:[#allocation5 + $0xcc] sm:$0xff]  ;;  %3786 = vst.msk [vmem:[#allocation5 + $0xd8] sm:$0xf] %vm3767_vm2, %v3708_v56  ;;  %v8344_v56 = vld [vmem:[#allocation4 + $0x60] sm:$0xff]  }
 0x3f1   : > { %v8331_v19 = vld [vmem:[#allocation5 + $0xc4] ss:$12 sps:$4 sm:$0xff]   ;;  %4492 = vst.msk [vmem:[#allocation5 + $0xe8] sm:$0xf] %vm3510_vm1, %v4416_v52  ;;  %v7247_v1 = vcombine.low %v5242_v60, %v5244_v31  ;;  %4688 = vrot.lane.b32.xlu0 %v10275_v24, %s8431_s21  ;;  %v8345_v31 = vld [vmem:[#allocation4 + $0x68] sm:$0xff]  }
 0x3f2   : > { %4686 = vrot.lane.b32.xlu1 %v10247_v15, %s8431_s21  ;;  %5809 = vmatprep.mubr.bf16.mxu1 %v8331_v19 }
 0x3f3   : > { %v4671_v54 = vpop.permute.xlu0 %4670  ;;  %5810 = vmatmul.mubr.bf16.gmra.mxu1 %v7247_v1  ;;  %v8346_v1 = vld [vmem:[#allocation4 + $0x70] sm:$0xff]  }
 0x3f4   : > { %v3710_v9 = vpop.permute.xlu1 %3709  ;;  %4748 = vst.msk [vmem:[#allocation5 + $0xdc] sm:$0xf] %vm3767_vm2, %v4671_v54  ;;  %v8347_v54 = vld [vmem:[#allocation4 + $0x78] sm:$0xff]  }
 0x3f5   : > { %3787 = vst.msk [vmem:[#allocation5 + $0xe4] sm:$0xf] %vm3767_vm2, %v3710_v9  ;;  %3980 = vrot.lane.b32.xlu0 %v10432_v58, %s8432_s16 }
 0x3f6   : > { %6201 = vrot.lane.b32.xlu1 %v8334_v29, %s8433_s14 }
 0x3f7   : > { %v3965_v61 = vpop.permute.xlu0 %3964 }
 0x3f8   : > { %v4673_v42 = vpop.permute.xlu1 %4672  ;;  %4043 = vst.msk [vmem:[#allocation5 + $0xd8] sm:$0xf] %vm4024_vm3, %v3965_v61 }
 0x3f9   : > { %4749 = vst.msk [vmem:[#allocation5 + $0xe8] sm:$0xf] %vm3767_vm2, %v4673_v42  ;;  %4942 = vrot.lane.b32.xlu0 %v10249_v35, %s8432_s16 }
 0x3fa   : > { %3982 = vrot.lane.b32.xlu1 %v10434_v30, %s8432_s16 }
 0x3fb   : > { %v4927_v44 = vpop.permute.xlu0 %4926 }
 0x3fc   : > { %v3967_v50 = vpop.permute.xlu1 %3966  ;;  %5004 = vst.msk [vmem:[#allocation5 + $0xdc] sm:$0xf] %vm4024_vm3, %v4927_v44 }
 0x3fd   : > { %4044 = vst.msk [vmem:[#allocation5 + $0xe4] sm:$0xf] %vm4024_vm3, %v3967_v50  ;;  %3470 = vrot.lane.b32.xlu0 %v10123_v22, %s8430_s17 }
 0x3fe   : > { %4944 = vrot.lane.b32.xlu1 %v10277_v10, %s8432_s16 }
 0x3ff   : > { %v3455_v36 = vpop.permute.xlu0 %3454 }
 0x400   : > { %v4929_v55 = vpop.permute.xlu1 %4928  ;;  %3531 = vst.msk [vmem:[#allocation5 + $0xf0] sm:$0xf] %vm3510_vm1, %v3455_v36 }
 0x401   : > { %5005 = vst.msk [vmem:[#allocation5 + $0xe8] sm:$0xf] %vm4024_vm3, %v4929_v55  ;;  %4433 = vrot.lane.b32.xlu0 %v10271_v47, %s8430_s17 }
 0x402   : > { %3472 = vrot.lane.b32.xlu1 %v10145_v25, %s8430_s17 }
 0x403   : > { %v4418_v14 = vpop.permute.xlu0 %4417  ;;  %v5246_v13 = vld [vmem:[#allocation5 + $0xd8] sm:$0xff] }
 0x404   : > { %v3457_v38 = vpop.permute.xlu1 %3456  ;;  %4493 = vst.msk [vmem:[#allocation5 + $0xf4] sm:$0xf] %vm3510_vm1, %v4418_v14 }
 0x405   : > { %3532 = vst.msk [vmem:[#allocation5 + $0xfc] sm:$0xf] %vm3510_vm1, %v3457_v38  ;;  %6203 = vrot.lane.b32.xlu0 %v8335_v16, %s8433_s14 }
 0x406   : > { %4435 = vrot.lane.b32.xlu1 %v10273_v45, %s8430_s17 }
 0x407   : > { %v6188_v25 = vpop.permute.xlu0 %6187 }
 0x408   : > { %v4420_v22 = vpop.permute.xlu1 %4419  ;;  %v5248_v57 = vld [vmem:[#allocation5 + $0xe4] sm:$0xff]  ;;  %8163 = vmatprep.mubr.msk.bf16.mxu0 %vm278_vm0, %v6188_v25 }
 0x409   : > { %v8337_v17 = vld [vmem:[#allocation5 + $0xdc] ss:$12 sps:$4 sm:$0xff]   ;;  %4494 = vst.msk [vmem:[#allocation5 + $0x100] sm:$0xf] %vm3510_vm1, %v4420_v22  ;;  %v7250_v41 = vcombine.low %v5246_v13, %v5248_v57  ;;  %3729 = vrot.lane.b32.xlu0 %v10140_v2, %s8431_s21 }
 0x40a   : > { %3727 = vrot.lane.b32.xlu1 %v10138_v6, %s8431_s21  ;;  %5817 = vmatprep.mubr.bf16.mxu1 %v8337_v17  ;;  %v8339_v2 = vld [vmem:[#allocation4 + $0x48] sm:$0xff]  }
 0x40b   : > { %5818 = vmatmul.mubr.bf16.gmra.mxu1 %v7250_v41  ;;  %v3714_v40 = vpop.permute.xlu0 %3713 }
 0x40c   : > { %v3712_v4 = vpop.permute.xlu1 %3711  ;;  %3789 = vst.msk [vmem:[#allocation5 + $0xfc] sm:$0xf] %vm3767_vm2, %v3714_v40 }
 0x40d   : > { %3788 = vst.msk [vmem:[#allocation5 + $0xf0] sm:$0xf] %vm3767_vm2, %v3712_v4  ;;  %4692 = vrot.lane.b32.xlu0 %v10519_v11, %s8431_s21 }
 0x40e   : > { %4690 = vrot.lane.b32.xlu1 %v10516_v3, %s8431_s21 }
 0x40f   : > { %v4677_v53 = vpop.permute.xlu0 %4676 }
 0x410   : > { %v4675_v6 = vpop.permute.xlu1 %4674  ;;  %4751 = vst.msk [vmem:[#allocation5 + $0x100] sm:$0xf] %vm3767_vm2, %v4677_v53 }
 0x411   : > { %4750 = vst.msk [vmem:[#allocation5 + $0xf4] sm:$0xf] %vm3767_vm2, %v4675_v6  ;;  %3984 = vrot.lane.b32.xlu0 %v10247_v15, %s8432_s16 }
 0x412   : > { %6205 = vrot.lane.b32.xlu1 %v8339_v2, %s8433_s14 }
 0x413   : > { %v3969_v58 = vpop.permute.xlu0 %3968 }
 0x414   : > { %v6190_v49 = vpop.permute.xlu1 %6189  ;;  %4045 = vst.msk [vmem:[#allocation5 + $0xf0] sm:$0xf] %vm4024_vm3, %v3969_v58 }
 0x415   : > { %8164 = vmatmul.mubr.msk.bf16.vlgmr.msra.gmra.mxu0 %vm278_vm0, %v6190_v49  ;;  %4946 = vrot.lane.b32.xlu0 %v10237_v23, %s8432_s16 }
 0x416   : > { %3986 = vrot.lane.b32.xlu1 %v10275_v24, %s8432_s16 }
 0x417   : > { %v4931_v59 = vpop.permute.xlu0 %4930 }
 0x418   : > { %v3971_v30 = vpop.permute.xlu1 %3970  ;;  %5006 = vst.msk [vmem:[#allocation5 + $0xf4] sm:$0xf] %vm4024_vm3, %v4931_v59 }
 0x419   : > { %4046 = vst.msk [vmem:[#allocation5 + $0xfc] sm:$0xf] %vm4024_vm3, %v3971_v30  ;;  %3474 = vrot.lane.b32.xlu0 %v10249_v35, %s8430_s17  ;;  %v4536_v35 = vld [vmem:[#allocation3 + $0x198] sm:$0xff]  ;;  %v10603_v30 = vpop.f32.mrf.mxu0 }
 0x41a   : > { %4948 = vrot.lane.b32.xlu1 %v10261_v20, %s8432_s16  ;;  %v8340_v20 = vld [vmem:[#allocation4 + $0x50] sm:$0xff]   ;;  %v7854_v28 = vpack.c.bf16 %v4536_v35, %v4536_v35 }
 0x41b   : > { %v3459_v21 = vpop.permute.xlu0 %3458 }
 0x41c   : > { %v4933_v15 = vpop.permute.xlu1 %4932  ;;  %3533 = vst.msk [vmem:[#allocation5 + $0x108] sm:$0xf] %vm3510_vm1, %v3459_v21  ;;  %v10607_v21 = vpop.f32.mrf.mxu0 }
 0x41d   : > { %5007 = vst.msk [vmem:[#allocation5 + $0x100] sm:$0xf] %vm4024_vm3, %v4933_v15  ;;  %4437 = vrot.lane.b32.xlu0 %v10251_v33, %s8430_s17 }
 0x41e   : > { %3476 = vrot.lane.b32.xlu1 %v10277_v10, %s8430_s17 }
 0x41f   : > { %v4422_v24 = vpop.permute.xlu0 %4421  ;;  %v5250_v12 = vld [vmem:[#allocation5 + $0xf0] sm:$0xff] }
 0x420   : > { %v3461_v23 = vpop.permute.xlu1 %3460  ;;  %4495 = vst.msk [vmem:[#allocation5 + $0x10c] sm:$0xf] %vm3510_vm1, %v4422_v24 }
 0x421   : > { %3534 = vst.msk [vmem:[#allocation5 + $0x114] sm:$0xf] %vm3510_vm1, %v3461_v23  ;;  %6207 = vrot.lane.b32.xlu0 %v8340_v20, %s8433_s14  ;;  %v10611_v20 = vpop.f32.mrf.mxu0 }
 0x422   : > { %4439 = vrot.lane.b32.xlu1 %v10253_v7, %s8430_s17  ;;  %v7855_v7 = vpack.c.bf16 %v4537_v39, %v4537_v39  ;;  %s8434_s17 = smov [#allocation6]  }
 0x423   : > { %v6192_v33 = vpop.permute.xlu0 %6191 }
 0x424   : > { %v4424_v46 = vpop.permute.xlu1 %4423  ;;  %v5252_v10 = vld [vmem:[#allocation5 + $0xfc] sm:$0xff]  ;;  %8167 = vmatprep.mubr.msk.bf16.mxu0 %vm278_vm0, %v6192_v33 }
 0x425   : > { %v8341_v32 = vld [vmem:[#allocation5 + $0xf4] ss:$12 sps:$4 sm:$0xff]   ;;  %4496 = vst.msk [vmem:[#allocation5 + $0x118] sm:$0xf] %vm3510_vm1, %v4424_v46  ;;  %v7253_v18 = vcombine.low %v5250_v12, %v5252_v10  ;;  %3733 = vrot.lane.b32.xlu0 %v10273_v45, %s8431_s21  ;;  %v10615_v46 = vpop.f32.mrf.mxu0 }
 0x426   : > { %3731 = vrot.lane.b32.xlu1 %v10271_v47, %s8431_s21  ;;  %5825 = vmatprep.mubr.bf16.mxu1 %v8341_v32  ;;  %v4792_v47 = vld [vmem:[#allocation3 + $0x199] sm:$0xff] }
 0x427   : > { %5826 = vmatmul.mubr.bf16.gmra.mxu1 %v7253_v18  ;;  %v3718_v62 = vpop.permute.xlu0 %3717  ;;  %v7886_v45 = vpack.c.bf16 %v4792_v47, %v4792_v47  ;;  %v10617_v10 = vpop.f32.mrf.mxu0 }
 0x428   : > { %v3716_v5 = vpop.permute.xlu1 %3715  ;;  %3791 = vst.msk [vmem:[#allocation5 + $0x114] sm:$0xf] %vm3767_vm2, %v3718_v62 }
 0x429   : > { %3790 = vst.msk [vmem:[#allocation5 + $0x108] sm:$0xf] %vm3767_vm2, %v3716_v5  ;;  %4696 = vrot.lane.b32.xlu0 %v7855_v7, %s8431_s21  ;;  %v10621_v18 = vpop.f32.mrf.mxu0 }
 0x42a   : > { %4694 = vrot.lane.b32.xlu1 %v7854_v28, %s8431_s21  ;;  %s8364_s21 = sshll.u32 %s8434_s17, 4  ;;  %s8365_s21 = int_to_ptr.vmem [resolvable:$false] %s8364_s21 }
 0x42b   : > { %v4681_v43 = vpop.permute.xlu0 %4680  ;;  %p8367_p0 = scmp.lt.s32.totalorder %s10896_s29, %s8365_s21 }
 0x42c   : > { %v4679_v0 = vpop.permute.xlu1 %4678  ;;  %4753 = vst.msk [vmem:[#allocation5 + $0x118] sm:$0xf] %vm3767_vm2, %v4681_v43 }
 0x42d   : > { %4752 = vst.msk [vmem:[#allocation5 + $0x10c] sm:$0xf] %vm3767_vm2, %v4679_v0  ;;  %3988 = vrot.lane.b32.xlu0 %v10516_v3, %s8432_s16 }
 0x42e   : > { %6209 = vrot.lane.b32.xlu1 %v8343_v27, %s8433_s14  ;;  %v10625_v27 = vpop.f32.mrf.mxu0 }
 0x42f   : > { %v3973_v34 = vpop.permute.xlu0 %3972 }
 0x430   : > { %v6194_v51 = vpop.permute.xlu1 %6193  ;;  %4047 = vst.msk [vmem:[#allocation5 + $0x108] sm:$0xf] %vm4024_vm3, %v3973_v34  ;;  %v10629_v37 = vpop.f32.mrf.mxu0 }
 0x431   : > { %8168 = vmatmul.mubr.msk.bf16.gmra.mxu0 %vm278_vm0, %v6194_v51  ;;  %4950 = vrot.lane.b32.xlu0 %v7886_v45, %s8432_s16 }
 0x432   : > { %3990 = vrot.lane.b32.xlu1 %v10519_v11, %s8432_s16  ;;  %v10633_v34 = vpop.f32.mrf.mxu0 }
 0x433   : > { %v4935_v52 = vpop.permute.xlu0 %4934 }
 0x434   : > { %v3975_v26 = vpop.permute.xlu1 %3974  ;;  %5008 = vst.msk [vmem:[#allocation5 + $0x10c] sm:$0xf] %vm4024_vm3, %v4935_v52  ;;  %v10637_v52 = vpop.f32.mrf.mxu0 }
 0x435   : > { %4048 = vst.msk [vmem:[#allocation5 + $0x114] sm:$0xf] %vm4024_vm3, %v3975_v26  ;;  %6211 = vrot.lane.b32.xlu0 %v8344_v56, %s8433_s14 }
 0x436   : > { %4952 = vrot.lane.b32.xlu1 %v7887_v48, %s8432_s16  ;;  %s8366_s16 = scalar_lea.vmem %s8365_s21, 8192 }
 0x437   : > { %v3463_v19 = vpop.permute.xlu0 %3462 }
 0x438   : > { %v4937_v60 = vpop.permute.xlu1 %4936  ;;  %3535 = vst.msk [vmem:[#allocation5 + $0x120] sm:$0xf] %vm3510_vm1, %v3463_v19 }
 0x439   : > { %5009 = vst.msk [vmem:[#allocation5 + $0x118] sm:$0xf] %vm4024_vm3, %v4937_v60  ;;  %6215 = vrot.lane.b32.xlu0 %v8346_v1, %s8433_s14 }
 0x43a   : > { %6213 = vrot.lane.b32.xlu1 %v8345_v31, %s8433_s14  ;;  %v10641_v31 = vpop.f32.mrf.mxu0 }
 0x43b   : > { %v4426_v29 = vpop.permute.xlu0 %4425  ;;  %v5254_v61 = vld [vmem:[#allocation5 + $0x108] sm:$0xff] }
 0x43c   : > { %v3465_v9 = vpop.permute.xlu1 %3464  ;;  %4497 = vst.msk [vmem:[#allocation5 + $0x124] sm:$0xf] %vm3510_vm1, %v4426_v29 }
 0x43d   : > { %3536 = vst.msk [vmem:[#allocation5 + $0x12c] sm:$0xf] %vm3510_vm1, %v3465_v9  ;;  %v10645_v9 = vpop.f32.mrf.mxu0 }
 0x43e   : > { %6217 = vrot.lane.b32.xlu1 %v8347_v54, %s8433_s14  ;;  %s8360_s14 = scalar_lea.vmem %s10896_s29, 4096 }
 0x43f   : > { %v6196_v55 = vpop.permute.xlu0 %6195  ;;  %v10647_v29 = vpop.f32.mrf.mxu0  ;;  %p8361_p11 = scmp.ne.s32.totalorder %s10896_s29, %s8360_s14  ;;  %p8368_p1 = scmp.lt.s32.totalorder %s8366_s16, %s8360_s14 }
 0x440   : > { %v4428_v42 = vpop.permute.xlu1 %4427  ;;  %v5256_v50 = vld [vmem:[#allocation5 + $0x114] sm:$0xff]  ;;  %8171 = vmatprep.mubr.msk.bf16.mxu0 %vm278_vm0, %v6196_v55 }
 0x441   : > { %v8348_v44 = vld [vmem:[#allocation5 + $0x10c] ss:$12 sps:$4 sm:$0xff]   ;;  %4498 = vst.msk [vmem:[#allocation5 + $0x130] sm:$0xf] %vm3510_vm1, %v4428_v42  ;;  %v7256_v36 = vcombine.low %v5254_v61, %v5256_v50  ;;  %v10651_v50 = vpop.f32.mrf.mxu0  ;;  %p8362_p12 = pnand %p8361_p11, %p8514_p5  ;;  %p8369_p2 = por %p8368_p1, %p8367_p0 }
 0x442   : > { %5833 = vmatprep.mubr.bf16.mxu1 %v8348_v44 }
 0x443   : > { %5834 = vmatmul.mubr.bf16.gmra.mxu1 %v7256_v36  ;;  %v3722_v16 = vpop.permute.xlu0 %3721  ;;  %p8363_p13 = pneg %p8362_p12 }
 0x444   : > { %v3720_v38 = vpop.permute.xlu1 %3719  ;;  %3793 = vst.msk [vmem:[#allocation5 + $0x12c] sm:$0xf] %vm3767_vm2, %v3722_v16 }
 0x445   : > { %3792 = vst.msk [vmem:[#allocation5 + $0x120] sm:$0xf] %vm3767_vm2, %v3720_v38  ;;  %p8370_p3 = pnand %p8369_p2, %p8363_p13 }
 0x447   : > { %v4685_v22 = vpop.permute.xlu0 %4684 }
 0x448   : > { %v4683_v14 = vpop.permute.xlu1 %4682  ;;  %4755 = vst.msk [vmem:[#allocation5 + $0x130] sm:$0xf] %vm3767_vm2, %v4685_v22 }
 0x449   : > { %4754 = vst.msk [vmem:[#allocation5 + $0x124] sm:$0xf] %vm3767_vm2, %v4683_v14  ;;  %v10655_v14 = vpop.f32.mrf.mxu0 }
 0x44b   : > { %v3977_v57 = vpop.permute.xlu0 %3976 }
 0x44c   : > { %v6198_v13 = vpop.permute.xlu1 %6197  ;;  %4049 = vst.msk [vmem:[#allocation5 + $0x120] sm:$0xf] %vm4024_vm3, %v3977_v57 }
 0x44d   : > { %8172 = vmatmul.mubr.msk.bf16.gmra.mxu0 %vm278_vm0, %v6198_v13 }
 0x44f   : > { %v4939_v25 = vpop.permute.xlu0 %4938 }
 0x450   : > { %v3979_v17 = vpop.permute.xlu1 %3978  ;;  %5010 = vst.msk [vmem:[#allocation5 + $0x124] sm:$0xf] %vm4024_vm3, %v4939_v25 }
 0x451   : > { %4050 = vst.msk [vmem:[#allocation5 + $0x12c] sm:$0xf] %vm4024_vm3, %v3979_v17  ;;  %v10659_v17 = vpop.f32.mrf.mxu0 }
 0x453   : > { %v3467_v63 = vpop.permute.xlu0 %3466 }
 0x454   : > { %v4941_v41 = vpop.permute.xlu1 %4940  ;;  %3537 = vst.msk [vmem:[#allocation5 + $0x138] sm:$0xf] %vm3510_vm1, %v3467_v63 }
 0x455   : > { %5011 = vst.msk [vmem:[#allocation5 + $0x130] sm:$0xf] %vm4024_vm3, %v4941_v41  ;;  %v10663_v41 = vpop.f32.mrf.mxu0 }
 0x457   : > { %v4430_v4 = vpop.permute.xlu0 %4429  ;;  %v5258_v40 = vld [vmem:[#allocation5 + $0x120] sm:$0xff] }
 0x458   : > { %v3469_v8 = vpop.permute.xlu1 %3468  ;;  %4499 = vst.msk [vmem:[#allocation5 + $0x13c] sm:$0xf] %vm3510_vm1, %v4430_v4  ;;  %v10667_v4 = vpop.f32.mrf.mxu0 }
 0x459   : > { %3538 = vst.msk [vmem:[#allocation5 + $0x144] sm:$0xf] %vm3510_vm1, %v3469_v8 }
 0x45b   : > { %v6200_v2 = vpop.permute.xlu0 %6199 }
 0x45c   : > { %v4432_v3 = vpop.permute.xlu1 %4431  ;;  %v5260_v11 = vld [vmem:[#allocation5 + $0x12c] sm:$0xff]  ;;  %8175 = vmatprep.mubr.msk.bf16.mxu0 %vm278_vm0, %v6200_v2 }
 0x45d   : > { %v8350_v6 = vld [vmem:[#allocation5 + $0x124] ss:$12 sps:$4 sm:$0xff]   ;;  %4500 = vst.msk [vmem:[#allocation5 + $0x148] sm:$0xf] %vm3510_vm1, %v4432_v3  ;;  %v7259_v53 = vcombine.low %v5258_v40, %v5260_v11  ;;  %v7956_v3 = vpop.f32.mrf.mxu1 }
 0x45e   : > { %5841 = vmatprep.mubr.bf16.mxu1 %v8350_v6  ;;  %v10671_v6 = vpop.f32.mrf.mxu0 }
 0x45f   : > { %5842 = vmatmul.mubr.bf16.gmra.mxu1 %v7259_v53  ;;  %v3726_v58 = vpop.permute.xlu0 %3725  ;;  %v7957_v2 = vpop.f32.mrf.mxu1 }
 0x460   : > { %v3724_v49 = vpop.permute.xlu1 %3723  ;;  %3795 = vst.msk [vmem:[#allocation5 + $0x144] sm:$0xf] %vm3767_vm2, %v3726_v58  ;;  %v10675_v58 = vpop.f32.mrf.mxu0 }
 0x461   : > { %3794 = vst.msk [vmem:[#allocation5 + $0x138] sm:$0xf] %vm3767_vm2, %v3724_v49 }
 0x463   : > { %v4689_v15 = vpop.permute.xlu0 %4688 }
 0x464   : > { %v4687_v59 = vpop.permute.xlu1 %4686  ;;  %4757 = vst.msk [vmem:[#allocation5 + $0x148] sm:$0xf] %vm3767_vm2, %v4689_v15 }
 0x465   : > { %4756 = vst.msk [vmem:[#allocation5 + $0x13c] sm:$0xf] %vm3767_vm2, %v4687_v59  ;;  %v7959_v59 = vpop.f32.mrf.mxu1 }
 0x467   : > { %v3981_v24 = vpop.permute.xlu0 %3980 }
 0x468   : > { %v6202_v23 = vpop.permute.xlu1 %6201  ;;  %4051 = vst.msk [vmem:[#allocation5 + $0x138] sm:$0xf] %vm4024_vm3, %v3981_v24 }
 0x469   : > { %8176 = vmatmul.mubr.msk.bf16.gmra.mxu0 %vm278_vm0, %v6202_v23  ;;  %v10677_v23 = vpop.f32.mrf.mxu0 }
 0x46b   : > { %v4943_v39 = vpop.permute.xlu0 %4942 }
 0x46c   : > { %v3983_v35 = vpop.permute.xlu1 %3982  ;;  %5012 = vst.msk [vmem:[#allocation5 + $0x13c] sm:$0xf] %vm4024_vm3, %v4943_v39 }
 0x46d   : > { %4052 = vst.msk [vmem:[#allocation5 + $0x144] sm:$0xf] %vm4024_vm3, %v3983_v35  ;;  %v7960_v35 = vpop.f32.mrf.mxu1 }
 0x46f   : > { %v3471_v32 = vpop.permute.xlu0 %3470 }
 0x470   : > { %v4945_v12 = vpop.permute.xlu1 %4944  ;;  %3539 = vst.msk [vmem:[#allocation5 + $0x150] sm:$0xf] %vm3510_vm1, %v3471_v32 }
 0x471   : > { %5013 = vst.msk [vmem:[#allocation5 + $0x148] sm:$0xf] %vm4024_vm3, %v4945_v12  ;;  %v10681_v12 = vpop.f32.mrf.mxu0 }
 0x473   : > { %v4434_v28 = vpop.permute.xlu0 %4433  ;;  %v5262_v5 = vld [vmem:[#allocation5 + $0x138] sm:$0xff] }
 0x474   : > { %v3473_v33 = vpop.permute.xlu1 %3472  ;;  %4501 = vst.msk [vmem:[#allocation5 + $0x154] sm:$0xf] %vm3510_vm1, %v4434_v28 }
 0x475   : > { %3540 = vst.msk [vmem:[#allocation5 + $0x15c] sm:$0xf] %vm3510_vm1, %v3473_v33  ;;  %v7962_v33 = vpop.f32.mrf.mxu1 }
 0x477   : > { %v6204_v47 = vpop.permute.xlu0 %6203 }
 0x478   : > { %v4436_v7 = vpop.permute.xlu1 %4435  ;;  %v5264_v62 = vld [vmem:[#allocation5 + $0x144] sm:$0xff]  ;;  %8179 = vmatprep.mubr.msk.bf16.mxu0 %vm278_vm0, %v6204_v47 }
 0x479   : > { %v8352_v0 = vld [vmem:[#allocation5 + $0x13c] ss:$12 sps:$4 sm:$0xff]   ;;  %4502 = vst.msk [vmem:[#allocation5 + $0x160] sm:$0xf] %vm3510_vm1, %v4436_v7  ;;  %v7262_v43 = vcombine.low %v5262_v5, %v5264_v62  ;;  %v10685_v5 = vpop.f32.mrf.mxu0  ;;  %v7963_v62 = vpop.f32.mrf.mxu1 }
 0x47a   : > { %5849 = vmatprep.mubr.bf16.mxu1 %v8352_v0 }
 0x47b   : > { %5850 = vmatmul.mubr.bf16.gmra.mxu1 %v7262_v43  ;;  %v3730_v51 = vpop.permute.xlu0 %3729  ;;  %v10687_v47 = vpop.f32.mrf.mxu0 }
 0x47c   : > { %v3728_v45 = vpop.permute.xlu1 %3727  ;;  %3797 = vst.msk [vmem:[#allocation5 + $0x15c] sm:$0xf] %vm3767_vm2, %v3730_v51  ;;  %v7965_v43 = vpop.f32.mrf.mxu1 }
 0x47d   : > { %3796 = vst.msk [vmem:[#allocation5 + $0x150] sm:$0xf] %vm3767_vm2, %v3728_v45  ;;  %v10690_v45 = vpop.f32.mrf.mxu0 }
 0x47e   : > { %v7966_v51 = vpop.f32.mrf.mxu1 }
 0x47f   : > { %v4693_v26 = vpop.permute.xlu0 %4692 }
 0x480   : > { %v4691_v48 = vpop.permute.xlu1 %4690  ;;  %4759 = vst.msk [vmem:[#allocation5 + $0x160] sm:$0xf] %vm3767_vm2, %v4693_v26  ;;  %v7968_v26 = vpop.f32.mrf.mxu1 }
 0x481   : > { %4758 = vst.msk [vmem:[#allocation5 + $0x154] sm:$0xf] %vm3767_vm2, %v4691_v48  ;;  %v10692_v48 = vpop.f32.mrf.mxu0 }
 0x483   : > { %v3985_v60 = vpop.permute.xlu0 %3984 }
 0x484   : > { %v6206_v56 = vpop.permute.xlu1 %6205  ;;  %4053 = vst.msk [vmem:[#allocation5 + $0x150] sm:$0xf] %vm4024_vm3, %v3985_v60  ;;  %v7969_v60 = vpop.f32.mrf.mxu1 }
 0x485   : > { %8180 = vmatmul.mubr.msk.bf16.gmra.mxu0 %vm278_vm0, %v6206_v56  ;;  %v10694_v56 = vpop.f32.mrf.mxu0 }
 0x487   : > { %v4947_v1 = vpop.permute.xlu0 %4946 }
 0x488   : > { %v3987_v19 = vpop.permute.xlu1 %3986  ;;  %5014 = vst.msk [vmem:[#allocation5 + $0x154] sm:$0xf] %vm4024_vm3, %v4947_v1  ;;  %v7971_v1 = vpop.f32.mrf.mxu1 }
 0x489   : > { %4054 = vst.msk [vmem:[#allocation5 + $0x15c] sm:$0xf] %vm4024_vm3, %v3987_v19  ;;  %v10696_v19 = vpop.f32.mrf.mxu0 }
 0x48b   : > { %v3475_v42 = vpop.permute.xlu0 %3474 }
 0x48c   : > { %v4949_v54 = vpop.permute.xlu1 %4948  ;;  %3541 = vst.msk [vmem:[#allocation5 + $0x168] sm:$0xf] %vm3510_vm1, %v3475_v42  ;;  %v7972_v42 = vpop.f32.mrf.mxu1 }
 0x48d   : > { %5015 = vst.msk [vmem:[#allocation5 + $0x160] sm:$0xf] %vm4024_vm3, %v4949_v54  ;;  %v10698_v54 = vpop.f32.mrf.mxu0 }
 0x48f   : > { %v4438_v44 = vpop.permute.xlu0 %4437  ;;  %v5266_v36 = vld [vmem:[#allocation5 + $0x150] sm:$0xff] }
 0x490   : > { %v3477_v61 = vpop.permute.xlu1 %3476  ;;  %4503 = vst.msk [vmem:[#allocation5 + $0x16c] sm:$0xf] %vm3510_vm1, %v4438_v44  ;;  %v7974_v44 = vpop.f32.mrf.mxu1 }
 0x491   : > { %3542 = vst.msk [vmem:[#allocation5 + $0x174] sm:$0xf] %vm3510_vm1, %v3477_v61  ;;  %v10700_v61 = vpop.f32.mrf.mxu0 }
 0x493   : > { %v6208_v22 = vpop.permute.xlu0 %6207 }
 0x494   : > { %v4440_v55 = vpop.permute.xlu1 %4439  ;;  %v5268_v38 = vld [vmem:[#allocation5 + $0x15c] sm:$0xff]  ;;  %8183 = vmatprep.mubr.msk.bf16.mxu0 %vm278_vm0, %v6208_v22  ;;  %v7975_v22 = vpop.f32.mrf.mxu1 }
 0x495   : > { %v8354_v16 = vld [vmem:[#allocation5 + $0x154] ss:$12 sps:$4 sm:$0xff]   ;;  %4504 = vst.msk [vmem:[#allocation5 + $0x178] sm:$0xf] %vm3510_vm1, %v4440_v55  ;;  %v7265_v13 = vcombine.low %v5266_v36, %v5268_v38  ;;  %v7964_v55 = vadd.f32 %v7963_v62, %v7962_v33  ;;  %v7958_v36 = vadd.f32 %v7957_v2, %v7956_v3  ;;  %v10702_v38 = vpop.f32.mrf.mxu0 }
 0x496   : > { %5857 = vmatprep.mubr.bf16.mxu1 %v8354_v16  ;;  %v10707_v16 = vld [vmem:[%s10949_s4] ss:$0 sm:$0xff] }
 0x497   : > { %5858 = vmatmul.mubr.bf16.gmra.mxu1 %v7265_v13  ;;  %v3734_v25 = vpop.permute.xlu0 %3733  ;;  %v5756_v13 = vadd.f32 %v7964_v55, %v10707_v16  ;;  %v10717_v3 = vld [vmem:[%s10951_s6] ss:$0 sm:$0xff] }
 0x498   : > { %v3732_v57 = vpop.permute.xlu1 %3731  ;;  %3799 = vst.msk [vmem:[#allocation5 + $0x174] sm:$0xf] %vm3767_vm2, %v3734_v25  ;;  %v5748_v25 = vadd.f32 %v7958_v36, %v10707_v16 }
 0x499   : > { %3798 = vst.msk [vmem:[#allocation5 + $0x168] sm:$0xf] %vm3767_vm2, %v3732_v57  ;;  %v7967_v57 = vadd.f32 %v7966_v51, %v7965_v43 }
 0x49b   : > { %v4697_v8 = vpop.permute.xlu0 %4696  ;;  %v5759_v2 = vadd.f32 %v7967_v57, %v10707_v16 }
 0x49c   : > { %v4695_v63 = vpop.permute.xlu1 %4694  ;;  %4761 = vst.msk [vmem:[#allocation5 + $0x178] sm:$0xf] %vm3767_vm2, %v4697_v8  ;;  %v7961_v8 = vadd.f32 %v7960_v35, %v7959_v59 }
 0x49d   : > { %4760 = vst.msk [vmem:[#allocation5 + $0x16c] sm:$0xf] %vm3767_vm2, %v4695_v63  ;;  %v10711_v63 = vpop.f32.mrf.mxu0 }
 0x49f   : > { %v3989_v11 = vpop.permute.xlu0 %3988 }
 0x4a0   : > { %v6210_v40 = vpop.permute.xlu1 %6209  ;;  %4055 = vst.msk [vmem:[#allocation5 + $0x168] sm:$0xf] %vm4024_vm3, %v3989_v11  ;;  %v5917_v11 = vadd.f32 %v10603_v30, %v5756_v13 }
 0x4a1   : > { %8184 = vmatmul.mubr.msk.bf16.gmra.mxu0 %vm278_vm0, %v6210_v40  ;;  %v7977_v40 = vpop.f32.mrf.mxu1 }
 0x4a2   : > { %v6037_v33 = vmax.f32 %v5917_v11, 0.0 }
 0x4a3   : > { %v4951_v49 = vpop.permute.xlu0 %4950 }
 0x4a4   : > { %v3991_v53 = vpop.permute.xlu1 %3990  ;;  %5016 = vst.msk [vmem:[#allocation5 + $0x16c] sm:$0xf] %vm4024_vm3, %v4951_v49 }
 0x4a5   : > { %4056 = vst.msk [vmem:[#allocation5 + $0x174] sm:$0xf] %vm4024_vm3, %v3991_v53  ;;  %v5909_v53 = vadd.f32 %v10607_v21, %v5748_v25 }
 0x4a7   : > { %v6212_v24 = vpop.permute.xlu0 %6211 }
 0x4a8   : > { %v4953_v15 = vpop.permute.xlu1 %4952  ;;  %8187 = vmatprep.mubr.msk.bf16.mxu0 %vm278_vm0, %v6212_v24  ;;  %v7978_v24 = vpop.f32.mrf.mxu1 }
 0x4a9   : > { %5017 = vst.msk [vmem:[#allocation5 + $0x178] sm:$0xf] %vm4024_vm3, %v4953_v15  ;;  %v5751_v15 = vadd.f32 %v7961_v8, %v10707_v16 }
 0x4ab   : > { %v6216_v32 = vpop.permute.xlu0 %6215  ;;  %v5912_v21 = vadd.f32 %v10615_v46, %v5751_v15 }
 0x4ac   : > { %v6214_v39 = vpop.permute.xlu1 %6213  ;;  %v8358_v7 = vld [vmem:[#allocation5 + $0x168] ss:$12 sps:$4 sm:$0xff]  }
 0x4ad   : > { %8188 = vmatmul.mubr.msk.bf16.gmra.mxu0 %vm278_vm0, %v6214_v39  ;;  %v5920_v39 = vadd.f32 %v10611_v20, %v5759_v2  ;;  %v6036_v8 = vmax.f32 %v5912_v21, 0.0 }
 0x4ae   : > { %8191 = vmatprep.mubr.msk.bf16.mxu0 %vm278_vm0, %v6216_v32  ;;  %v10727_v32 = vpop.f32.mrf.mxu1 }
 0x4af   : > { %v6038_v13 = vmax.f32 %v5920_v39, 0.0 }
 0x4b0   : > { %v8356_v28 = vld [vmem:[#allocation5 + $0x16c] ss:$12 sps:$4 sm:$0xff]   ;;  %v6218_v0 = vpop.permute.xlu1 %6217  ;;  %v7981_v36 = vpop.f32.mrf.mxu1 }
 0x4b1   : > { %5865 = vmatprep.mubr.bf16.mxu1 %v8356_v28 }
 0x4b2   : > { %5866 = vmatmul.mubr.bf16.gmra.mxu1 %v8358_v7  ;;  %v6035_v7 = vmax.f32 %v5909_v53, 0.0  ;;  %v7983_v2 = vpop.f32.mrf.mxu1 }
 0x4b5   : > { %8192 = vmatmul.mubr.msk.bf16.gmra.mxu0 %vm278_vm0, %v6218_v0 }
 0x4d5   : > { %v8165_v49 = vpop.f32.mrf.mxu0 }
 0x4d6   : > { %v6313_v59 = vadd.f32 %v8165_v49, %v10717_v3  ;;  %v7984_v49 = vpop.f32.mrf.mxu1 }
 0x4d7   : > { %v6304_v35 = vpop.f32.mrf.mxu0 }
 0x4d8   : > { %v6433_v28 = vmax.f32 %v6313_v59, 0.0  ;;  %v6305_v30 = vadd.f32 %v10717_v3, %v6304_v35  ;;  %v7986_v15 = vpop.f32.mrf.mxu1  ;;  %v7976_v59 = vadd.f32 %v7975_v22, %v7974_v44  ;;  %v7970_v35 = vadd.f32 %v7969_v60, %v7968_v26 }
 0x4d9   : > { %v8166_v62 = vpop.f32.mrf.mxu0 }
 0x4da   : > { %v6465_v0 = vadd.f32 %v6433_v28, %v6037_v33  ;;  %v6431_v43 = vmax.f32 %v6305_v30, 0.0  ;;  %v6316_v51 = vadd.f32 %v8166_v62, %v10717_v3  ;;  %v7987_v33 = vpop.f32.mrf.mxu1  ;;  %v5772_v39 = vadd.f32 %v7976_v59, %v10707_v16 }
 0x4db   : > { %v6307_v55 = vpop.f32.mrf.mxu0  ;;  %v7979_v28 = vadd.f32 %v7978_v24, %v7977_v40  ;;  %v5764_v30 = vadd.f32 %v7970_v35, %v10707_v16 }
 0x4dc   : > { %6497 = vst.msk [vmem:[%s10732_s22 + $0x10] sm:$0xff] %vm320_vm13, %v6465_v0  ;;  %v6463_v20 = vadd.f32 %v6431_v43, %v6035_v7  ;;  %v6434_v57 = vmax.f32 %v6316_v51, 0.0  ;;  %v6308_v25 = vadd.f32 %v10717_v3, %v6307_v55  ;;  %v7973_v7 = vadd.f32 %v7972_v42, %v7971_v1  ;;  %v7989_v62 = vpop.f32.mrf.mxu1 }
 0x4dd   : > { %v5933_v21 = vadd.f32 %v10617_v10, %v5772_v39  ;;  %v5775_v0 = vadd.f32 %v7979_v28, %v10707_v16  ;;  %v5925_v43 = vadd.f32 %v10621_v18, %v5764_v30 }
 0x4de   : > { %6495 = vst.msk [vmem:[%s10732_s22] sm:$0xff] %vm320_vm13, %v6463_v20  ;;  %v6466_v46 = vadd.f32 %v6434_v57, %v6038_v13  ;;  %v6432_v11 = vmax.f32 %v6308_v25, 0.0  ;;  %v5767_v55 = vadd.f32 %v7973_v7, %v10707_v16  ;;  %v7990_v20 = vpop.f32.mrf.mxu1 }
 0x4df   : > { %v5936_v44 = vadd.f32 %v10625_v27, %v5775_v0  ;;  %v6041_v1 = vmax.f32 %v5933_v21, 0.0  ;;  %v6039_v40 = vmax.f32 %v5925_v43, 0.0  ;;  %v7988_v0 = vadd.f32 %v7987_v33, %v7986_v15 }
 0x4e0   : > { %6498 = vst.msk [vmem:[%s10732_s22 + $0x18] sm:$0xff] %vm320_vm13, %v6466_v46  ;;  %v6464_v53 = vadd.f32 %v6432_v11, %v6036_v8  ;;  %v10751_v22 = vpop.f32.mrf.mxu1  ;;  %v5928_v18 = vadd.f32 %v10629_v37, %v5767_v55  ;;  %v7982_v43 = vadd.f32 %v7981_v36, %v10727_v32 }
 0x4e1   : > { %v6042_v11 = vmax.f32 %v5936_v44, 0.0  ;;  %v5788_v55 = vadd.f32 %v7988_v0, %v10707_v16  ;;  %v7985_v44 = vadd.f32 %v7984_v49, %v7983_v2 }
 0x4e2   : > { %6496 = vst.msk [vmem:[%s10732_s22 + $0x8] sm:$0xff] %vm320_vm13, %v6464_v53  ;;  %v7993_v8 = vpop.f32.mrf.mxu1  ;;  %v6040_v39 = vmax.f32 %v5928_v18, 0.0 }
 0x4e3   : > { %v5783_v18 = vadd.f32 %v7985_v44, %v10707_v16 }
 0x4e4   : > { %v7995_v28 = vpop.f32.mrf.mxu1 }
 0x4e6   : > { %v7996_v7 = vpop.f32.mrf.mxu1 }
 0x4e8   : > { %v7998_v21 = vpop.f32.mrf.mxu1 }
 0x4f1   : > { %v8169_v51 = vpop.f32.mrf.mxu0 }
 0x4f2   : > { %v6329_v26 = vadd.f32 %v8169_v51, %v10717_v3  ;;  %v7999_v51 = vpop.f32.mrf.mxu1 }
 0x4f3   : > { %v6320_v60 = vpop.f32.mrf.mxu0 }
 0x4f4   : > { %v6437_v42 = vmax.f32 %v6329_v26, 0.0  ;;  %v6321_v10 = vadd.f32 %v10717_v3, %v6320_v60  ;;  %v7991_v26 = vadd.f32 %v7990_v20, %v7989_v62  ;;  %v5780_v60 = vadd.f32 %v7982_v43, %v10707_v16 }
 0x4f5   : > { %v8170_v24 = vpop.f32.mrf.mxu0 }
 0x4f6   : > { %v6469_v13 = vadd.f32 %v6437_v42, %v6041_v1  ;;  %v6435_v57 = vmax.f32 %v6321_v10, 0.0  ;;  %v6332_v25 = vadd.f32 %v8170_v24, %v10717_v3  ;;  %v8001_v1 = vpop.f32.mrf.mxu1  ;;  %v5949_v42 = vadd.f32 %v10633_v34, %v5788_v55 }
 0x4f7   : > { %v6323_v46 = vpop.f32.mrf.mxu0  ;;  %v5791_v10 = vadd.f32 %v7991_v26, %v10707_v16  ;;  %v8000_v26 = vadd.f32 %v7999_v51, %v7998_v21 }
 0x4f8   : > { %6501 = vst.msk [vmem:[%s10732_s22 + $0x30] sm:$0xff] %vm320_vm13, %v6469_v13  ;;  %v6467_v27 = vadd.f32 %v6435_v57, %v6039_v40  ;;  %v6438_v53 = vmax.f32 %v6332_v25, 0.0  ;;  %v6324_v59 = vadd.f32 %v10717_v3, %v6323_v46  ;;  %v5941_v40 = vadd.f32 %v10637_v52, %v5780_v60  ;;  %v8002_v15 = vpop.f32.mrf.mxu1 }
 0x4f9   : > { %v5952_v33 = vadd.f32 %v10641_v31, %v5791_v10  ;;  %v6045_v2 = vmax.f32 %v5949_v42, 0.0  ;;  %v5944_v52 = vadd.f32 %v10645_v9, %v5783_v18  ;;  %v7994_v60 = vadd.f32 %v7993_v8, %v10751_v22 }
 0x4fa   : > { %6499 = vst.msk [vmem:[%s10732_s22 + $0x20] sm:$0xff] %vm320_vm13, %v6467_v27  ;;  %v6470_v35 = vadd.f32 %v6438_v53, %v6042_v11  ;;  %v6436_v37 = vmax.f32 %v6324_v59, 0.0  ;;  %v10774_v62 = vpop.f32.mrf.mxu1  ;;  %v6043_v20 = vmax.f32 %v5941_v40, 0.0  ;;  %v5804_v42 = vadd.f32 %v8000_v26, %v10707_v16 }
 0x4fb   : > { %v6046_v53 = vmax.f32 %v5952_v33, 0.0  ;;  %v8003_v10 = vadd.f32 %v8002_v15, %v8001_v1  ;;  %v5796_v40 = vadd.f32 %v7994_v60, %v10707_v16 }
 0x4fc   : > { %6502 = vst.msk [vmem:[%s10732_s22 + $0x38] sm:$0xff] %vm320_vm13, %v6470_v35  ;;  %v6468_v30 = vadd.f32 %v6436_v37, %v6040_v39  ;;  %v8005_v11 = vpop.f32.mrf.mxu1  ;;  %v6044_v37 = vmax.f32 %v5944_v52, 0.0 }
 0x4fd   : > { %v5957_v33 = vadd.f32 %v10651_v50, %v5796_v40  ;;  %v8006_v26 = vadd.f32 %v8005_v11, %v10774_v62 }
 0x4fe   : > { %6500 = vst.msk [vmem:[%s10732_s22 + $0x28] sm:$0xff] %vm320_vm13, %v6468_v30  ;;  %v8007_v30 = vpop.f32.mrf.mxu1 }
 0x4ff   : > { %v6047_v15 = vmax.f32 %v5957_v33, 0.0  ;;  %v5812_v40 = vadd.f32 %v8006_v26, %v10707_v16 }
 0x500   : > { %v8008_v43 = vpop.f32.mrf.mxu1 }
 0x502   : > { %v8010_v55 = vpop.f32.mrf.mxu1 }
 0x504   : > { %v8011_v44 = vpop.f32.mrf.mxu1 }
 0x506   : > { %v8013_v18 = vpop.f32.mrf.mxu1 }
 0x508   : > { %v8014_v21 = vpop.f32.mrf.mxu1 }
 0x50a   : > { %v10797_v1 = vpop.f32.mrf.mxu1 }
 0x50d   : > { %v8173_v24 = vpop.f32.mrf.mxu0 }
 0x50e   : > { %v6345_v32 = vadd.f32 %v8173_v24, %v10717_v3  ;;  %v7997_v24 = vadd.f32 %v7996_v7, %v7995_v28 }
 0x50f   : > { %v6336_v36 = vpop.f32.mrf.mxu0 }
 0x510   : > { %v6441_v49 = vmax.f32 %v6345_v32, 0.0  ;;  %v6337_v34 = vadd.f32 %v10717_v3, %v6336_v36  ;;  %v5965_v32 = vadd.f32 %v10647_v29, %v5804_v42  ;;  %v5807_v36 = vadd.f32 %v8003_v10, %v10707_v16 }
 0x511   : > { %v8174_v13 = vpop.f32.mrf.mxu0  ;;  %v8015_v10 = vadd.f32 %v8014_v21, %v8013_v18 }
 0x512   : > { %v6473_v57 = vadd.f32 %v6441_v49, %v6045_v2  ;;  %v6439_v25 = vmax.f32 %v6337_v34, 0.0  ;;  %v6348_v46 = vadd.f32 %v8174_v13, %v10717_v3  ;;  %v5799_v49 = vadd.f32 %v7997_v24, %v10707_v16 }
 0x513   : > { %v6339_v27 = vpop.f32.mrf.mxu0  ;;  %v5968_v51 = vadd.f32 %v10655_v14, %v5807_v36  ;;  %v6049_v28 = vmax.f32 %v5965_v32, 0.0  ;;  %v8009_v24 = vadd.f32 %v8008_v43, %v8007_v30  ;;  %v5823_v33 = vadd.f32 %v8015_v10, %v10707_v16 }
 0x514   : > { %6505 = vst.msk [vmem:[%s10732_s22 + $0x50] sm:$0xff] %vm320_vm13, %v6473_v57  ;;  %v6471_v31 = vadd.f32 %v6439_v25, %v6043_v20  ;;  %v6442_v59 = vmax.f32 %v6348_v46, 0.0  ;;  %v6340_v35 = vadd.f32 %v10717_v3, %v6339_v27  ;;  %v5960_v50 = vadd.f32 %v10659_v17, %v5799_v49  ;;  %v8017_v25 = vpop.f32.mrf.mxu1 }
 0x515   : > { %v6050_v46 = vmax.f32 %v5968_v51, 0.0 }
 0x516   : > { %6503 = vst.msk [vmem:[%s10732_s22 + $0x40] sm:$0xff] %vm320_vm13, %v6471_v31  ;;  %v6474_v39 = vadd.f32 %v6442_v59, %v6046_v53  ;;  %v6440_v9 = vmax.f32 %v6340_v35, 0.0  ;;  %v6048_v59 = vmax.f32 %v5960_v50, 0.0  ;;  %v8019_v35 = vpop.f32.mrf.mxu1 }
 0x518   : > { %6506 = vst.msk [vmem:[%s10732_s22 + $0x58] sm:$0xff] %vm320_vm13, %v6474_v39  ;;  %v6472_v0 = vadd.f32 %v6440_v9, %v6044_v37  ;;  %v8020_v37 = vpop.f32.mrf.mxu1 }
 0x519   : > { %v8021_v26 = vadd.f32 %v8020_v37, %v8019_v35 }
 0x51a   : > { %6504 = vst.msk [vmem:[%s10732_s22 + $0x48] sm:$0xff] %vm320_vm13, %v6472_v0  ;;  %v8022_v9 = vpop.f32.mrf.mxu1  ;;  %v8012_v0 = vadd.f32 %v8011_v44, %v8010_v55  ;;  %v5984_v44 = vadd.f32 %v10671_v6, %v5823_v33 }
 0x51b   : > { %v5831_v33 = vadd.f32 %v8021_v26, %v10707_v16 }
 0x51c   : > { %v8023_v60 = vpop.f32.mrf.mxu1  ;;  %v5820_v42 = vadd.f32 %v8012_v0, %v10707_v16 }
 0x51e   : > { %v8025_v32 = vpop.f32.mrf.mxu1  ;;  %v5981_v36 = vadd.f32 %v10663_v41, %v5820_v42 }
 0x520   : > { %v8026_v55 = vpop.f32.mrf.mxu1  ;;  %v6053_v21 = vmax.f32 %v5981_v36, 0.0 }
 0x522   : > { %v8028_v18 = vpop.f32.mrf.mxu1 }
 0x529   : > { %v8177_v2 = vpop.f32.mrf.mxu0 }
 0x52a   : > { %v6361_v22 = vadd.f32 %v8177_v2, %v10717_v3  ;;  %v5973_v2 = vadd.f32 %v10667_v4, %v5812_v40 }
 0x52b   : > { %v6352_v8 = vpop.f32.mrf.mxu0 }
 0x52c   : > { %v6445_v7 = vmax.f32 %v6361_v22, 0.0  ;;  %v6353_v29 = vadd.f32 %v10717_v3, %v6352_v8  ;;  %v5815_v22 = vadd.f32 %v8009_v24, %v10707_v16  ;;  %v6051_v43 = vmax.f32 %v5973_v2, 0.0 }
 0x52d   : > { %v8178_v34 = vpop.f32.mrf.mxu0 }
 0x52e   : > { %v6477_v20 = vadd.f32 %v6445_v7, %v6049_v28  ;;  %v6443_v13 = vmax.f32 %v6353_v29, 0.0  ;;  %v6364_v52 = vadd.f32 %v8178_v34, %v10717_v3  ;;  %v5976_v4 = vadd.f32 %v10675_v58, %v5815_v22 }
 0x52f   : > { %v6355_v57 = vpop.f32.mrf.mxu0  ;;  %v6054_v34 = vmax.f32 %v5984_v44, 0.0 }
 0x530   : > { %6509 = vst.msk [vmem:[%s10732_s22 + $0x70] sm:$0xff] %vm320_vm13, %v6477_v20  ;;  %v6475_v14 = vadd.f32 %v6443_v13, %v6047_v15  ;;  %v6446_v27 = vmax.f32 %v6364_v52, 0.0  ;;  %v6356_v31 = vadd.f32 %v10717_v3, %v6355_v57  ;;  %v8029_v15 = vpop.f32.mrf.mxu1  ;;  %v6052_v52 = vmax.f32 %v5976_v4, 0.0 }
 0x531   : > { %v8030_v22 = vadd.f32 %v8029_v15, %v8028_v18 }
 0x532   : > { %6507 = vst.msk [vmem:[%s10732_s22 + $0x60] sm:$0xff] %vm320_vm13, %v6475_v14  ;;  %v6478_v53 = vadd.f32 %v6446_v27, %v6050_v46  ;;  %v6444_v17 = vmax.f32 %v6356_v31, 0.0  ;;  %v8031_v57 = vpop.f32.mrf.mxu1  ;;  %v8024_v31 = vadd.f32 %v8023_v60, %v8022_v9 }
 0x534   : > { %6510 = vst.msk [vmem:[%s10732_s22 + $0x78] sm:$0xff] %vm320_vm13, %v6478_v53  ;;  %v6476_v39 = vadd.f32 %v6444_v17, %v6048_v59  ;;  %v8032_v46 = vpop.f32.mrf.mxu1  ;;  %v8018_v53 = vadd.f32 %v8017_v25, %v10797_v1  ;;  %v8027_v17 = vadd.f32 %v8026_v55, %v8025_v32 }
 0x536   : > { %6508 = vst.msk [vmem:[%s10732_s22 + $0x68] sm:$0xff] %vm320_vm13, %v6476_v39  ;;  %v5836_v39 = vadd.f32 %v8024_v31, %v10707_v16  ;;  %v5828_v0 = vadd.f32 %v8018_v53, %v10707_v16  ;;  %v5839_v10 = vadd.f32 %v8027_v17, %v10707_v16 }
 0x538   : > { %v5997_v40 = vadd.f32 %v10677_v23, %v5836_v39  ;;  %v5989_v24 = vadd.f32 %v10681_v12, %v5828_v0  ;;  %v6000_v25 = vadd.f32 %v10685_v5, %v5839_v10  ;;  %v5992_v12 = vadd.f32 %v10687_v47, %v5831_v33 }
 0x539   : > { %v5844_v47 = vadd.f32 %v8030_v22, %v10707_v16 }
 0x53a   : > { %v6057_v35 = vmax.f32 %v5997_v40, 0.0  ;;  %v6055_v23 = vmax.f32 %v5989_v24, 0.0 }
 0x53b   : > { %v8034_v27 = vpop.f32.mrf.mxu1 }
 0x53d   : > { %v8035_v59 = vpop.f32.mrf.mxu1 }
 0x53e   : > { %v8036_v60 = vadd.f32 %v8035_v59, %v8034_v27 }
 0x53f   : > { %v8037_v42 = vpop.f32.mrf.mxu1 }
 0x540   : > { %v5852_v5 = vadd.f32 %v8036_v60, %v10707_v16 }
 0x541   : > { %v8038_v9 = vpop.f32.mrf.mxu1 }
 0x542   : > { %v6013_v15 = vadd.f32 %v10690_v45, %v5852_v5 }
 0x544   : > { %v6061_v27 = vmax.f32 %v6013_v15, 0.0 }
 0x545   : > { %v8181_v49 = vpop.f32.mrf.mxu0 }
 0x546   : > { %v6377_v62 = vadd.f32 %v8181_v49, %v10717_v3 }
 0x547   : > { %v6368_v11 = vpop.f32.mrf.mxu0 }
 0x548   : > { %v6449_v30 = vmax.f32 %v6377_v62, 0.0  ;;  %v6369_v41 = vadd.f32 %v10717_v3, %v6368_v11 }
 0x549   : > { %v8182_v8 = vpop.f32.mrf.mxu0 }
 0x54a   : > { %v6481_v51 = vadd.f32 %v6449_v30, %v6053_v21  ;;  %v6447_v28 = vmax.f32 %v6369_v41, 0.0  ;;  %v6380_v7 = vadd.f32 %v8182_v8, %v10717_v3  ;;  %v6058_v21 = vmax.f32 %v6000_v25, 0.0 }
 0x54b   : > { %v6371_v29 = vpop.f32.mrf.mxu0  ;;  %v8039_v41 = vadd.f32 %v8038_v9, %v8037_v42 }
 0x54c   : > { %6513 = vst.msk [vmem:[%s10732_s22 + $0x90] sm:$0xff] %vm320_vm13, %v6481_v51  ;;  %v6479_v6 = vadd.f32 %v6447_v28, %v6051_v43  ;;  %v6450_v50 = vmax.f32 %v6380_v7, 0.0  ;;  %v6372_v20 = vadd.f32 %v10717_v3, %v6371_v29  ;;  %v8033_v51 = vadd.f32 %v8032_v46, %v8031_v57 }
 0x54d   : > { %v6056_v7 = vmax.f32 %v5992_v12, 0.0 }
 0x54e   : > { %6511 = vst.msk [vmem:[%s10732_s22 + $0x80] sm:$0xff] %vm320_vm13, %v6479_v6  ;;  %v6482_v13 = vadd.f32 %v6450_v50, %v6054_v34  ;;  %v6448_v58 = vmax.f32 %v6372_v20, 0.0  ;;  %v5855_v6 = vadd.f32 %v8039_v41, %v10707_v16  ;;  %v6005_v20 = vadd.f32 %v10692_v48, %v5844_v47 }
 0x550   : > { %6514 = vst.msk [vmem:[%s10732_s22 + $0x98] sm:$0xff] %vm320_vm13, %v6482_v13  ;;  %v6480_v14 = vadd.f32 %v6448_v58, %v6052_v52  ;;  %v5847_v13 = vadd.f32 %v8033_v51, %v10707_v16  ;;  %v6016_v45 = vadd.f32 %v10694_v56, %v5855_v6  ;;  %v6059_v48 = vmax.f32 %v6005_v20, 0.0 }
 0x552   : > { %6512 = vst.msk [vmem:[%s10732_s22 + $0x88] sm:$0xff] %vm320_vm13, %v6480_v14  ;;  %v6008_v59 = vadd.f32 %v10696_v19, %v5847_v13 }
 0x554   : > { %v6060_v9 = vmax.f32 %v6008_v59, 0.0 }
 0x557   : > { %v8040_v2 = vpop.f32.mrf.mxu1 }
 0x559   : > { %v8041_v43 = vpop.f32.mrf.mxu1 }
 0x55a   : > { %v8042_v58 = vadd.f32 %v8041_v43, %v8040_v2 }
 0x55b   : > { %v8043_v34 = vpop.f32.mrf.mxu1 }
 0x55c   : > { %v5860_v39 = vadd.f32 %v8042_v58, %v10707_v16 }
 0x55d   : > { %v8044_v46 = vpop.f32.mrf.mxu1 }
 0x55e   : > { %v8045_v10 = vadd.f32 %v8044_v46, %v8043_v34  ;;  %v6021_v60 = vadd.f32 %v10700_v61, %v5860_v39 }
 0x560   : > { %v6063_v5 = vmax.f32 %v6021_v60, 0.0 }
 0x561   : > { %v8185_v36 = vpop.f32.mrf.mxu0 }
 0x562   : > { %v6393_v1 = vadd.f32 %v8185_v36, %v10717_v3  ;;  %v6062_v36 = vmax.f32 %v6016_v45, 0.0 }
 0x563   : > { %v6384_v32 = vpop.f32.mrf.mxu0 }
 0x564   : > { %v6453_v37 = vmax.f32 %v6393_v1, 0.0  ;;  %v6385_v49 = vadd.f32 %v10717_v3, %v6384_v32 }
 0x565   : > { %v8186_v55 = vpop.f32.mrf.mxu0 }
 0x566   : > { %v6485_v62 = vadd.f32 %v6453_v37, %v6057_v35  ;;  %v6451_v11 = vmax.f32 %v6385_v49, 0.0  ;;  %v6396_v44 = vadd.f32 %v8186_v55, %v10717_v3  ;;  %v5863_v37 = vadd.f32 %v8045_v10, %v10707_v16 }
 0x567   : > { %v6387_v30 = vpop.f32.mrf.mxu0 }
 0x568   : > { %6517 = vst.msk [vmem:[%s10732_s22 + $0xb0] sm:$0xff] %vm320_vm13, %v6485_v62  ;;  %v6483_v8 = vadd.f32 %v6451_v11, %v6055_v23  ;;  %v6454_v18 = vmax.f32 %v6396_v44, 0.0  ;;  %v6388_v4 = vadd.f32 %v10717_v3, %v6387_v30  ;;  %v6024_v41 = vadd.f32 %v10711_v63, %v5863_v37 }
 0x56a   : > { %6515 = vst.msk [vmem:[%s10732_s22 + $0xa0] sm:$0xff] %vm320_vm13, %v6483_v8  ;;  %v6486_v28 = vadd.f32 %v6454_v18, %v6058_v21  ;;  %v6452_v29 = vmax.f32 %v6388_v4, 0.0  ;;  %v6064_v63 = vmax.f32 %v6024_v41, 0.0 }
 0x56c   : > { %6518 = vst.msk [vmem:[%s10732_s22 + $0xb8] sm:$0xff] %vm320_vm13, %v6486_v28  ;;  %v6484_v50 = vadd.f32 %v6452_v29, %v6056_v7 }
 0x56d   : > { %v8189_v52 = vpop.f32.mrf.mxu0 }
 0x56e   : > { %6516 = vst.msk [vmem:[%s10732_s22 + $0xa8] sm:$0xff] %vm320_vm13, %v6484_v50  ;;  %v6409_v57 = vadd.f32 %v8189_v52, %v10717_v3 }
 0x56f   : > { %v6400_v14 = vpop.f32.mrf.mxu0 }
 0x570   : > { %v6457_v31 = vmax.f32 %v6409_v57, 0.0  ;;  %v6401_v53 = vadd.f32 %v10717_v3, %v6400_v14 }
 0x571   : > { %v8190_v17 = vpop.f32.mrf.mxu0 }
 0x572   : > { %v6489_v0 = vadd.f32 %v6457_v31, %v6061_v27  ;;  %v6455_v26 = vmax.f32 %v6401_v53, 0.0  ;;  %v6412_v42 = vadd.f32 %v8190_v17, %v10717_v3  ;;  %v8046_v24 = vpop.f32.mrf.mxu1 }
 0x573   : > { %v6403_v40 = vpop.f32.mrf.mxu0 }
 0x574   : > { %6521 = vst.msk [vmem:[%s10732_s22 + $0xd0] sm:$0xff] %vm320_vm13, %v6489_v0  ;;  %v6487_v56 = vadd.f32 %v6455_v26, %v6059_v48  ;;  %v6458_v33 = vmax.f32 %v6412_v42, 0.0  ;;  %v6404_v19 = vadd.f32 %v10717_v3, %v6403_v40  ;;  %v8047_v25 = vpop.f32.mrf.mxu1 }
 0x575   : > { %v8193_v1 = vpop.f32.mrf.mxu0  ;;  %v8048_v35 = vadd.f32 %v8047_v25, %v8046_v24 }
 0x576   : > { %6519 = vst.msk [vmem:[%s10732_s22 + $0xc0] sm:$0xff] %vm320_vm13, %v6487_v56  ;;  %v6490_v32 = vadd.f32 %v6458_v33, %v6062_v36  ;;  %v6456_v2 = vmax.f32 %v6404_v19, 0.0  ;;  %v6425_v49 = vadd.f32 %v8193_v1, %v10717_v3  ;;  %v8049_v23 = vpop.f32.mrf.mxu1 }
 0x577   : > { %v6416_v22 = vpop.f32.mrf.mxu0  ;;  %v5868_v12 = vadd.f32 %v8048_v35, %v10707_v16 }
 0x578   : > { %6522 = vst.msk [vmem:[%s10732_s22 + $0xd8] sm:$0xff] %vm320_vm13, %v6490_v32  ;;  %v6488_v55 = vadd.f32 %v6456_v2, %v6060_v9  ;;  %v6417_v62 = vadd.f32 %v10717_v3, %v6416_v22  ;;  %v8050_v61 = vpop.f32.mrf.mxu1  ;;  %v6461_v43 = vmax.f32 %v6425_v49, 0.0 }
 0x579   : > { %v8194_v11 = vpop.f32.mrf.mxu0  ;;  %v6029_v44 = vadd.f32 %v10698_v54, %v5868_v12  ;;  %v8051_v30 = vadd.f32 %v8050_v61, %v8049_v23 }
 0x57a   : > { %6520 = vst.msk [vmem:[%s10732_s22 + $0xc8] sm:$0xff] %vm320_vm13, %v6488_v55  ;;  %v6459_v21 = vmax.f32 %v6417_v62, 0.0  ;;  %v6428_v47 = vadd.f32 %v8194_v11, %v10717_v3 }
 0x57b   : > { %v6419_v8 = vpop.f32.mrf.mxu0  ;;  %v6065_v18 = vmax.f32 %v6029_v44, 0.0  ;;  %v5871_v51 = vadd.f32 %v8051_v30, %v10707_v16 }
 0x57c   : > { %v6491_v4 = vadd.f32 %v6459_v21, %v6063_v5  ;;  %v6420_v28 = vadd.f32 %v10717_v3, %v6419_v8  ;;  %v6462_v15 = vmax.f32 %v6428_v47, 0.0 }
 0x57d   : > { %v6493_v54 = vadd.f32 %v6461_v43, %v6065_v18  ;;  %v6032_v7 = vadd.f32 %v10702_v38, %v5871_v51 }
 0x57e   : > { %6523 = vst.msk [vmem:[%s10732_s22 + $0xe0] sm:$0xff] %vm320_vm13, %v6491_v4  ;;  %v6460_v29 = vmax.f32 %v6420_v28, 0.0 }
 0x57f   : > { %6525 = vst.msk [vmem:[%s10732_s22 + $0xf0] sm:$0xff] %vm320_vm13, %v6493_v54  ;;  %v6066_v6 = vmax.f32 %v6032_v7, 0.0 }
 0x580   : > { %v6492_v16 = vadd.f32 %v6460_v29, %v6064_v63 }
 0x581   : > { %v6494_v3 = vadd.f32 %v6462_v15, %v6066_v6 }
 0x582   : > { %6524 = vst.msk [vmem:[%s10732_s22 + $0xe8] sm:$0xff] %vm320_vm13, %v6492_v16 }
 0x583   : > { %6526 = vst.msk [vmem:[%s10732_s22 + $0xf8] sm:$0xff] %vm320_vm13, %v6494_v3 }
 0x584   : > { %8373 = shalt.err (!%p8370_p3)
}
 0x585   : > { %s8374_s15 = scalar_lea.hbm %s10894_s13, 4096  ;;  %s8378_s22 = scalar_lea.hbm %s10952_s7, 8192 }
 0x586   : > { %p8375_p4 = scmp.ne.s32.totalorder %s10894_s13, %s8374_s15  ;;  %p8379_p9 = scmp.lt.s32.totalorder %s10894_s13, %s10952_s7 }
 0x587   : > { %p8380_p10 = scmp.lt.s32.totalorder %s8378_s22, %s8374_s15 }
 0x588   : > { %p8376_p7 = pnand %p8375_p4, %p8514_p5 }
 0x589   : > { %p8381_p11 = por %p8380_p10, %p8379_p9 }
 0x58a   : > { %p8377_p8 = pneg %p8376_p7 }
 0x58c   : > { %p8382_p12 = pnand %p8381_p11, %p8377_p8 }
 0x58e   : > { %8385 = shalt.err (!%p8382_p12)
}
 0x58f   : > { %s8435_s9 = smov 128  }
 0x590   : > { %8204 = dma.vmem_to_hbm [thread:$0]  (%p8514_p5), %s10896_s29, 4096, %s10894_s13, %s10904_s28, %s8435_s9, %s8435_s9, %s8424_s19  }
 0x591 PF: > { %p8210_p13 = scmp.ge.s32.totalorder %s8420_s27, 2  ;;  %s6556_s14 = sand.u32 1, %s8408_s24  }
 0x592   : > { %s6557_s17 = scalar_lea.sflag [#allocation7], %s6556_s14 }
 0x593   : > { %p8207_p0 = pnand %p8210_p13, %p8518_p6 }
 0x595   : > { %p8208_p1 = pneg %p8207_p0 }
 0x597   : > { %8403 = dma.done.wait (%p8208_p1), %s6557_s17, 4096  }
 0x598   : > { %8405 = vsyncadd (%p8208_p1), %s6557_s17, 4294963200  ;;  %p17_p2 = scmp.ge.s32.totalorder %s8501_s30, 4   ;;  %s10955_s24 = smov %s8412_s25 }
 0x599   : > { %s10956_s25 = smov %s8416_s26  ;;  %s10957_s26 = smov %s8512_s10 }
 0x59a   : > { %s10958_s27 = smov %s8501_s30  ;;  %19 = sbr.rel (!%p17_p2) target bundleno = 3 (0x3), region = 89 }
 0x59f   :  { %6562 = vsyncpa [#allocation7], 1 }
 0x5a0   :  { %6564 = vsyncpa [#allocation7 + $0x1], 1 }

</bundles_post_ra>
